<compile_context>
chip_gen: v6e
topology: v6e:2x2x1
jax: 0.10.0
libtpu: 0.0.40
codegen_flags: <defaults>
</compile_context>

<pallas_src>
import jax
import jax.numpy as jnp
from jax import lax
from jax.experimental import pallas as pl
from jax.experimental.pallas import tpu as pltpu

N_EMBD = 384        # C
BLOCK_SIZE = 64     # max T (tril buffer size in the torch module)

# Safe on every generation: above the v5e (16 MiB) / v6e (32 MiB) scoped defaults,
# comfortably below v7x's 64 MiB physical VMEM.
_VMEM_LIMIT_BYTES = 40 * 1024 * 1024


def _head_kernel(x_ref, w_ref, o_ref):
    # x_ref: (BB, T, C) bf16 block of batch elements
    # w_ref: (C, 3H)    bf16 fused [q*scale | k | v] projection weights
    # o_ref: (BB, T, H) f32
    BB, T, C = x_ref.shape
    H = o_ref.shape[-1]

    x = x_ref[...]                                           # (BB, T, C) bf16
    w = w_ref[...]                                           # (C, 3H)    bf16

    # One wide QKV projection on the MXU: (BB*T, C) @ (C, 3H) -> f32 accum.
    qkv = jnp.dot(x.reshape(BB * T, C), w,
                  preferred_element_type=jnp.float32).reshape(BB, T, 3 * H)
    # NOTE: the 1/sqrt(C) score scale is pre-folded into the q columns of w.
    q = qkv[:, :, 0 * H:1 * H].astype(jnp.bfloat16)          # (BB, T, H)
    k = qkv[:, :, 1 * H:2 * H].astype(jnp.bfloat16)
    v = qkv[:, :, 2 * H:3 * H].astype(jnp.bfloat16)

    # Batched scores: contract the head dim directly (no explicit k transpose).
    scores = jnp.einsum('btd,bsd->bts', q, k,
                        preferred_element_type=jnp.float32)  # (BB, T, T)

    # Causal (tril) mask: position t attends only to s <= t.
    row = lax.broadcasted_iota(jnp.int32, (T, T), 0)
    col = lax.broadcasted_iota(jnp.int32, (T, T), 1)
    # -inf is safe: the diagonal is always unmasked, so no row is fully masked.
    scores = jnp.where((col <= row)[None, :, :], scores, -jnp.inf)

    # Numerically stable softmax in f32; reciprocal goes to the EUP slot.
    m = jnp.max(scores, axis=-1, keepdims=True)
    e = jnp.exp(scores - m)
    p = e * pl.reciprocal(jnp.sum(e, axis=-1, keepdims=True), approx=True)

    # dropout: identity (eval mode) -- see TODO at top of file.

    out = jnp.einsum('bts,bsd->btd', p.astype(jnp.bfloat16), v,
                     preferred_element_type=jnp.float32)     # (BB, T, H)
    o_ref[...] = out.astype(o_ref.dtype)


def prepare_qkv_weight(wq, wk, wv, n_embd=N_EMBD):
    """One-time weight prep (do this at init, NOT per forward call).

    wq, wk, wv: (H, C) float32 in torch nn.Linear layout (out_features, in_features).
    Returns a fused (C, 3H) bfloat16 matrix laid out [q * C^-0.5 | k | v].
    The softmax score scale (C**-0.5, C = n_embd, matching the torch module) is
    folded into the q columns so the kernel skips a full (BB, T, T) multiply.
    """
    scale = float(n_embd) ** -0.5
    w = jnp.concatenate([wq.T * scale, wk.T, wv.T], axis=1)  # (C, 3H)
    return w.astype(jnp.bfloat16)


def _tensorcores_per_chip():
    """Best-effort TensorCores visible to a single Pallas call on this device.

    v5e / v6e have 1 TC per chip (the grid is a serial loop there); v7x and the
    v4/v5p megacore chips expose 2 TCs that a 'parallel' grid axis can use.
    Unknown device kinds conservatively report 1 (no forced grid split).
    """
    try:
        kind = jax.devices()[0].device_kind.lower()
    except Exception:
        return 1
    if "v7" in kind or "7x" in kind:
        return 2
    if ("v4" in kind or "v5p" in kind) and "lite" not in kind:
        return 2
    return 1


def _vmem_bb_cap(T, C, H, budget=_VMEM_LIMIT_BYTES):
    """Max batch-tile size that keeps per-step VMEM usage under `budget`."""
    per_b = (
        2 * T * C * 2            # double-buffered bf16 x block
        + 2 * T * H * 4          # double-buffered f32 out block
        + T * 3 * H * 4          # qkv f32
        + 3 * T * H * 2          # q/k/v bf16
        + 2 * T * T * 4          # scores + exp, f32
        + T * T * 2              # p bf16
        + T * H * 4              # out f32
    )
    fixed = 2 * C * 3 * H * 2 + (2 << 20)   # double-buffered weights + headroom
    return max(1, (budget - fixed) // per_b)


def _pick_batch_block(B, bb_cap, min_steps):
    """Pick the per-step batch tile.

    Prefers a divisor of B (so no padded copy of x is needed) and honors a
    minimum number of grid steps only when >1 TensorCore is available.
    Returns (bb, padded_B).
    """
    bb_cap = max(1, min(bb_cap, B))
    if min_steps > 1 and B >= min_steps:
        bb_cap = min(bb_cap, pl.cdiv(B, min_steps))

    # Largest divisor of B that is <= bb_cap (no padding needed).
    bb_div = 1
    for cand in range(bb_cap, 0, -1):
        if B % cand == 0:
            bb_div = cand
            break
    if B <= bb_cap or bb_div * 4 >= bb_cap:
        return bb_div, B

    # Ragged / prime B: minimal padding instead of many tiny steps.
    steps = pl.cdiv(B, bb_cap)
    bb = pl.cdiv(B, steps)
    return bb, steps * bb


def head_forward(x, w_qkv, *, bb_max=128, out_dtype=jnp.float32):
    """Single causal attention head (eval mode).

    x      : (B, T, C) float32 or bfloat16 activations
    w_qkv  : (C, 3H) bfloat16 fused weights from `prepare_qkv_weight`
    returns: (B, T, H) `out_dtype`
    """
    B, T, C = x.shape
    three_h = w_qkv.shape[1]
    H = three_h // 3
    assert C == N_EMBD, f"expected C == {N_EMBD}, got {C}"
    assert T <= BLOCK_SIZE, f"expected T <= {BLOCK_SIZE}, got {T}"

    # Mem-bound kernel: feed bf16 activations (ideally cast upstream where it
    # fuses into the producer; here we cast once in the wrapper).
    x = x.astype(jnp.bfloat16)
    w_qkv = w_qkv.astype(jnp.bfloat16)

    num_tc = _tensorcores_per_chip()
    bb_cap = min(bb_max, _vmem_bb_cap(T, C, H))
    bb, Bp = _pick_batch_block(B, bb_cap, num_tc)
    if Bp != B:
        x = jnp.pad(x, ((0, Bp - B), (0, 0), (0, 0)))

    cost = pl.CostEstimate(
        flops=2 * Bp * T * C * three_h + 4 * Bp * T * T * H,
        transcendentals=Bp * T * T,
        bytes_accessed=Bp * T * C * 2 + C * three_h * 2 + Bp * T * H * 4,
    )

    out = pl.pallas_call(
        _head_kernel,
        out_shape=jax.ShapeDtypeStruct((Bp, T, H), out_dtype),
        grid_spec=pltpu.PrefetchScalarGridSpec(
            num_scalar_prefetch=0,
            grid=(Bp // bb,),
            in_specs=[
                pl.BlockSpec((bb, T, C), lambda b: (b, 0, 0)),
                pl.BlockSpec((C, three_h), lambda b: (0, 0)),
            ],
            out_specs=pl.BlockSpec((bb, T, H), lambda b: (b, 0, 0)),
        ),
        compiler_params=pltpu.CompilerParams(
            # 'parallel' lets the runtime shard the batch-tile axis across the
            # two TensorCores on v7x; harmless (serial loop) on v5e/v6e.
            dimension_semantics=("parallel",),
            vmem_limit_bytes=_VMEM_LIMIT_BYTES,
        ),
        cost_estimate=cost,
    )(x, w_qkv)

    if Bp != B:
        out = out[:B]
    return out


def head_reference(x, wk, wq, wv):
    """Pure-JAX f32 reference matching the PyTorch forward (eval mode)."""
    B, T, C = x.shape
    k = x @ wk.T
    q = x @ wq.T
    v = x @ wv.T
    scores = (q @ jnp.swapaxes(k, -2, -1)) * C ** (-0.5)
    mask = jnp.tril(jnp.ones((T, T), dtype=bool))
    scores = jnp.where(mask[None], scores, -jnp.inf)
    weights = jax.nn.softmax(scores, axis=-1)
    return weights @ v


if __name__ == "__main__":
    B = 8
    T = BLOCK_SIZE      # 64
    C = N_EMBD          # 384
    HEAD_SIZE = 64

    key = jax.random.PRNGKey(0)
    kx, kk, kq, kv = jax.random.split(key, 4)

    x = jax.random.normal(kx, (B, T, C), dtype=jnp.float32)
    # deterministic "Kaiming-like" init for the three Linear weights (head_size, n_embd)
    bound = 1.0 / (C ** 0.5)
    wk = jax.random.uniform(kk, (HEAD_SIZE, C), jnp.float32, -bound, bound)
    wq = jax.random.uniform(kq, (HEAD_SIZE, C), jnp.float32, -bound, bound)
    wv = jax.random.uniform(kv, (HEAD_SIZE, C), jnp.float32, -bound, bound)

    # One-time weight fusion / transpose / scale-fold / bf16 cast (outside the
    # per-call path).
    w_qkv = jax.block_until_ready(prepare_qkv_weight(wq, wk, wv))

    out = jax.block_until_ready(head_forward(x, w_qkv))

    ref = head_reference(x, wk, wq, wv)
    assert out.shape == (B, T, HEAD_SIZE)
    # bf16 activations/weights on the MXU (f32 accumulation) + approx reciprocal
    # vs. the pure-f32 reference -> relaxed tolerance (intentional).
    assert jnp.allclose(out, ref, atol=3e-2, rtol=3e-2), "mismatch vs reference"

    print("KERNEL_OK")
</pallas_src>

<mosaic_0001>
module attributes {stable_mosaic.version = 11 : i64} {
  func.func @_head_kernel(%arg0: i32, %arg1: memref<8x64x384xbf16, #tpu.memory_space<vmem>>, %arg2: memref<384x192xbf16, #tpu.memory_space<vmem>>, %arg3: memref<8x64x64xf32, #tpu.memory_space<vmem>>) attributes {dimension_semantics = [#tpu.dimension_semantics<parallel>], iteration_bounds = array<i64: 1>, scalar_prefetch = 0 : i64, scratch_operands = 0 : i64, tpu.core_type = #tpu.core_type<tc>, window_params = [{transform_indices = @transform_0, window_bounds = array<i64: 8, 64, 384>}, {pipeline_mode = #tpu.pipeline_mode<synchronous>, transform_indices = @transform_1, window_bounds = array<i64: 384, 192>}, {transform_indices = @transform_2, window_bounds = array<i64: 8, 64, 64>}]} {
    %c0 = arith.constant 0 : index
    %c0_0 = arith.constant 0 : index
    %c0_1 = arith.constant 0 : index
    %0 = vector.load %arg1[%c0, %c0_0, %c0_1] : memref<8x64x384xbf16, #tpu.memory_space<vmem>>, vector<8x64x384xbf16>
    %c0_2 = arith.constant 0 : index
    %c0_3 = arith.constant 0 : index
    %1 = vector.load %arg2[%c0_2, %c0_3] : memref<384x192xbf16, #tpu.memory_space<vmem>>, vector<384x192xbf16>
    %2 = vector.shape_cast %0 : vector<8x64x384xbf16> to vector<512x384xbf16>
    %cst = arith.constant dense<0.000000e+00> : vector<512x192xf32>
    %3 = tpu.matmul %2, %1, %cst {dimension_numbers = #tpu.dot_dimension_numbers<[1], [0], [0], [1], [0, 0, 1, 1], [], []>} : vector<512x384xbf16>, vector<384x192xbf16>, vector<512x192xf32> -> vector<512x192xf32>
    %4 = vector.shape_cast %3 : vector<512x192xf32> to vector<8x64x192xf32>
    %5 = vector.extract_strided_slice %4 {offsets = [0, 0, 0], sizes = [8, 64, 64], strides = [1, 1, 1]} : vector<8x64x192xf32> to vector<8x64x64xf32>
    %6 = arith.truncf %5 : vector<8x64x64xf32> to vector<8x64x64xbf16>
    %7 = vector.extract_strided_slice %4 {offsets = [0, 0, 64], sizes = [8, 64, 64], strides = [1, 1, 1]} : vector<8x64x192xf32> to vector<8x64x64xf32>
    %8 = arith.truncf %7 : vector<8x64x64xf32> to vector<8x64x64xbf16>
    %9 = vector.extract_strided_slice %4 {offsets = [0, 0, 128], sizes = [8, 64, 64], strides = [1, 1, 1]} : vector<8x64x192xf32> to vector<8x64x64xf32>
    %10 = arith.truncf %9 : vector<8x64x64xf32> to vector<8x64x64xbf16>
    "tpu.trace_start"() <{level = 10 : i32, message = "btd,bsd->bts"}> : () -> ()
    %cst_4 = arith.constant dense<0.000000e+00> : vector<8x64x64xf32>
    %11 = tpu.matmul %6, %8, %cst_4 {dimension_numbers = #tpu.dot_dimension_numbers<[2], [2], [1], [1], [0, 0, 0, 1, 1, 1], [0], [0]>} : vector<8x64x64xbf16>, vector<8x64x64xbf16>, vector<8x64x64xf32> -> vector<8x64x64xf32>
    "tpu.trace_stop"() : () -> ()
    %12 = tpu.iota {dimensions = array<i32: 0>} : vector<64x64xi32>
    %13 = tpu.iota {dimensions = array<i32: 1>} : vector<64x64xi32>
    %14 = arith.cmpi sle, %13, %12 : vector<64x64xi32>
    %15 = vector.shape_cast %14 : vector<64x64xi1> to vector<1x64x64xi1>
    %cst_5 = arith.constant 0xFF800000 : f32
    %16 = vector.shape_cast %15 : vector<1x64x64xi1> to vector<1x64x64xi1>
    %17 = vector.broadcast %16 : vector<1x64x64xi1> to vector<8x64x64xi1>
    %18 = vector.broadcast %cst_5 : f32 to vector<8x64x64xf32>
    %19 = arith.select %17, %11, %18 : vector<8x64x64xi1>, vector<8x64x64xf32>
    %cst_6 = arith.constant dense<0xFF800000> : vector<8x64xf32>
    %20 = vector.multi_reduction <maximumf>, %19, %cst_6 [2] : vector<8x64x64xf32> to vector<8x64xf32>
    %21 = vector.shape_cast %20 : vector<8x64xf32> to vector<8x64x1xf32>
    %22 = vector.broadcast %21 : vector<8x64x1xf32> to vector<8x64x64xf32>
    %23 = arith.subf %19, %22 : vector<8x64x64xf32>
    %24 = math.exp %23 : vector<8x64x64xf32>
    %cst_7 = arith.constant dense<0.000000e+00> : vector<8x64xf32>
    %25 = vector.multi_reduction <add>, %24, %cst_7 [2] : vector<8x64x64xf32> to vector<8x64xf32>
    %26 = vector.shape_cast %25 : vector<8x64xf32> to vector<8x64x1xf32>
    %27 = tpu.reciprocal %26 {approx = true} : vector<8x64x1xf32> -> vector<8x64x1xf32>
    %28 = vector.broadcast %27 : vector<8x64x1xf32> to vector<8x64x64xf32>
    %29 = arith.mulf %24, %28 : vector<8x64x64xf32>
    %30 = arith.truncf %29 : vector<8x64x64xf32> to vector<8x64x64xbf16>
    "tpu.trace_start"() <{level = 10 : i32, message = "bts,bsd->btd"}> : () -> ()
    %cst_8 = arith.constant dense<0.000000e+00> : vector<8x64x64xf32>
    %31 = tpu.matmul %30, %10, %cst_8 {dimension_numbers = #tpu.dot_dimension_numbers<[2], [1], [1], [2], [0, 0, 0, 1, 1, 2], [0], [0]>} : vector<8x64x64xbf16>, vector<8x64x64xbf16>, vector<8x64x64xf32> -> vector<8x64x64xf32>
    "tpu.trace_stop"() : () -> ()
    %c0_9 = arith.constant 0 : index
    %c0_10 = arith.constant 0 : index
    %c0_11 = arith.constant 0 : index
    %32 = vector.load %arg3[%c0_9, %c0_10, %c0_11] : memref<8x64x64xf32, #tpu.memory_space<vmem>>, vector<8x64x64xf32>
    tpu.vector_store %arg3[%c0_9, %c0_10, %c0_11], %31 {strides = array<i32>} : memref<8x64x64xf32, #tpu.memory_space<vmem>>, vector<8x64x64xf32>,
    return
  }
  func.func @transform_0(%arg0: i32) -> (i32, i32, i32) {
    %c0_i32 = arith.constant 0 : i32
    %c0_i32_0 = arith.constant 0 : i32
    %c0_i32_1 = arith.constant 0 : i32
    return %arg0, %c0_i32, %c0_i32_0 : i32, i32, i32
  }
  func.func @transform_1(%arg0: i32) -> (i32, i32) {
    %c0_i32 = arith.constant 0 : i32
    %c0_i32_0 = arith.constant 0 : i32
    %c0_i32_1 = arith.constant 0 : i32
    return %c0_i32, %c0_i32_0 : i32, i32
  }
  func.func @transform_2(%arg0: i32) -> (i32, i32, i32) {
    %c0_i32 = arith.constant 0 : i32
    %c0_i32_0 = arith.constant 0 : i32
    %c0_i32_1 = arith.constant 0 : i32
    return %arg0, %c0_i32, %c0_i32_0 : i32, i32, i32
  }
}

</mosaic_0001>

<bundles_post_ra>
// kernel: tpu_custom_call.1
= control target key start
LH: loop header
LB: loop body
LE: loop exit
PB: predicated region body
PF: predicated region fallthrough
CT: control target
= control target key end

     0   :  { %7 = vsyncpa [#allocation3], 0  ;;  %s7055_s0 = inlined_call_operand.hbm [shape: bf16[8,64,384], index: 0, kind: input, shape index: {}]   ;;  %s7056_s1 = inlined_call_operand.vmem [shape: bf16[384,192], index: 1, kind: input, shape index: {}]   ;;  %s7057_s2 = inlined_call_operand.hbm [shape: f32[8,64,64], index: 2, kind: output, shape index: {}]  }
   0x1   :  { %8 = vsyncpa [#allocation4], 0  ;;  %s5198_s9 = smov [#allocation2]  }
   0x2   :  { %s14_s10 = sshll.u32 %s5198_s9, 4  ;;  %s15_s10 = int_to_ptr.vmem [resolvable:$true] %s14_s10 }
   0x3   :  { %s5162_s11 = scalar_lea.vmem %s15_s10, 12288  ;;  %p5167_p1 = scmp.lt.s32.totalorder %s15_s10, %s15_s10 }
   0x4   :  { %p5163_p0 = scmp.ne.s32.totalorder %s15_s10, %s5162_s11  ;;  %p5168_p2 = scmp.lt.s32.totalorder %s5162_s11, %s5162_s11 }
   0x6   :  { %p5169_p3 = por %p5168_p2, %p5167_p1 }
   0x8   :  { %p5170_p4 = pnand %p5169_p3, %p5163_p0 }
   0xa   :  { %5173 = shalt.err (!%p5170_p4)
}
   0xb   :  { %s5199_s12 = smov 192   ;;  %s5200_s13 = smov 12  }
   0xc   :  { %20 = dma.hbm_to_vmem [thread:$0]  %s7055_s0, 12288, %s15_s10, [#allocation3], %s5199_s12, %s5199_s12, %s5200_s13  }
   0xd   :  { %5194 = dma.done.wait [#allocation3], 12288  }
   0xe   :  { %5195 = vsyncadd [#allocation3], 4294955008  ;;  %v5201_v0 = vmov 0   ;;  %v4698_v1 = vld [vmem:[%s7056_s1 + $0x74] ss:$8 sps:$4 sm:$0xff]   ;;  %vm1737_vm0 = vcmask 523264  }
   0xf   :  { %1340 = vmatprep.mubr.bf16.mxu1 %v5201_v0  ;;  %v4700_v2 = vld [vmem:[%s7056_s1 + $0x174] ss:$8 sps:$4 sm:$0xff]   ;;  %955 = vmatprep.subr.bf16.mxu0 %v4698_v1  ;;  %v4702_v3 = vld [vmem:[%s7056_s1 + $0x70] ss:$8 sps:$4 sm:$0xff]   ;;  %v4704_v5 = vld [vmem:[%s7056_s1 + $0x64] ss:$8 sps:$4 sm:$0xff]  }
  0x10   :  { %v4703_v4 = vld [vmem:[%s7056_s1 + $0x170] ss:$8 sps:$4 sm:$0xff]   ;;  %1308 = vmatprep.subr.bf16.mxu1 %v4700_v2  ;;  %956 = vmatpush1.bf16.msra.mxu0 %v4702_v3  ;;  %v4706_v6 = vld [vmem:[%s7056_s1 + $0x164] ss:$8 sps:$4 sm:$0xff]   ;;  %v4708_v7 = vld [vmem:[%s7056_s1 + $0x60] ss:$8 sps:$4 sm:$0xff]  }
  0x11   :  { %1309 = vmatpush1.bf16.msra.mxu1 %v4703_v4  ;;  %957 = vmatprep.subr.bf16.mxu0 %v4704_v5  ;;  %v4709_v8 = vld [vmem:[%s7056_s1 + $0x160] ss:$8 sps:$4 sm:$0xff]   ;;  %v4710_v9 = vld [vmem:[%s7056_s1 + $0x54] ss:$8 sps:$4 sm:$0xff]   ;;  %v4714_v11 = vld [vmem:[%s7056_s1 + $0x50] ss:$8 sps:$4 sm:$0xff]  }
  0x12   :  { %1310 = vmatprep.subr.bf16.mxu1 %v4706_v6  ;;  %v4712_v10 = vld [vmem:[%s7056_s1 + $0x154] ss:$8 sps:$4 sm:$0xff]   ;;  %v4715_v12 = vld [vmem:[%s7056_s1 + $0x150] ss:$8 sps:$4 sm:$0xff]   ;;  %v4716_v13 = vld [vmem:[%s7056_s1 + $0x44] ss:$8 sps:$4 sm:$0xff]  }
  0x13   :  { %v4718_v14 = vld [vmem:[%s7056_s1 + $0x144] ss:$8 sps:$4 sm:$0xff]   ;;  %v4720_v15 = vld [vmem:[%s7056_s1 + $0x40] ss:$8 sps:$4 sm:$0xff]   ;;  %v4722_v17 = vld [vmem:[%s7056_s1 + $0x34] ss:$8 sps:$4 sm:$0xff]  }
  0x14   :  { %958 = vmatpush1.bf16.msra.mxu0 %v4708_v7  ;;  %v4721_v16 = vld [vmem:[%s7056_s1 + $0x140] ss:$8 sps:$4 sm:$0xff]   ;;  %v4724_v18 = vld [vmem:[%s7056_s1 + $0x134] ss:$8 sps:$4 sm:$0xff]   ;;  %v4726_v19 = vld [vmem:[%s7056_s1 + $0x30] ss:$8 sps:$4 sm:$0xff]  }
  0x15   :  { %1311 = vmatpush1.bf16.msra.mxu1 %v4709_v8  ;;  %959 = vmatprep.subr.bf16.mxu0 %v4710_v9  ;;  %v4727_v20 = vld [vmem:[%s7056_s1 + $0x130] ss:$8 sps:$4 sm:$0xff]   ;;  %v4728_v21 = vld [vmem:[%s7056_s1 + $0x24] ss:$8 sps:$4 sm:$0xff]   ;;  %v4732_v23 = vld [vmem:[%s7056_s1 + $0x20] ss:$8 sps:$4 sm:$0xff]  }
  0x16   :  { %1312 = vmatprep.subr.bf16.mxu1 %v4712_v10  ;;  %v4730_v22 = vld [vmem:[%s7056_s1 + $0x124] ss:$8 sps:$4 sm:$0xff]   ;;  %v4733_v24 = vld [vmem:[%s7056_s1 + $0x120] ss:$8 sps:$4 sm:$0xff]   ;;  %v4734_v25 = vld [vmem:[%s7056_s1 + $0x14] ss:$8 sps:$4 sm:$0xff]  }
  0x17   :  { %v4736_v26 = vld [vmem:[%s7056_s1 + $0x114] ss:$8 sps:$4 sm:$0xff]   ;;  %v4738_v27 = vld [vmem:[%s7056_s1 + $0x10] ss:$8 sps:$4 sm:$0xff]   ;;  %v4740_v29 = vld [vmem:[%s7056_s1 + $0x4] ss:$8 sps:$4 sm:$0xff]  }
  0x18   :  { %960 = vmatpush1.bf16.msra.mxu0 %v4714_v11  ;;  %v4739_v28 = vld [vmem:[%s7056_s1 + $0x110] ss:$8 sps:$4 sm:$0xff]   ;;  %v4742_v30 = vld [vmem:[%s7056_s1 + $0x104] ss:$8 sps:$4 sm:$0xff]   ;;  %v4744_v31 = vld [vmem:[%s7056_s1] ss:$8 sps:$4 sm:$0xff]  }
  0x19   :  { %1313 = vmatpush1.bf16.msra.mxu1 %v4715_v12  ;;  %961 = vmatprep.subr.bf16.mxu0 %v4716_v13  ;;  %v4745_v32 = vld [vmem:[%s7056_s1 + $0x100] ss:$8 sps:$4 sm:$0xff]   ;;  %v4746_v33 = vld [vmem:[%s7056_s1 + $0xf4] ss:$8 sps:$4 sm:$0xff]   ;;  %v4749_v35 = vld [vmem:[%s7056_s1 + $0xf0] ss:$8 sps:$4 sm:$0xff]  }
  0x1a   :  { %1314 = vmatprep.subr.bf16.mxu1 %v4718_v14  ;;  %v4748_v34 = vld [vmem:[#allocation2 + $0x8] ss:$12 sps:$4 sm:$0xff]   ;;  %v4750_v36 = vld [vmem:[%s7056_s1 + $0xe4] ss:$8 sps:$4 sm:$0xff]   ;;  %v4756_v41 = vld [vmem:[%s7056_s1 + $0xd0] ss:$8 sps:$4 sm:$0xff]  }
  0x1b   :  { %v4752_v37 = vld [vmem:[%s7056_s1 + $0xe0] ss:$8 sps:$4 sm:$0xff]   ;;  %v4753_v38 = vld [vmem:[%s7056_s1 + $0xd4] ss:$8 sps:$4 sm:$0xff]   ;;  %v4776_v39 = vld [vmem:[#allocation2 + $0x4] ss:$12 sps:$4 sm:$0xff]  }
  0x1c   :  { %962 = vmatpush1.bf16.msra.mxu0 %v4720_v15  ;;  %v4755_v40 = vld [vmem:[#allocation2 + $0x20] ss:$12 sps:$4 sm:$0xff]   ;;  %987 = vmatprep.mubr.bf16.mxu0 %v4776_v39  ;;  %v4760_v44 = vld [vmem:[%s7056_s1 + $0xb4] ss:$8 sps:$4 sm:$0xff]   ;;  %v4762_v45 = vld [vmem:[#allocation2 + $0x38] ss:$12 sps:$4 sm:$0xff]  }
  0x1d   :  { %1315 = vmatpush1.bf16.msra.mxu1 %v4721_v16  ;;  %963 = vmatprep.subr.bf16.mxu0 %v4722_v17  ;;  %v4757_v42 = vld [vmem:[%s7056_s1 + $0xc4] ss:$8 sps:$4 sm:$0xff]   ;;  %v4759_v43 = vld [vmem:[%s7056_s1 + $0xc0] ss:$8 sps:$4 sm:$0xff]   ;;  %v4763_v46 = vld [vmem:[%s7056_s1 + $0xb0] ss:$8 sps:$4 sm:$0xff]  }
  0x1e   :  { %1316 = vmatprep.subr.bf16.mxu1 %v4724_v18  ;;  %v4764_v47 = vld [vmem:[%s7056_s1 + $0xa4] ss:$8 sps:$4 sm:$0xff]   ;;  %v4766_v48 = vld [vmem:[%s7056_s1 + $0xa0] ss:$8 sps:$4 sm:$0xff]   ;;  %v4767_v49 = vld [vmem:[%s7056_s1 + $0x94] ss:$8 sps:$4 sm:$0xff]  }
  0x1f   :  { %v4769_v50 = vld [vmem:[#allocation2 + $0x50] ss:$12 sps:$4 sm:$0xff]   ;;  %v4771_v52 = vld [vmem:[%s7056_s1 + $0x84] ss:$8 sps:$4 sm:$0xff]   ;;  %v4773_v53 = vld [vmem:[%s7056_s1 + $0x80] ss:$8 sps:$4 sm:$0xff]  }
  0x20   :  { %964 = vmatpush1.bf16.msra.mxu0 %v4726_v19  ;;  %v4770_v51 = vld [vmem:[%s7056_s1 + $0x90] ss:$8 sps:$4 sm:$0xff]   ;;  %v4774_v54 = vld [vmem:[#allocation2] ss:$12 sps:$4 sm:$0xff]   ;;  %v4777_v55 = vld [vmem:[#allocation2 + $0x68] ss:$12 sps:$4 sm:$0xff]  }
  0x21   :  { %1317 = vmatpush1.bf16.msra.mxu1 %v4727_v20  ;;  %965 = vmatprep.subr.bf16.mxu0 %v4728_v21  ;;  %v4778_v56 = vld [vmem:[#allocation2 + $0x1c] ss:$12 sps:$4 sm:$0xff]   ;;  %v4780_v57 = vld [vmem:[#allocation2 + $0x18] ss:$12 sps:$4 sm:$0xff]   ;;  %v4781_v58 = vld [vmem:[#allocation2 + $0x80] ss:$12 sps:$4 sm:$0xff]  }
  0x22   :  { %1318 = vmatprep.subr.bf16.mxu1 %v4730_v22  ;;  %v4782_v59 = vld [vmem:[#allocation2 + $0x34] ss:$12 sps:$4 sm:$0xff]   ;;  %v4784_v60 = vld [vmem:[#allocation2 + $0x30] ss:$12 sps:$4 sm:$0xff]   ;;  %v4785_v61 = vld [vmem:[#allocation2 + $0x98] ss:$12 sps:$4 sm:$0xff]  }
  0x23   :  { %v4786_v62 = vld [vmem:[#allocation2 + $0x4c] ss:$12 sps:$4 sm:$0xff]   ;;  %v4788_v63 = vld [vmem:[#allocation2 + $0x48] ss:$12 sps:$4 sm:$0xff]   ;;  %v4789_v1 = vld [vmem:[#allocation2 + $0xb0] ss:$12 sps:$4 sm:$0xff]  }
  0x24   :  { %966 = vmatpush1.bf16.msra.mxu0 %v4732_v23  ;;  %v4790_v2 = vld [vmem:[#allocation2 + $0x64] ss:$12 sps:$4 sm:$0xff]   ;;  %v4792_v3 = vld [vmem:[#allocation2 + $0x60] ss:$12 sps:$4 sm:$0xff]   ;;  %v4793_v4 = vld [vmem:[#allocation2 + $0xc8] ss:$12 sps:$4 sm:$0xff]  }
  0x25   :  { %1319 = vmatpush1.bf16.msra.mxu1 %v4733_v24  ;;  %967 = vmatprep.subr.bf16.mxu0 %v4734_v25  ;;  %v4794_v5 = vld [vmem:[#allocation2 + $0x7c] ss:$12 sps:$4 sm:$0xff]   ;;  %v4796_v6 = vld [vmem:[#allocation2 + $0x78] ss:$12 sps:$4 sm:$0xff]   ;;  %v4797_v7 = vld [vmem:[#allocation2 + $0xe0] ss:$12 sps:$4 sm:$0xff]  }
  0x26   :  { %1320 = vmatprep.subr.bf16.mxu1 %v4736_v26  ;;  %v4798_v8 = vld [vmem:[#allocation2 + $0x94] ss:$12 sps:$4 sm:$0xff]   ;;  %v4800_v9 = vld [vmem:[#allocation2 + $0x90] ss:$12 sps:$4 sm:$0xff]   ;;  %v4801_v10 = vld [vmem:[#allocation2 + $0xf8] ss:$12 sps:$4 sm:$0xff]  }
  0x27   :  { %v4802_v11 = vld [vmem:[#allocation2 + $0xac] ss:$12 sps:$4 sm:$0xff]   ;;  %v4804_v12 = vld [vmem:[#allocation2 + $0xa8] ss:$12 sps:$4 sm:$0xff]   ;;  %v4805_v13 = vld [vmem:[#allocation2 + $0x110] ss:$12 sps:$4 sm:$0xff]  }
  0x28   :  { %968 = vmatpush1.bf16.msra.mxu0 %v4738_v27  ;;  %v4806_v14 = vld [vmem:[#allocation2 + $0xc4] ss:$12 sps:$4 sm:$0xff]   ;;  %v4808_v15 = vld [vmem:[#allocation2 + $0xc0] ss:$12 sps:$4 sm:$0xff]   ;;  %v4809_v16 = vld [vmem:[#allocation2 + $0x128] ss:$12 sps:$4 sm:$0xff]  }
  0x29   :  { %1321 = vmatpush1.bf16.msra.mxu1 %v4739_v28  ;;  %969 = vmatprep.subr.bf16.mxu0 %v4740_v29  ;;  %v4810_v17 = vld [vmem:[#allocation2 + $0xdc] ss:$12 sps:$4 sm:$0xff]   ;;  %v4812_v18 = vld [vmem:[#allocation2 + $0xd8] ss:$12 sps:$4 sm:$0xff]   ;;  %v4813_v19 = vld [vmem:[#allocation2 + $0x140] ss:$12 sps:$4 sm:$0xff]  }
  0x2a   :  { %1322 = vmatprep.subr.bf16.mxu1 %v4742_v30  ;;  %v4814_v20 = vld [vmem:[#allocation2 + $0xf4] ss:$12 sps:$4 sm:$0xff]   ;;  %v4816_v21 = vld [vmem:[#allocation2 + $0xf0] ss:$12 sps:$4 sm:$0xff]   ;;  %v4817_v22 = vld [vmem:[#allocation2 + $0x158] ss:$12 sps:$4 sm:$0xff]  }
  0x2b   :  { %v4818_v23 = vld [vmem:[#allocation2 + $0x10c] ss:$12 sps:$4 sm:$0xff]   ;;  %v4820_v24 = vld [vmem:[#allocation2 + $0x108] ss:$12 sps:$4 sm:$0xff]   ;;  %v4821_v25 = vld [vmem:[#allocation2 + $0x170] ss:$12 sps:$4 sm:$0xff]  }
  0x2c   :  { %970 = vmatpush1.bf16.msra.mxu0 %v4744_v31  ;;  %v4822_v26 = vld [vmem:[#allocation2 + $0x124] ss:$12 sps:$4 sm:$0xff]   ;;  %v4824_v27 = vld [vmem:[#allocation2 + $0x120] ss:$12 sps:$4 sm:$0xff]   ;;  %v4825_v28 = vld [vmem:[#allocation2 + $0x188] ss:$12 sps:$4 sm:$0xff]  }
  0x2d   :  { %1323 = vmatpush1.bf16.msra.mxu1 %v4745_v32  ;;  %971 = vmatprep.subr.bf16.mxu0 %v4746_v33  ;;  %v4826_v29 = vld [vmem:[#allocation2 + $0x13c] ss:$12 sps:$4 sm:$0xff]   ;;  %v4828_v30 = vld [vmem:[#allocation2 + $0x138] ss:$12 sps:$4 sm:$0xff]   ;;  %v4829_v31 = vld [vmem:[#allocation2 + $0x1a0] ss:$12 sps:$4 sm:$0xff]  }
  0x2e   :  { %v4830_v32 = vld [vmem:[#allocation2 + $0x154] ss:$12 sps:$4 sm:$0xff]   ;;  %v4832_v33 = vld [vmem:[#allocation2 + $0x150] ss:$12 sps:$4 sm:$0xff]   ;;  %s5202_s1 = smov 64   ;;  %s5203_s24 = smov [#allocation5]  }
  0x2f   :  { %v4840_v39 = vld [vmem:[#allocation2 + $0x180] ss:$12 sps:$4 sm:$0xff]   ;;  %s4054_s25 = sshll.u32 %s5203_s24, 4  ;;  %s4055_s25 = int_to_ptr.vmem [resolvable:$true] %s4054_s25 }
  0x30   :  { %1341 = vmatmul.mubr.bf16.vlgmr.msra.gmra.mxu1 %v4748_v34  ;;  %972 = vmatpush2.bf16.msra.mxu0 %v4749_v35  ;;  %v4833_v34 = vld [vmem:[#allocation2 + $0x1b8] ss:$12 sps:$4 sm:$0xff]   ;;  %s5174_s26 = scalar_lea.vmem %s4055_s25, 8192  ;;  %p5179_p6 = scmp.lt.s32.totalorder %s4055_s25, %s4055_s25 }
  0x31   :  { %1350 = vmatprep.mubr.bf16.mxu1 %v5201_v0  ;;  %973 = vmatprep.subr.bf16.mxu0 %v4750_v36  ;;  %v4834_v35 = vld [vmem:[#allocation2 + $0x16c] ss:$12 sps:$4 sm:$0xff]   ;;  %v4836_v36 = vld [vmem:[#allocation2 + $0x168] ss:$12 sps:$4 sm:$0xff]   ;;  %p5175_p5 = scmp.ne.s32.totalorder %s4055_s25, %s5174_s26  ;;  %p5180_p7 = scmp.lt.s32.totalorder %s5174_s26, %s5174_s26 }
  0x33   :  { %p5181_p8 = por %p5180_p7, %p5179_p6 }
  0x34   :  { %974 = vmatpush2.bf16.msra.mxu0 %v4752_v37  ;;  %v4837_v37 = vld [vmem:[#allocation2 + $0x1d0] ss:$12 sps:$4 sm:$0xff]  }
  0x35   :  { %975 = vmatprep.subr.bf16.mxu0 %v4753_v38  ;;  %v4838_v38 = vld [vmem:[#allocation2 + $0x184] ss:$12 sps:$4 sm:$0xff]   ;;  %p5182_p9 = pnand %p5181_p8, %p5175_p5 }
  0x38   :  { %1351 = vmatmul.mubr.bf16.gmra.mxu1 %v4755_v40  ;;  %976 = vmatpush2.bf16.msra.mxu0 %v4756_v41  ;;  %v4841_v40 = vld [vmem:[#allocation2 + $0x1e8] ss:$12 sps:$4 sm:$0xff]  }
  0x39   :  { %1360 = vmatprep.mubr.bf16.mxu1 %v5201_v0  ;;  %977 = vmatprep.subr.bf16.mxu0 %v4757_v42  ;;  %v4842_v41 = vld [vmem:[#allocation2 + $0x19c] ss:$12 sps:$4 sm:$0xff]   ;;  %v4844_v42 = vld [vmem:[#allocation2 + $0x198] ss:$12 sps:$4 sm:$0xff]  }
  0x3c   :  { %978 = vmatpush2.bf16.msra.mxu0 %v4759_v43  ;;  %v4845_v43 = vld [vmem:[#allocation2 + $0x200] ss:$12 sps:$4 sm:$0xff]  }
  0x3d   :  { %979 = vmatprep.subr.bf16.mxu0 %v4760_v44  ;;  %v4846_v44 = vld [vmem:[#allocation2 + $0x1b4] ss:$12 sps:$4 sm:$0xff]  }
  0x40   :  { %1361 = vmatmul.mubr.bf16.gmra.mxu1 %v4762_v45  ;;  %980 = vmatpush2.bf16.msra.mxu0 %v4763_v46  ;;  %v4848_v45 = vld [vmem:[#allocation2 + $0x1b0] ss:$12 sps:$4 sm:$0xff]   ;;  %v4849_v46 = vld [vmem:[#allocation2 + $0x218] ss:$12 sps:$4 sm:$0xff]  }
  0x41   :  { %1370 = vmatprep.mubr.bf16.mxu1 %v5201_v0  ;;  %981 = vmatprep.subr.bf16.mxu0 %v4764_v47  ;;  %v4850_v47 = vld [vmem:[#allocation2 + $0x1cc] ss:$12 sps:$4 sm:$0xff]  }
  0x44   :  { %982 = vmatpush2.bf16.msra.mxu0 %v4766_v48  ;;  %v4852_v48 = vld [vmem:[#allocation2 + $0x1c8] ss:$12 sps:$4 sm:$0xff]  }
  0x45   :  { %983 = vmatprep.subr.bf16.mxu0 %v4767_v49  ;;  %v4853_v49 = vld [vmem:[#allocation2 + $0x230] ss:$12 sps:$4 sm:$0xff]  }
  0x48   :  { %1371 = vmatmul.mubr.bf16.gmra.mxu1 %v4769_v50  ;;  %984 = vmatpush2.bf16.msra.mxu0 %v4770_v51  ;;  %v4854_v50 = vld [vmem:[#allocation2 + $0x1e4] ss:$12 sps:$4 sm:$0xff]   ;;  %v4856_v51 = vld [vmem:[#allocation2 + $0x1e0] ss:$12 sps:$4 sm:$0xff]  }
  0x49   :  { %1380 = vmatprep.mubr.bf16.mxu1 %v5201_v0  ;;  %985 = vmatprep.subr.bf16.mxu0 %v4771_v52  ;;  %v4857_v52 = vld [vmem:[#allocation2 + $0x248] ss:$12 sps:$4 sm:$0xff]  }
  0x4c   :  { %986 = vmatpush2.bf16.msra.mxu0 %v4773_v53  ;;  %v4858_v53 = vld [vmem:[#allocation2 + $0x1fc] ss:$12 sps:$4 sm:$0xff]  }
  0x4f   :  { %988 = vmatmul.mubr.bf16.vlgmr.msra.gmra.mxu0 %v4774_v54 }
  0x50   :  { %1381 = vmatmul.mubr.bf16.gmra.mxu1 %v4777_v55  ;;  %997 = vmatprep.mubr.bf16.mxu0 %v4778_v56  ;;  %v4860_v56 = vld [vmem:[#allocation2 + $0x1f8] ss:$12 sps:$4 sm:$0xff]  }
  0x51   :  { %1390 = vmatprep.mubr.bf16.mxu1 %v5201_v0 }
  0x57   :  { %998 = vmatmul.mubr.bf16.gmra.mxu0 %v4780_v57  ;;  %v4861_v57 = vld [vmem:[#allocation2 + $0x260] ss:$12 sps:$4 sm:$0xff]  }
  0x58   :  { %1391 = vmatmul.mubr.bf16.gmra.mxu1 %v4781_v58  ;;  %1007 = vmatprep.mubr.bf16.mxu0 %v4782_v59  ;;  %v4862_v59 = vld [vmem:[#allocation2 + $0x214] ss:$12 sps:$4 sm:$0xff]  }
  0x59   :  { %1400 = vmatprep.mubr.bf16.mxu1 %v5201_v0 }
  0x5f   :  { %1008 = vmatmul.mubr.bf16.gmra.mxu0 %v4784_v60 }
  0x60   :  { %1401 = vmatmul.mubr.bf16.gmra.mxu1 %v4785_v61  ;;  %1017 = vmatprep.mubr.bf16.mxu0 %v4786_v62 }
  0x61   :  { %1410 = vmatprep.mubr.bf16.mxu1 %v5201_v0 }
  0x67   :  { %1018 = vmatmul.mubr.bf16.gmra.mxu0 %v4788_v63  ;;  %v4864_v63 = vld [vmem:[#allocation2 + $0x210] ss:$12 sps:$4 sm:$0xff]  }
  0x68   :  { %1411 = vmatmul.mubr.bf16.gmra.mxu1 %v4789_v1  ;;  %1027 = vmatprep.mubr.bf16.mxu0 %v4790_v2  ;;  %v4865_v1 = vld [vmem:[#allocation2 + $0x278] ss:$12 sps:$4 sm:$0xff]  }
  0x69   :  { %1420 = vmatprep.mubr.bf16.mxu1 %v5201_v0 }
  0x6f   :  { %1028 = vmatmul.mubr.bf16.gmra.mxu0 %v4792_v3  ;;  %v4866_v3 = vld [vmem:[#allocation2 + $0x22c] ss:$12 sps:$4 sm:$0xff]  }
  0x70   :  { %1421 = vmatmul.mubr.bf16.gmra.mxu1 %v4793_v4  ;;  %1037 = vmatprep.mubr.bf16.mxu0 %v4794_v5 }
  0x71   :  { %1430 = vmatprep.mubr.bf16.mxu1 %v5201_v0 }
  0x77   :  { %1038 = vmatmul.mubr.bf16.gmra.mxu0 %v4796_v6 }
  0x78   :  { %1431 = vmatmul.mubr.bf16.gmra.mxu1 %v4797_v7  ;;  %1047 = vmatprep.mubr.bf16.mxu0 %v4798_v8  ;;  %v4868_v7 = vld [vmem:[#allocation2 + $0x228] ss:$12 sps:$4 sm:$0xff]   ;;  %v4869_v8 = vld [vmem:[#allocation2 + $0x290] ss:$12 sps:$4 sm:$0xff]  }
  0x79   :  { %1440 = vmatprep.mubr.bf16.mxu1 %v5201_v0 }
  0x7f   :  { %1048 = vmatmul.mubr.bf16.gmra.mxu0 %v4800_v9 }
  0x80   :  { %1441 = vmatmul.mubr.bf16.gmra.mxu1 %v4801_v10  ;;  %1057 = vmatprep.mubr.bf16.mxu0 %v4802_v11  ;;  %v4870_v10 = vld [vmem:[#allocation2 + $0x244] ss:$12 sps:$4 sm:$0xff]  }
  0x81   :  { %1450 = vmatprep.mubr.bf16.mxu1 %v5201_v0 }
  0x87   :  { %1058 = vmatmul.mubr.bf16.gmra.mxu0 %v4804_v12 }
  0x88   :  { %1451 = vmatmul.mubr.bf16.gmra.mxu1 %v4805_v13  ;;  %1067 = vmatprep.mubr.bf16.mxu0 %v4806_v14  ;;  %v4872_v14 = vld [vmem:[#allocation2 + $0x240] ss:$12 sps:$4 sm:$0xff]  }
  0x89   :  { %1460 = vmatprep.mubr.bf16.mxu1 %v5201_v0 }
  0x8f   :  { %1068 = vmatmul.mubr.bf16.gmra.mxu0 %v4808_v15  ;;  %v4873_v15 = vld [vmem:[#allocation2 + $0x2a8] ss:$12 sps:$4 sm:$0xff]  }
  0x90   :  { %1461 = vmatmul.mubr.bf16.gmra.mxu1 %v4809_v16  ;;  %1077 = vmatprep.mubr.bf16.mxu0 %v4810_v17  ;;  %v4874_v17 = vld [vmem:[#allocation2 + $0x25c] ss:$12 sps:$4 sm:$0xff]  }
  0x91   :  { %1470 = vmatprep.mubr.bf16.mxu1 %v5201_v0 }
  0x97   :  { %1078 = vmatmul.mubr.bf16.gmra.mxu0 %v4812_v18 }
  0x98   :  { %1471 = vmatmul.mubr.bf16.gmra.mxu1 %v4813_v19  ;;  %1087 = vmatprep.mubr.bf16.mxu0 %v4814_v20 }
  0x99   :  { %1480 = vmatprep.mubr.bf16.mxu1 %v5201_v0 }
  0x9f   :  { %1088 = vmatmul.mubr.bf16.gmra.mxu0 %v4816_v21 }
  0xa0   :  { %1481 = vmatmul.mubr.bf16.gmra.mxu1 %v4817_v22  ;;  %1097 = vmatprep.mubr.bf16.mxu0 %v4818_v23 }
  0xa1   :  { %1490 = vmatprep.mubr.bf16.mxu1 %v5201_v0 }
  0xa7   :  { %1098 = vmatmul.mubr.bf16.gmra.mxu0 %v4820_v24 }
  0xa8   :  { %1491 = vmatmul.mubr.bf16.gmra.mxu1 %v4821_v25  ;;  %1107 = vmatprep.mubr.bf16.mxu0 %v4822_v26  ;;  %v4876_v25 = vld [vmem:[#allocation2 + $0x258] ss:$12 sps:$4 sm:$0xff]   ;;  %v4877_v26 = vld [vmem:[#allocation2 + $0x2c0] ss:$12 sps:$4 sm:$0xff]  }
  0xa9   :  { %1500 = vmatprep.mubr.bf16.mxu1 %v5201_v0 }
  0xaf   :  { %1108 = vmatmul.mubr.bf16.gmra.mxu0 %v4824_v27 }
  0xb0   :  { %1501 = vmatmul.mubr.bf16.gmra.mxu1 %v4825_v28  ;;  %1117 = vmatprep.mubr.bf16.mxu0 %v4826_v29  ;;  %v4878_v28 = vld [vmem:[#allocation2 + $0x274] ss:$12 sps:$4 sm:$0xff]  }
  0xb1   :  { %1510 = vmatprep.mubr.bf16.mxu1 %v5201_v0 }
  0xb7   :  { %1118 = vmatmul.mubr.bf16.gmra.mxu0 %v4828_v30 }
  0xb8   :  { %1511 = vmatmul.mubr.bf16.gmra.mxu1 %v4829_v31  ;;  %1127 = vmatprep.mubr.bf16.mxu0 %v4830_v32 }
  0xb9   :  { %1520 = vmatprep.mubr.bf16.mxu1 %v5201_v0 }
  0xbf   :  { %1128 = vmatmul.mubr.bf16.gmra.mxu0 %v4832_v33 }
  0xc0   :  { %1521 = vmatmul.mubr.bf16.gmra.mxu1 %v4833_v34  ;;  %1137 = vmatprep.mubr.bf16.mxu0 %v4834_v35 }
  0xc1   :  { %1530 = vmatprep.mubr.bf16.mxu1 %v5201_v0 }
  0xc7   :  { %1138 = vmatmul.mubr.bf16.gmra.mxu0 %v4836_v36 }
  0xc8   :  { %1531 = vmatmul.mubr.bf16.gmra.mxu1 %v4837_v37  ;;  %1147 = vmatprep.mubr.bf16.mxu0 %v4838_v38 }
  0xc9   :  { %1540 = vmatprep.mubr.bf16.mxu1 %v5201_v0 }
  0xcf   :  { %1148 = vmatmul.mubr.bf16.gmra.mxu0 %v4840_v39  ;;  %v4880_v39 = vld [vmem:[#allocation2 + $0x270] ss:$12 sps:$4 sm:$0xff]  }
  0xd0   :  { %1541 = vmatmul.mubr.bf16.gmra.mxu1 %v4841_v40  ;;  %1157 = vmatprep.mubr.bf16.mxu0 %v4842_v41  ;;  %v4881_v40 = vld [vmem:[#allocation2 + $0x2d8] ss:$12 sps:$4 sm:$0xff]  }
  0xd1   :  { %1550 = vmatprep.mubr.bf16.mxu1 %v5201_v0 }
  0xd7   :  { %1158 = vmatmul.mubr.bf16.gmra.mxu0 %v4844_v42  ;;  %v4882_v42 = vld [vmem:[#allocation2 + $0x28c] ss:$12 sps:$4 sm:$0xff]  }
  0xd8   :  { %1551 = vmatmul.mubr.bf16.gmra.mxu1 %v4845_v43  ;;  %1167 = vmatprep.mubr.bf16.mxu0 %v4846_v44 }
  0xd9   :  { %1560 = vmatprep.mubr.bf16.mxu1 %v5201_v0 }
  0xdf   :  { %1168 = vmatmul.mubr.bf16.gmra.mxu0 %v4848_v45 }
  0xe0   :  { %1561 = vmatmul.mubr.bf16.gmra.mxu1 %v4849_v46  ;;  %1177 = vmatprep.mubr.bf16.mxu0 %v4850_v47 }
  0xe1   :  { %1570 = vmatprep.mubr.bf16.mxu1 %v5201_v0 }
  0xe7   :  { %1178 = vmatmul.mubr.bf16.gmra.mxu0 %v4852_v48 }
  0xe8   :  { %1571 = vmatmul.mubr.bf16.gmra.mxu1 %v4853_v49  ;;  %1187 = vmatprep.mubr.bf16.mxu0 %v4854_v50 }
  0xe9   :  { %1580 = vmatprep.mubr.bf16.mxu1 %v5201_v0 }
  0xef   :  { %1188 = vmatmul.mubr.bf16.gmra.mxu0 %v4856_v51 }
  0xf0   :  { %1581 = vmatmul.mubr.bf16.gmra.mxu1 %v4857_v52  ;;  %v5393_v54 = vpop.f32.mrf.mxu1  ;;  %1197 = vmatprep.mubr.bf16.mxu0 %v4858_v53 }
  0xf1   :  { %1590 = vmatprep.mubr.bf16.mxu1 %v5201_v0 }
  0xf2   :  { %v1344_v55 = vpop.f32.mrf.mxu1 }
  0xf4   :  { %v5396_v58 = vpop.f32.mrf.mxu1 }
  0xf6   :  { %v1348_v60 = vpop.f32.mrf.mxu1 }
  0xf7   :  { %1198 = vmatmul.mubr.bf16.gmra.mxu0 %v4860_v56  ;;  %v4885_v56 = vld [vmem:[#allocation2 + $0x2f0] ss:$12 sps:$4 sm:$0xff]  }
  0xf8   :  { %1591 = vmatmul.mubr.bf16.gmra.mxu1 %v4861_v57  ;;  %v5398_v61 = vpop.f32.mrf.mxu1  ;;  %1207 = vmatprep.mubr.bf16.mxu0 %v4862_v59 }
  0xf9   :  { %1600 = vmatprep.mubr.bf16.mxu1 %v5201_v0 }
  0xfa   :  { %v1354_v62 = vpop.f32.mrf.mxu1 }
  0xfc   :  { %v5401_v2 = vpop.f32.mrf.mxu1 }
  0xfe   :  { %v1358_v4 = vpop.f32.mrf.mxu1 }
  0xff   :  { %1208 = vmatmul.mubr.bf16.gmra.mxu0 %v4864_v63 }
 0x100   :  { %1601 = vmatmul.mubr.bf16.gmra.mxu1 %v4865_v1  ;;  %v5403_v5 = vpop.f32.mrf.mxu1  ;;  %1217 = vmatprep.mubr.bf16.mxu0 %v4866_v3 }
 0x101   :  { %1610 = vmatprep.mubr.bf16.mxu1 %v5201_v0 }
 0x102   :  { %v1364_v6 = vpop.f32.mrf.mxu1 }
 0x104   :  { %v5406_v9 = vpop.f32.mrf.mxu1 }
 0x106   :  { %v5408_v11 = vpop.f32.mrf.mxu1 }
 0x107   :  { %1218 = vmatmul.mubr.bf16.gmra.mxu0 %v4868_v7 }
 0x108   :  { %1611 = vmatmul.mubr.bf16.gmra.mxu1 %v4869_v8  ;;  %v5410_v12 = vpop.f32.mrf.mxu1  ;;  %1227 = vmatprep.mubr.bf16.mxu0 %v4870_v10 }
 0x109   :  { %1620 = vmatprep.mubr.bf16.mxu1 %v5201_v0 }
 0x10a   :  { %v5413_v13 = vpop.f32.mrf.mxu1 }
 0x10c   :  { %v5415_v16 = vpop.f32.mrf.mxu1 }
 0x10e   :  { %v5417_v18 = vpop.f32.mrf.mxu1 }
 0x10f   :  { %v989_v19 = vpop.f32.mrf.mxu0  ;;  %1228 = vmatmul.mubr.bf16.gmra.mxu0 %v4872_v14 }
 0x110   :  { %1621 = vmatmul.mubr.bf16.gmra.mxu1 %v4873_v15  ;;  %v5419_v20 = vpop.f32.mrf.mxu1  ;;  %1237 = vmatprep.mubr.bf16.mxu0 %v4874_v17  ;;  %v1343_v59 = vadd.f32 %v5393_v54, %v989_v19  ;;  %v4891_v19 = vld [vmem:[#allocation2 + $0x2bc] ss:$12 sps:$4 sm:$0xff]  }
 0x111   :  { %1630 = vmatprep.mubr.bf16.mxu1 %v5201_v0  ;;  %v991_v21 = vpop.f32.mrf.mxu0 }
 0x112   :  { %v5422_v22 = vpop.f32.mrf.mxu1  ;;  %v1345_v23 = vadd.f32 %v1344_v55, %v991_v21  ;;  %v4884_v55 = vld [vmem:[#allocation2 + $0x288] ss:$12 sps:$4 sm:$0xff]  }
 0x113   :  { %v993_v24 = vpop.f32.mrf.mxu0 }
 0x114   :  { %v5424_v27 = vpop.f32.mrf.mxu1  ;;  %v1347_v51 = vadd.f32 %v5396_v58, %v993_v24 }
 0x115   :  { %v995_v29 = vpop.f32.mrf.mxu0 }
 0x116   :  { %v5426_v30 = vpop.f32.mrf.mxu1  ;;  %v1349_v31 = vadd.f32 %v1348_v60, %v995_v29  ;;  %v5458_v3 = vpack.c.bf16 %v1347_v51, %v1343_v59  ;;  %v4892_v51 = vld [vmem:[#allocation2 + $0x2d0] ss:$12 sps:$4 sm:$0xff]  }
 0x117   :  { %7095 = vst [vmem:[#allocation8_spill] sm:$0xff] %v5426_v30  ;;  %v5428_v32 = vpop.f32.mrf.mxu0  ;;  %1238 = vmatmul.mubr.bf16.gmra.mxu0 %v4876_v25 }
 0x118   :  { %1631 = vmatmul.mubr.bf16.gmra.mxu1 %v4877_v26  ;;  %v5430_v33 = vpop.f32.mrf.mxu1  ;;  %v5432_v34 = vpack.c.bf16 %v1349_v31, %v1345_v23  ;;  %1247 = vmatprep.mubr.bf16.mxu0 %v4878_v28 }
 0x119   :  { %1640 = vmatprep.mubr.bf16.mxu1 %v5201_v0  ;;  %v1001_v35 = vpop.f32.mrf.mxu0 }
 0x11a   :  { %7096 = vst [vmem:[#allocation9_spill] sm:$0xff] %v5432_v34  ;;  %v5435_v36 = vpop.f32.mrf.mxu1  ;;  %v1355_v37 = vadd.f32 %v1354_v62, %v1001_v35 }
 0x11b   :  { %v5437_v38 = vpop.f32.mrf.mxu0 }
 0x11c   :  { %v5439_v41 = vpop.f32.mrf.mxu1 }
 0x11d   :  { %v1005_v43 = vpop.f32.mrf.mxu0 }
 0x11e   :  { %v5441_v44 = vpop.f32.mrf.mxu1  ;;  %v1359_v45 = vadd.f32 %v1358_v4, %v1005_v43 }
 0x11f   :  { %7097 = vst [vmem:[#allocation10_spill] sm:$0xff] %v5441_v44  ;;  %v1009_v46 = vpop.f32.mrf.mxu0  ;;  %1248 = vmatmul.mubr.bf16.gmra.mxu0 %v4880_v39 }
 0x120   :  { %1641 = vmatmul.mubr.bf16.gmra.mxu1 %v4881_v40  ;;  %v5443_v47 = vpop.f32.mrf.mxu1  ;;  %v5445_v48 = vpack.c.bf16 %v1359_v45, %v1355_v37  ;;  %1257 = vmatprep.mubr.bf16.mxu0 %v4882_v42  ;;  %v1363_v60 = vadd.f32 %v5403_v5, %v1009_v46  ;;  %v4894_v37 = vld [vmem:[#allocation2 + $0x2d4] ss:$12 sps:$4 sm:$0xff]  }
 0x121   :  { %1650 = vmatprep.mubr.bf16.mxu1 %v5201_v0  ;;  %v1011_v49 = vpop.f32.mrf.mxu0  ;;  %v4888_v0 = vld [vmem:[#allocation2 + $0x2a4] ss:$12 sps:$4 sm:$0xff]  }
 0x122   :  { %7098 = vst [vmem:[#allocation11_spill] sm:$0xff] %v5445_v48  ;;  %v5448_v50 = vpop.f32.mrf.mxu1  ;;  %v1365_v52 = vadd.f32 %v1364_v6, %v1011_v49 }
 0x123   :  { %v1013_v53 = vpop.f32.mrf.mxu0 }
 0x124   :  { %v5451_v57 = vpop.f32.mrf.mxu1  ;;  %v1367_v62 = vadd.f32 %v5406_v9, %v1013_v53  ;;  %v4897_v53 = vld [vmem:[#allocation2 + $0x2ec] ss:$12 sps:$4 sm:$0xff]  }
 0x125   :  { %v1015_v63 = vpop.f32.mrf.mxu0 }
 0x126   :  { %v5456_v1 = vpop.f32.mrf.mxu1  ;;  %v1369_v58 = vadd.f32 %v5408_v11, %v1015_v63  ;;  %v5461_v4 = vpack.c.bf16 %v1367_v62, %v1363_v60  ;;  %v4886_v11 = vld [vmem:[#allocation2 + $0x2a0] ss:$12 sps:$4 sm:$0xff]  }
 0x127   :  { %7099 = vst [vmem:[#allocation12_spill] sm:$0xff] %v5456_v1  ;;  %v1019_v6 = vpop.f32.mrf.mxu0  ;;  %1258 = vmatmul.mubr.bf16.gmra.mxu0 %v4884_v55 }
 0x128   :  { %1651 = vmatmul.mubr.bf16.gmra.mxu1 %v4885_v56  ;;  %v5463_v7 = vpop.f32.mrf.mxu1  ;;  %v5465_v54 = vpack.c.bf16 %v1369_v58, %v1365_v52  ;;  %1733 = vrot.lane.b32.xlu1 %v5461_v4, %s5202_s1  ;;  %v1373_v15 = vadd.f32 %v5410_v12, %v1019_v6  ;;  %v4895_v6 = vld [vmem:[#allocation2 + $0x2e8] ss:$12 sps:$4 sm:$0xff]  }
 0x129   :  { %4410 = vmatprep.mubr.msk.bf16.mxu1 %vm1737_vm0, %v5458_v3  ;;  %v1021_v5 = vpop.f32.mrf.mxu0  ;;  %1267 = vmatprep.mubr.bf16.mxu0 %v4888_v0 }
 0x12a   :  { %7100 = vst [vmem:[#allocation13_spill] sm:$0xff] %v5465_v54  ;;  %v5471_v8 = vpop.f32.mrf.mxu1  ;;  %v1375_v9 = vadd.f32 %v5413_v13, %v1021_v5 }
 0x12b   :  { %v1023_v10 = vpop.f32.mrf.mxu0 }
 0x12c   :  { %v5474_v14 = vpop.f32.mrf.mxu1  ;;  %v1377_v17 = vadd.f32 %v5415_v16, %v1023_v10 }
 0x12d   :  { %v1025_v21 = vpop.f32.mrf.mxu0 }
 0x12e   :  { %v5478_v23 = vpop.f32.mrf.mxu1  ;;  %v1379_v24 = vadd.f32 %v5417_v18, %v1025_v21  ;;  %v5481_v25 = vpack.c.bf16 %v1377_v17, %v1373_v15  ;;  %v4889_v18 = vld [vmem:[#allocation2 + $0x2b8] ss:$12 sps:$4 sm:$0xff]  }
 0x12f   :  { %7101 = vst [vmem:[#allocation14_spill] sm:$0xff] %v5478_v23  ;;  %v1029_v26 = vpop.f32.mrf.mxu0  ;;  %1268 = vmatmul.mubr.bf16.gmra.mxu0 %v4886_v11 }
 0x130   :  { %v5483_v28 = vpop.f32.mrf.mxu1  ;;  %v5485_v13 = vpack.c.bf16 %v1379_v24, %v1375_v9  ;;  %1735 = vrot.lane.b32.xlu0 %v5481_v25, %s5202_s1  ;;  %1277 = vmatprep.mubr.bf16.mxu0 %v4891_v19  ;;  %v1383_v9 = vadd.f32 %v5419_v20, %v1029_v26 }
 0x131   :  { %v1031_v12 = vpop.f32.mrf.mxu0 }
 0x132   :  { %v5489_v16 = vpop.f32.mrf.mxu1  ;;  %v5492_v29 = vadd.f32 %v5422_v22, %v1031_v12 }
 0x133   :  { %v1033_v31 = vpop.f32.mrf.mxu0 }
 0x134   :  { %7102 = vst [vmem:[#allocation15_spill] sm:$0xff] %v5492_v29  ;;  %v5494_v35 = vpop.f32.mrf.mxu1  ;;  %v1387_v0 = vadd.f32 %v5424_v27, %v1033_v31 }
 0x135   :  { %v5496_v39 = vpop.f32.mrf.mxu0 }
 0x136   :  { %7103 = vst [vmem:[#allocation16_spill] sm:$0xff] %v5496_v39  ;;  %v5498_v40 = vpop.f32.mrf.mxu1  ;;  %v1665_v19 = vpack.c.bf16 %v1387_v0, %v1383_v9 }
 0x137   :  { %7104 = vst [vmem:[#allocation17_spill] sm:$0xff] %v5498_v40  ;;  %v1039_v42 = vpop.f32.mrf.mxu0  ;;  %1278 = vmatmul.mubr.bf16.gmra.mxu0 %v4889_v18 }
 0x138   :  { %v5500_v43 = vpop.f32.mrf.mxu1  ;;  %1287 = vmatprep.mubr.bf16.mxu0 %v4894_v37  ;;  %v1393_v12 = vadd.f32 %v5430_v33, %v1039_v42 }
 0x139   :  { %v1041_v45 = vpop.f32.mrf.mxu0 }
 0x13a   :  { %v5502_v46 = vpop.f32.mrf.mxu1  ;;  %v5505_v22 = vadd.f32 %v5435_v36, %v1041_v45  ;;  %v1357_v45 = vadd.f32 %v5401_v2, %v5437_v38 }
 0x13b   :  { %v1043_v49 = vpop.f32.mrf.mxu0 }
 0x13c   :  { %7105 = vst [vmem:[#allocation18_spill] sm:$0xff] %v5505_v22  ;;  %v5507_v52 = vpop.f32.mrf.mxu1  ;;  %v1397_v27 = vadd.f32 %v5439_v41, %v1043_v49 }
 0x13d   :  { %v5509_v55 = vpop.f32.mrf.mxu0 }
 0x13e   :  { %7106 = vst [vmem:[#allocation19_spill] sm:$0xff] %v5509_v55  ;;  %v5511_v56 = vpop.f32.mrf.mxu1 }
 0x13f   :  { %7107 = vst [vmem:[#allocation20_spill] sm:$0xff] %v5511_v56  ;;  %v1049_v59 = vpop.f32.mrf.mxu0  ;;  %1288 = vmatmul.mubr.bf16.gmra.mxu0 %v4892_v51 }
 0x140   :  { %v5513_v60 = vpop.f32.mrf.mxu1  ;;  %1297 = vmatprep.mubr.bf16.mxu0 %v4897_v53  ;;  %v1403_v10 = vadd.f32 %v5443_v47, %v1049_v59 }
 0x141   :  { %v1051_v62 = vpop.f32.mrf.mxu0 }
 0x142   :  { %v1444_v63 = vpop.f32.mrf.mxu1  ;;  %v5517_v36 = vadd.f32 %v5448_v50, %v1051_v62 }
 0x143   :  { %v1053_v58 = vpop.f32.mrf.mxu0 }
 0x144   :  { %7108 = vst [vmem:[#allocation21_spill] sm:$0xff] %v5517_v36  ;;  %v5519_v5 = vpop.f32.mrf.mxu1  ;;  %v1407_v11 = vadd.f32 %v5451_v57, %v1053_v58  ;;  %v5535_v57 = vpack.c.bf16 %v1397_v27, %v1393_v12 }
 0x145   :  { %v5524_v15 = vpop.f32.mrf.mxu0 }
 0x146   :  { %7109 = vst [vmem:[#allocation22_spill] sm:$0xff] %v5524_v15  ;;  %v5526_v17 = vpop.f32.mrf.mxu1  ;;  %v5529_v21 = vpack.c.bf16 %v1407_v11, %v1403_v10 }
 0x147   :  { %7110 = vst [vmem:[#allocation23_spill] sm:$0xff] %v5526_v17  ;;  %v1059_v50 = vpop.f32.mrf.mxu0  ;;  %1298 = vmatmul.mubr.bf16.gmra.mxu0 %v4895_v6 }
 0x148   :  { %v1452_v24 = vpop.f32.mrf.mxu1  ;;  %4426 = vmatprep.mubr.msk.bf16.mxu0 %vm1737_vm0, %v1665_v19  ;;  %1835 = vrot.lane.b32.xlu1 %v5529_v21, %s5202_s1  ;;  %v1413_v18 = vadd.f32 %v5463_v7, %v1059_v50  ;;  %v1353_v7 = vadd.f32 %v5398_v61, %v5428_v32 }
 0x149   :  { %v1061_v20 = vpop.f32.mrf.mxu0 }
 0x14a   :  { %v1454_v47 = vpop.f32.mrf.mxu1  ;;  %v5538_v26 = vadd.f32 %v5471_v8, %v1061_v20  ;;  %v5559_v59 = vpack.c.bf16 %v1357_v45, %v1353_v7 }
 0x14b   :  { %v1063_v41 = vpop.f32.mrf.mxu0 }
 0x14c   :  { %7111 = vst [vmem:[#allocation24_spill] sm:$0xff] %v5538_v26  ;;  %v1456_v31 = vpop.f32.mrf.mxu1  ;;  %v1417_v37 = vadd.f32 %v5474_v14, %v1063_v41  ;;  %1833 = vrot.lane.b32.xlu1 %v5535_v57, %s5202_s1 }
 0x14d   :  { %v5544_v33 = vpop.f32.mrf.mxu0 }
 0x14e   :  { %7112 = vst [vmem:[#allocation25_spill] sm:$0xff] %v5544_v33  ;;  %v5546_v42 = vpop.f32.mrf.mxu1  ;;  %v5550_v49 = vpack.c.bf16 %v1417_v37, %v1413_v18 }
 0x14f   :  { %7113 = vst [vmem:[#allocation26_spill] sm:$0xff] %v5546_v42  ;;  %v1069_v8 = vpop.f32.mrf.mxu0 }
 0x150   :  { %v5552_v51 = vpop.f32.mrf.mxu1  ;;  %1831 = vrot.lane.b32.xlu1 %v1665_v19, %s5202_s1  ;;  %1837 = vrot.lane.b32.xlu0 %v5550_v49, %s5202_s1 }
 0x151   :  { %v1071_v14 = vpop.f32.mrf.mxu0 }
 0x152   :  { %v1464_v53 = vpop.f32.mrf.mxu1  ;;  %v5562_v62 = vadd.f32 %v5489_v16, %v1071_v14 }
 0x153   :  { %v1073_v2 = vpop.f32.mrf.mxu0 }
 0x154   :  { %7114 = vst [vmem:[#allocation27_spill] sm:$0xff] %v5562_v62  ;;  %v5564_v38 = vpop.f32.mrf.mxu1  ;;  %1731 = vrot.lane.b32.xlu0 %v5559_v59, %s5202_s1 }
 0x155   :  { %v5568_v0 = vpop.f32.mrf.mxu0 }
 0x156   :  { %7115 = vst [vmem:[#allocation28_spill] sm:$0xff] %v5568_v0  ;;  %v5570_v61 = vpop.f32.mrf.mxu1 }
 0x157   :  { %7116 = vst [vmem:[#allocation29_spill] sm:$0xff] %v5570_v61  ;;  %v1079_v32 = vpop.f32.mrf.mxu0 }
 0x158   :  { %v5572_v58 = vpop.f32.mrf.mxu1  ;;  %1729 = vrot.lane.b32.xlu0 %v5458_v3, %s5202_s1 }
 0x159   :  { %v1081_v6 = vpop.f32.mrf.mxu0 }
 0x15a   :  { %v1474_v9 = vpop.f32.mrf.mxu1  ;;  %v5577_v16 = vadd.f32 %v5502_v46, %v1081_v6 }
 0x15b   :  { %v1083_v10 = vpop.f32.mrf.mxu0 }
 0x15c   :  { %7117 = vst [vmem:[#allocation30_spill] sm:$0xff] %v5577_v16  ;;  %v5579_v11 = vpop.f32.mrf.mxu1 }
 0x15d   :  { %v5581_v19 = vpop.f32.mrf.mxu0 }
 0x15e   :  { %7118 = vst [vmem:[#allocation31_spill] sm:$0xff] %v5581_v19  ;;  %v5583_v27 = vpop.f32.mrf.mxu1 }
 0x15f   :  { %7119 = vst [vmem:[#allocation32_spill] sm:$0xff] %v5583_v27  ;;  %v1089_v50 = vpop.f32.mrf.mxu0 }
 0x160   :  { %v5585_v12 = vpop.f32.mrf.mxu1  ;;  %v1443_v39 = vadd.f32 %v5513_v60, %v1089_v50 }
 0x161   :  { %v1091_v20 = vpop.f32.mrf.mxu0 }
 0x162   :  { %v1484_v41 = vpop.f32.mrf.mxu1  ;;  %v5587_v18 = vadd.f32 %v1444_v63, %v1091_v20 }
 0x163   :  { %v1093_v3 = vpop.f32.mrf.mxu0 }
 0x164   :  { %7120 = vst [vmem:[#allocation33_spill] sm:$0xff] %v5587_v18  ;;  %v5589_v37 = vpop.f32.mrf.mxu1  ;;  %v1447_v63 = vadd.f32 %v5519_v5, %v1093_v3  ;;  %v1433_v5 = vadd.f32 %v5500_v43, %v1079_v32 }
 0x165   :  { %v5591_v45 = vpop.f32.mrf.mxu0 }
 0x166   :  { %7121 = vst [vmem:[#allocation34_spill] sm:$0xff] %v5591_v45  ;;  %v5593_v46 = vpop.f32.mrf.mxu1 }
 0x167   :  { %7122 = vst [vmem:[#allocation35_spill] sm:$0xff] %v5593_v46  ;;  %v1099_v7 = vpop.f32.mrf.mxu0 }
 0x168   :  { %v1492_v14 = vpop.f32.mrf.mxu1  ;;  %v1453_v29 = vadd.f32 %v1452_v24, %v1099_v7  ;;  %v5609_v24 = vpack.c.bf16 %v1447_v63, %v1443_v39  ;;  %v1423_v7 = vadd.f32 %v5483_v28, %v1069_v8 }
 0x169   :  { %v1101_v6 = vpop.f32.mrf.mxu0 }
 0x16a   :  { %v1494_v61 = vpop.f32.mrf.mxu1  ;;  %v5595_v27 = vadd.f32 %v1454_v47, %v1101_v6  ;;  %v1427_v6 = vadd.f32 %v5494_v35, %v1073_v2 }
 0x16b   :  { %v1103_v22 = vpop.f32.mrf.mxu0 }
 0x16c   :  { %7123 = vst [vmem:[#allocation36_spill] sm:$0xff] %v5595_v27  ;;  %v1496_v30 = vpop.f32.mrf.mxu1  ;;  %v1457_v20 = vadd.f32 %v1456_v31, %v1103_v22  ;;  %v1437_v22 = vadd.f32 %v5507_v52, %v1083_v10  ;;  %v5633_v10 = vpack.c.bf16 %v1427_v6, %v1423_v7 }
 0x16d   :  { %v5599_v36 = vpop.f32.mrf.mxu0 }
 0x16e   :  { %7124 = vst [vmem:[#allocation37_spill] sm:$0xff] %v5599_v36  ;;  %v5601_v44 = vpop.f32.mrf.mxu1  ;;  %v5603_v55 = vpack.c.bf16 %v1457_v20, %v1453_v29  ;;  %v5627_v63 = vpack.c.bf16 %v1437_v22, %v1433_v5 }
 0x16f   :  { %7125 = vst [vmem:[#allocation38_spill] sm:$0xff] %v5601_v44  ;;  %v5605_v46 = vpop.f32.mrf.mxu0 }
 0x170   :  { %v5607_v1 = vpop.f32.mrf.mxu1  ;;  %1938 = vrot.lane.b32.xlu0 %v5603_v55, %s5202_s1 }
 0x171   :  { %v1111_v47 = vpop.f32.mrf.mxu0 }
 0x172   :  { %v1504_v60 = vpop.f32.mrf.mxu1  ;;  %v5615_v31 = vadd.f32 %v1464_v53, %v1111_v47 }
 0x173   :  { %v1113_v50 = vpop.f32.mrf.mxu0 }
 0x174   :  { %7126 = vst [vmem:[#allocation39_spill] sm:$0xff] %v5615_v31  ;;  %v5617_v29 = vpop.f32.mrf.mxu1  ;;  %1936 = vrot.lane.b32.xlu0 %v5609_v24, %s5202_s1 }
 0x175   :  { %v5621_v3 = vpop.f32.mrf.mxu0 }
 0x176   :  { %7127 = vst [vmem:[#allocation40_spill] sm:$0xff] %v5621_v3  ;;  %v5623_v39 = vpop.f32.mrf.mxu1 }
 0x177   :  { %7128 = vst [vmem:[#allocation41_spill] sm:$0xff] %v5623_v39  ;;  %v1119_v43 = vpop.f32.mrf.mxu0 }
 0x178   :  { %v5629_v52 = vpop.f32.mrf.mxu1  ;;  %1934 = vrot.lane.b32.xlu0 %v5627_v63, %s5202_s1 }
 0x179   :  { %v1121_v53 = vpop.f32.mrf.mxu0 }
 0x17a   :  { %v1514_v32 = vpop.f32.mrf.mxu1  ;;  %v5635_v20 = vadd.f32 %v1474_v9, %v1121_v53 }
 0x17b   :  { %v1123_v47 = vpop.f32.mrf.mxu0 }
 0x17c   :  { %7129 = vst [vmem:[#allocation42_spill] sm:$0xff] %v5635_v20  ;;  %v5637_v39 = vpop.f32.mrf.mxu1  ;;  %1932 = vrot.lane.b32.xlu0 %v5633_v10, %s5202_s1 }
 0x17d   :  { %v5641_v28 = vpop.f32.mrf.mxu0 }
 0x17e   :  { %7130 = vst [vmem:[#allocation43_spill] sm:$0xff] %v5641_v28  ;;  %v5643_v35 = vpop.f32.mrf.mxu1 }
 0x17f   :  { %7131 = vst [vmem:[#allocation44_spill] sm:$0xff] %v5643_v35  ;;  %v1129_v8 = vpop.f32.mrf.mxu0 }
 0x180   :  { %v5645_v2 = vpop.f32.mrf.mxu1 }
 0x181   :  { %v1131_v5 = vpop.f32.mrf.mxu0 }
 0x182   :  { %v1524_v22 = vpop.f32.mrf.mxu1  ;;  %v5647_v31 = vadd.f32 %v1484_v41, %v1131_v5  ;;  %v1483_v41 = vadd.f32 %v5585_v12, %v1129_v8  ;;  %v1463_v8 = vadd.f32 %v5552_v51, %v5605_v46 }
 0x183   :  { %v1133_v7 = vpop.f32.mrf.mxu0 }
 0x184   :  { %7132 = vst [vmem:[#allocation45_spill] sm:$0xff] %v5647_v31  ;;  %v5649_v9 = vpop.f32.mrf.mxu1  ;;  %v1487_v5 = vadd.f32 %v5589_v37, %v1133_v7 }
 0x185   :  { %v5651_v6 = vpop.f32.mrf.mxu0 }
 0x186   :  { %7133 = vst [vmem:[#allocation46_spill] sm:$0xff] %v5651_v6  ;;  %v1528_v53 = vpop.f32.mrf.mxu1 }
 0x187   :  { %v1139_v20 = vpop.f32.mrf.mxu0 }
 0x188   :  { %v5653_v3 = vpop.f32.mrf.mxu1  ;;  %v1493_v15 = vadd.f32 %v1492_v14, %v1139_v20 }
 0x189   :  { %v1141_v44 = vpop.f32.mrf.mxu0 }
 0x18a   :  { %v1534_v28 = vpop.f32.mrf.mxu1  ;;  %v5655_v35 = vadd.f32 %v1494_v61, %v1141_v44  ;;  %v5671_v44 = vpack.c.bf16 %v1487_v5, %v1483_v41 }
 0x18b   :  { %v1143_v62 = vpop.f32.mrf.mxu0 }
 0x18c   :  { %7134 = vst [vmem:[#allocation47_spill] sm:$0xff] %v5655_v35  ;;  %v5657_v16 = vpop.f32.mrf.mxu1  ;;  %v1497_v31 = vadd.f32 %v1496_v30, %v1143_v62  ;;  %v1473_v30 = vadd.f32 %v5572_v58, %v1119_v43  ;;  %v1477_v62 = vadd.f32 %v5579_v11, %v1123_v47  ;;  %v1467_v58 = vadd.f32 %v5564_v38, %v1113_v50 }
 0x18d   :  { %v5661_v40 = vpop.f32.mrf.mxu0 }
 0x18e   :  { %7135 = vst [vmem:[#allocation48_spill] sm:$0xff] %v5661_v40  ;;  %v5663_v6 = vpop.f32.mrf.mxu1  ;;  %v5665_v0 = vpack.c.bf16 %v1497_v31, %v1493_v15  ;;  %v5694_v43 = vpack.c.bf16 %v1477_v62, %v1473_v30  ;;  %v5702_v41 = vpack.c.bf16 %v1467_v58, %v1463_v8 }
 0x18f   :  { %v5667_v18 = vpop.f32.mrf.mxu0 }
 0x190   :  { %v5669_v56 = vpop.f32.mrf.mxu1  ;;  %2039 = vrot.lane.b32.xlu1 %v5665_v0, %s5202_s1 }
 0x191   :  { %v1151_v61 = vpop.f32.mrf.mxu0 }
 0x192   :  { %v5675_v12 = vpop.f32.mrf.mxu1  ;;  %v5679_v37 = vadd.f32 %v1504_v60, %v1151_v61 }
 0x193   :  { %v5681_v15 = vpop.f32.mrf.mxu0 }
 0x194   :  { %7136 = vst [vmem:[#allocation49_spill] sm:$0xff] %v5679_v37  ;;  %v5683_v14 = vpop.f32.mrf.mxu1  ;;  %2037 = vrot.lane.b32.xlu1 %v5671_v44, %s5202_s1 }
 0x195   :  { %v5687_v31 = vpop.f32.mrf.mxu0 }
 0x196   :  { %7137 = vst [vmem:[#allocation50_spill] sm:$0xff] %v5687_v31  ;;  %v5689_v20 = vpop.f32.mrf.mxu1 }
 0x197   :  { %v1159_v11 = vpop.f32.mrf.mxu0 }
 0x198   :  { %v5696_v60 = vpop.f32.mrf.mxu1  ;;  %2035 = vrot.lane.b32.xlu1 %v5694_v43, %s5202_s1 }
 0x199   :  { %v1161_v47 = vpop.f32.mrf.mxu0 }
 0x19a   :  { %v5700_v7 = vpop.f32.mrf.mxu1  ;;  %v5704_v5 = vadd.f32 %v1514_v32, %v1161_v47  ;;  %v1734_v31 = vpop.permute.xlu1 %1733 }
 0x19b   :  { %v1163_v61 = vpop.f32.mrf.mxu0 }
 0x19c   :  { %7138 = vst [vmem:[#allocation51_spill] sm:$0xff] %v5704_v5  ;;  %v5706_v37 = vpop.f32.mrf.mxu1  ;;  %2033 = vrot.lane.b32.xlu1 %v5702_v41, %s5202_s1 }
 0x19d   :  { %v5710_v51 = vpop.f32.mrf.mxu0 }
 0x19e   :  { %7139 = vst [vmem:[#allocation52_spill] sm:$0xff] %v5710_v51  ;;  %v5712_v38 = vpop.f32.mrf.mxu1 }
 0x19f   :  { %v1169_v46 = vpop.f32.mrf.mxu0 }
 0x1a0   :  { %v5714_v50 = vpop.f32.mrf.mxu1  ;;  %v1523_v26 = vadd.f32 %v5645_v2, %v1169_v46  ;;  %v1513_v2 = vadd.f32 %v5629_v52, %v1159_v11  ;;  %v1507_v52 = vadd.f32 %v5617_v29, %v5681_v15 }
 0x1a1   :  { %v1171_v30 = vpop.f32.mrf.mxu0 }
 0x1a2   :  { %v5716_v62 = vpop.f32.mrf.mxu1  ;;  %v1525_v8 = vadd.f32 %v1524_v22, %v1171_v30  ;;  %v1736_v58 = vpop.permute.xlu0 %1735 }
 0x1a3   :  { %v1173_v32 = vpop.f32.mrf.mxu0  ;;  %4658 = vmatprep.subr.msk.bf16.mxu1 %vm1737_vm0, %v1736_v58  ;;  %v1760_v47 = vsel %vm1737_vm0, %v1736_v58, 0 }
 0x1a4   :  { %v5720_v5 = vpop.f32.mrf.mxu1  ;;  %4403 = vmatpush3.bf16.xpose.msra.mxu1 %v1760_v47  ;;  %v1757_v47 = vsel %vm1737_vm0, %v1734_v31, 0 }
 0x1a5   :  { %v1175_v51 = vpop.f32.mrf.mxu0  ;;  %4659 = vmatprep.subr.msk.bf16.mxu1 %vm1737_vm0, %v1734_v31 }
 0x1a6   :  { %v5723_v35 = vpop.f32.mrf.mxu1  ;;  %v1529_v40 = vadd.f32 %v1528_v53, %v1175_v51  ;;  %v1527_v53 = vadd.f32 %v5649_v9, %v1173_v32  ;;  %v1517_v9 = vadd.f32 %v5637_v39, %v1163_v61 }
 0x1a7   :  { %v1179_v19 = vpop.f32.mrf.mxu0 }
 0x1a8   :  { %v5725_v17 = vpop.f32.mrf.mxu1  ;;  %v5727_v22 = vpack.c.bf16 %v1529_v40, %v1525_v8  ;;  %v1533_v58 = vadd.f32 %v5653_v3, %v1179_v19  ;;  %v5747_v31 = vpack.c.bf16 %v1527_v53, %v1523_v26  ;;  %v5770_v11 = vpack.c.bf16 %v1517_v9, %v1513_v2 }
 0x1a9   :  { %v1181_v30 = vpop.f32.mrf.mxu0 }
 0x1aa   :  { %7140 = vst [vmem:[#allocation53_spill] sm:$0xff] %v5727_v22  ;;  %v5729_v45 = vpop.f32.mrf.mxu1  ;;  %v1535_v27 = vadd.f32 %v1534_v28, %v1181_v30 }
 0x1ab   :  { %v1183_v42 = vpop.f32.mrf.mxu0 }
 0x1ac   :  { %v5733_v36 = vpop.f32.mrf.mxu1  ;;  %v1537_v51 = vadd.f32 %v5657_v16, %v1183_v42  ;;  %4405 = vmatpush3.bf16.xpose.msra.mxu1 %v1757_v47 }
 0x1ad   :  { %v1185_v40 = vpop.f32.mrf.mxu0 }
 0x1ae   :  { %v5738_v8 = vpop.f32.mrf.mxu1  ;;  %v5740_v22 = vpack.c.bf16 %v1537_v51, %v1533_v58  ;;  %v1539_v19 = vadd.f32 %v5663_v6, %v1185_v40  ;;  %v1503_v58 = vadd.f32 %v5607_v1, %v5667_v18 }
 0x1af   :  { %v5743_v3 = vpop.f32.mrf.mxu0 }
 0x1b0   :  { %v5745_v28 = vpop.f32.mrf.mxu1  ;;  %v5749_v30 = vpack.c.bf16 %v1539_v19, %v1535_v27  ;;  %2140 = vrot.lane.b32.xlu0 %v5740_v22, %s5202_s1  ;;  %v5783_v1 = vpack.c.bf16 %v1507_v52, %v1503_v58 }
 0x1b1   :  { %v1191_v42 = vpop.f32.mrf.mxu0 }
 0x1b2   :  { %7141 = vst [vmem:[#allocation54_spill] sm:$0xff] %v5749_v30  ;;  %v5753_v16 = vpop.f32.mrf.mxu1  ;;  %v1545_v6 = vadd.f32 %v5675_v12, %v1191_v42 }
 0x1b3   :  { %v5758_v46 = vpop.f32.mrf.mxu0 }
 0x1b4   :  { %v5760_v32 = vpop.f32.mrf.mxu1  ;;  %2138 = vrot.lane.b32.xlu0 %v5747_v31, %s5202_s1 }
 0x1b5   :  { %v1195_v26 = vpop.f32.mrf.mxu0 }
 0x1b6   :  { %v5764_v27 = vpop.f32.mrf.mxu1  ;;  %v1549_v39 = vadd.f32 %v5689_v20, %v1195_v26 }
 0x1b7   :  { %v5773_v12 = vpop.f32.mrf.mxu0 }
 0x1b8   :  { %v5775_v61 = vpop.f32.mrf.mxu1  ;;  %v5777_v47 = vpack.c.bf16 %v1549_v39, %v1545_v6  ;;  %2136 = vrot.lane.b32.xlu0 %v5770_v11, %s5202_s1 }
 0x1b9   :  { %v1201_v53 = vpop.f32.mrf.mxu0 }
 0x1ba   :  { %7142 = vst [vmem:[#allocation55_spill] sm:$0xff] %v5777_v47  ;;  %v5781_v51 = vpop.f32.mrf.mxu1  ;;  %v1555_v18 = vadd.f32 %v5700_v7, %v1201_v53  ;;  %v1836_v47 = vpop.permute.xlu1 %1835 }
 0x1bb   :  { %v1203_v29 = vpop.f32.mrf.mxu0 }
 0x1bc   :  { %v5786_v15 = vpop.f32.mrf.mxu1  ;;  %2134 = vrot.lane.b32.xlu0 %v5783_v1, %s5202_s1 }
 0x1bd   :  { %v1205_v20 = vpop.f32.mrf.mxu0 }
 0x1be   :  { %v5790_v40 = vpop.f32.mrf.mxu1  ;;  %v1559_v19 = vadd.f32 %v5712_v38, %v1205_v20 }
 0x1bf   :  { %v1209_v42 = vpop.f32.mrf.mxu0 }
 0x1c0   :  { %v5793_v2 = vpop.f32.mrf.mxu1  ;;  %v5795_v9 = vpack.c.bf16 %v1559_v19, %v1555_v18 }
 0x1c1   :  { %v1211_v6 = vpop.f32.mrf.mxu0 }
 0x1c2   :  { %7143 = vst [vmem:[#allocation56_spill] sm:$0xff] %v5795_v9  ;;  %v5797_v26 = vpop.f32.mrf.mxu1  ;;  %v1565_v7 = vadd.f32 %v5716_v62, %v1211_v6  ;;  %v1838_v58 = vpop.permute.xlu0 %1837 }
 0x1c3   :  { %v1213_v52 = vpop.f32.mrf.mxu0  ;;  %4662 = vmatprep.subr.msk.bf16.mxu0 %vm1737_vm0, %v1838_v58  ;;  %v1861_v39 = vsel %vm1737_vm0, %v1838_v58, 0 }
 0x1c4   :  { %v5802_v53 = vpop.f32.mrf.mxu1  ;;  %4419 = vmatpush3.bf16.xpose.msra.mxu0 %v1861_v39 }
 0x1c5   :  { %v1215_v38 = vpop.f32.mrf.mxu0  ;;  %4663 = vmatprep.subr.msk.bf16.mxu0 %vm1737_vm0, %v1836_v47 }
 0x1c6   :  { %v5805_v18 = vpop.f32.mrf.mxu1  ;;  %v1569_v20 = vadd.f32 %v5723_v35, %v1215_v38  ;;  %v1732_v19 = vpop.permute.xlu0 %1731  ;;  %v1858_v38 = vsel %vm1737_vm0, %v1836_v47, 0 }
 0x1c7   :  { %v1219_v9 = vpop.f32.mrf.mxu0  ;;  %4660 = vmatprep.subr.msk.bf16.mxu1 %vm1737_vm0, %v1732_v19  ;;  %v1754_v62 = vsel %vm1737_vm0, %v1732_v19, 0  ;;  %v1834_v19 = vpop.permute.xlu1 %1833 }
 0x1c8   :  { %v5810_v6 = vpop.f32.mrf.mxu1  ;;  %v5812_v58 = vpack.c.bf16 %v1569_v20, %v1565_v7  ;;  %4407 = vmatpush3.bf16.xpose.msra.mxu1 %v1754_v62  ;;  %v1573_v34 = vadd.f32 %v5725_v17, %v1219_v9  ;;  %v1563_v7 = vadd.f32 %v5714_v50, %v1209_v42  ;;  %v1567_v20 = vadd.f32 %v5720_v5, %v1213_v52 }
 0x1c9   :  { %v1221_v30 = vpop.f32.mrf.mxu0 }
 0x1ca   :  { %7144 = vst [vmem:[#allocation57_spill] sm:$0xff] %v5812_v58  ;;  %v5814_v39 = vpop.f32.mrf.mxu1  ;;  %v1575_v23 = vadd.f32 %v5729_v45, %v1221_v30  ;;  %v1730_v33 = vpop.permute.xlu0 %1729  ;;  %v5834_v54 = vpack.c.bf16 %v1567_v20, %v1563_v7 }
 0x1cb   :  { %v1223_v35 = vpop.f32.mrf.mxu0  ;;  %4661 = vmatprep.subr.msk.bf16.mxu1 %vm1737_vm0, %v1730_v33  ;;  %v1751_v9 = vsel %vm1737_vm0, %v1730_v33, 0  ;;  %v1855_v33 = vsel %vm1737_vm0, %v1834_v19, 0 }
 0x1cc   :  { %v5820_v48 = vpop.f32.mrf.mxu1  ;;  %v1577_v62 = vadd.f32 %v5733_v36, %v1223_v35  ;;  %4421 = vmatpush3.bf16.xpose.msra.mxu0 %v1858_v38 }
 0x1cd   :  { %v1225_v58 = vpop.f32.mrf.mxu0  ;;  %4664 = vmatprep.subr.msk.bf16.mxu0 %vm1737_vm0, %v1834_v19 }
 0x1ce   :  { %v5826_v17 = vpop.f32.mrf.mxu1  ;;  %v5828_v45 = vpack.c.bf16 %v1577_v62, %v1573_v34  ;;  %v1579_v30 = vadd.f32 %v5738_v8, %v1225_v58  ;;  %v1553_v34 = vadd.f32 %v5696_v60, %v5773_v12  ;;  %v1557_v8 = vadd.f32 %v5706_v37, %v1203_v29 }
 0x1cf   :  { %v5831_v47 = vpop.f32.mrf.mxu0  ;;  %v1543_v60 = vadd.f32 %v5669_v56, %v5743_v3  ;;  %v1547_v37 = vadd.f32 %v5683_v14, %v5758_v46 }
 0x1d0   :  { %v5836_v50 = vpack.c.bf16 %v1579_v30, %v1575_v23  ;;  %4409 = vmatpush3.bf16.xpose.msra.mxu1 %v1751_v9  ;;  %2241 = vrot.lane.b32.xlu1 %v5828_v45, %s5202_s1  ;;  %v5840_v5 = vpop.f32.mrf.mxu1  ;;  %v1832_v23 = vpop.permute.xlu1 %1831 }
 0x1d1   :  { %v1231_v36 = vpop.f32.mrf.mxu0  ;;  %v5871_v14 = vpack.c.bf16 %v1547_v37, %v1543_v60  ;;  %v1852_v19 = vsel %vm1737_vm0, %v1832_v23, 0 }
 0x1d2   :  { %7145 = vst [vmem:[#allocation58_spill] sm:$0xff] %v5836_v50  ;;  %v1585_v42 = vadd.f32 %v5753_v16, %v1231_v36  ;;  %v5852_v35 = vpop.f32.mrf.mxu1  ;;  %v5858_v16 = vpack.c.bf16 %v1557_v8, %v1553_v34 }
 0x1d3   :  { %v5846_v52 = vpop.f32.mrf.mxu0 }
 0x1d4   :  { %4423 = vmatpush3.bf16.xpose.msra.mxu0 %v1855_v33  ;;  %2239 = vrot.lane.b32.xlu1 %v5834_v54, %s5202_s1  ;;  %v5869_v3 = vpop.f32.mrf.mxu1 }
 0x1d5   :  { %v1235_v58 = vpop.f32.mrf.mxu0  ;;  %4665 = vmatprep.subr.msk.bf16.mxu0 %vm1737_vm0, %v1832_v23 }
 0x1d6   :  { %v1589_v12 = vadd.f32 %v5764_v27, %v1235_v58  ;;  %v1628_v7 = vpop.f32.mrf.mxu1 }
 0x1d7   :  { %v1239_v29 = vpop.f32.mrf.mxu0  ;;  %4411 = vmatmul.mubr.msk.bf16.vlgmr.msra.gmra.mxu1 %vm1737_vm0, %v5559_v59 }
 0x1d8   :  { %v5863_v38 = vpack.c.bf16 %v1589_v12, %v1585_v42  ;;  %4414 = vmatprep.mubr.msk.bf16.mxu1 %vm1737_vm0, %v5461_v4  ;;  %2237 = vrot.lane.b32.xlu1 %v5858_v16, %s5202_s1  ;;  %v5884_v30 = vpop.f32.mrf.mxu1 }
 0x1d9   :  { %v1241_v56 = vpop.f32.mrf.mxu0 }
 0x1da   :  { %7146 = vst [vmem:[#allocation59_spill] sm:$0xff] %v5863_v38  ;;  %v1595_v46 = vadd.f32 %v5781_v51, %v1241_v56 }
 0x1db   :  { %v1243_v27 = vpop.f32.mrf.mxu0 }
 0x1dc   :  { %4425 = vmatpush3.bf16.xpose.msra.mxu0 %v1852_v19  ;;  %2235 = vrot.lane.b32.xlu1 %v5871_v14, %s5202_s1 }
 0x1dd   :  { %v1245_v59 = vpop.f32.mrf.mxu0 }
 0x1de   :  { %v1599_v4 = vadd.f32 %v5790_v40, %v1245_v59 }
 0x1df   :  { %v1249_v20 = vpop.f32.mrf.mxu0  ;;  %4415 = vmatmul.mubr.msk.bf16.gmra.mxu1 %vm1737_vm0, %v5481_v25 }
 0x1e0   :  { %v5880_v62 = vpack.c.bf16 %v1599_v4, %v1595_v46  ;;  %4442 = vmatprep.mubr.msk.bf16.mxu1 %vm1737_vm0, %v5633_v10  ;;  %v1634_v10 = vpop.f32.mrf.mxu1 }
 0x1e1   :  { %v1251_v51 = vpop.f32.mrf.mxu0 }
 0x1e2   :  { %7147 = vst [vmem:[#allocation60_spill] sm:$0xff] %v5880_v62  ;;  %v1605_v9 = vadd.f32 %v5797_v26, %v1251_v51  ;;  %v1939_v36 = vpop.permute.xlu0 %1938  ;;  %v5898_v58 = vpop.f32.mrf.mxu1 }
 0x1e3   :  { %v1253_v34 = vpop.f32.mrf.mxu0  ;;  %4427 = vmatmul.mubr.msk.bf16.vlgmr.msra.gmra.mxu0 %vm1737_vm0, %v5535_v57  ;;  %4666 = vmatprep.subr.msk.bf16.mxu1 %vm1737_vm0, %v1939_v36  ;;  %v1962_v40 = vsel %vm1737_vm0, %v1939_v36, 0 }
 0x1e4   :  { %4430 = vmatprep.mubr.msk.bf16.mxu0 %vm1737_vm0, %v5529_v21  ;;  %4435 = vmatpush3.bf16.xpose.msra.mxu1 %v1962_v40  ;;  %v1607_v12 = vadd.f32 %v5802_v53, %v1253_v34 }
 0x1e5   :  { %v1255_v25 = vpop.f32.mrf.mxu0 }
 0x1e6   :  { %v1609_v8 = vadd.f32 %v5805_v18, %v1255_v25  ;;  %v1937_v42 = vpop.permute.xlu0 %1936  ;;  %v1603_v18 = vadd.f32 %v5793_v2, %v1249_v20  ;;  %v1597_v20 = vadd.f32 %v5786_v15, %v1243_v27  ;;  %v1587_v15 = vadd.f32 %v5760_v32, %v5846_v52 }
 0x1e7   :  { %v1259_v33 = vpop.f32.mrf.mxu0  ;;  %4667 = vmatprep.subr.msk.bf16.mxu1 %vm1737_vm0, %v1937_v42  ;;  %v1959_v57 = vsel %vm1737_vm0, %v1937_v42, 0 }
 0x1e8   :  { %v5895_v26 = vpack.c.bf16 %v1609_v8, %v1605_v9  ;;  %v1613_v60 = vadd.f32 %v5810_v6, %v1259_v33  ;;  %v1638_v6 = vpop.f32.mrf.mxu1  ;;  %v5915_v2 = vpack.c.bf16 %v1607_v12, %v1603_v18 }
 0x1e9   :  { %v1261_v23 = vpop.f32.mrf.mxu0 }
 0x1ea   :  { %7148 = vst [vmem:[#allocation61_spill] sm:$0xff] %v5895_v26  ;;  %v1615_v21 = vadd.f32 %v5814_v39, %v1261_v23  ;;  %v1935_v46 = vpop.permute.xlu0 %1934  ;;  %v1642_v4 = vpop.f32.mrf.mxu1 }
 0x1eb   :  { %v1263_v37 = vpop.f32.mrf.mxu0  ;;  %4431 = vmatmul.mubr.msk.bf16.gmra.mxu0 %vm1737_vm0, %v5550_v49 }
 0x1ec   :  { %v1617_v56 = vadd.f32 %v5820_v48, %v1263_v37  ;;  %4437 = vmatpush3.bf16.xpose.msra.mxu1 %v1959_v57  ;;  %4458 = vmatprep.mubr.msk.bf16.mxu0 %vm1737_vm0, %v5702_v41  ;;  %v1593_v41 = vadd.f32 %v5775_v61, %v1239_v29  ;;  %v1644_v40 = vpop.f32.mrf.mxu1  ;;  %v1583_v61 = vadd.f32 %v5745_v28, %v5831_v47 }
 0x1ed   :  { %v1265_v19 = vpop.f32.mrf.mxu0  ;;  %4668 = vmatprep.subr.msk.bf16.mxu1 %vm1737_vm0, %v1935_v46 }
 0x1ee   :  { %v5910_v39 = vpack.c.bf16 %v1617_v56, %v1613_v60  ;;  %v1619_v59 = vadd.f32 %v5826_v17, %v1265_v19  ;;  %v1956_v17 = vsel %vm1737_vm0, %v1935_v46, 0  ;;  %v1933_v36 = vpop.permute.xlu0 %1932  ;;  %v1646_v42 = vpop.f32.mrf.mxu1  ;;  %v5940_v33 = vpack.c.bf16 %v1587_v15, %v1583_v61 }
 0x1ef   :  { %v5913_v49 = vpop.f32.mrf.mxu0  ;;  %v1953_v28 = vsel %vm1737_vm0, %v1933_v36, 0 }
 0x1f0   :  { %v5917_v53 = vpack.c.bf16 %v1619_v59, %v1615_v21  ;;  %2342 = vrot.lane.b32.xlu0 %v5910_v39, %s5202_s1  ;;  %v1648_v47 = vpop.f32.mrf.mxu1 }
 0x1f1   :  { %v1271_v48 = vpop.f32.mrf.mxu0 }
 0x1f2   :  { %7149 = vst [vmem:[#allocation62_spill] sm:$0xff] %v5917_v53  ;;  %v1625_v51 = vadd.f32 %v5852_v35, %v1271_v48  ;;  %v5934_v35 = vpack.c.bf16 %v1597_v20, %v1593_v41  ;;  %v1652_v37 = vpop.f32.mrf.mxu1 }
 0x1f3   :  { %v5924_v9 = vpop.f32.mrf.mxu0 }
 0x1f4   :  { %4439 = vmatpush3.bf16.xpose.msra.mxu1 %v1956_v17  ;;  %2340 = vrot.lane.b32.xlu0 %v5915_v2, %s5202_s1  ;;  %v1654_v19 = vpop.f32.mrf.mxu1 }
 0x1f5   :  { %v1275_v34 = vpop.f32.mrf.mxu0  ;;  %4669 = vmatprep.subr.msk.bf16.mxu1 %vm1737_vm0, %v1933_v36 }
 0x1f6   :  { %v1629_v29 = vadd.f32 %v1628_v7, %v1275_v34 }
 0x1f7   :  { %v1279_v27 = vpop.f32.mrf.mxu0 }
 0x1f8   :  { %v5936_v25 = vpack.c.bf16 %v1629_v29, %v1625_v51  ;;  %2338 = vrot.lane.b32.xlu0 %v5934_v35, %s5202_s1  ;;  %v1656_v51 = vpop.f32.mrf.mxu1 }
 0x1f9   :  { %v1281_v8 = vpop.f32.mrf.mxu0 }
 0x1fa   :  { %7150 = vst [vmem:[#allocation63_spill] sm:$0xff] %v5936_v25  ;;  %v1635_v23 = vadd.f32 %v1634_v10, %v1281_v8 }
 0x1fb   :  { %v1283_v57 = vpop.f32.mrf.mxu0 }
 0x1fc   :  { %4441 = vmatpush3.bf16.xpose.msra.mxu1 %v1953_v28  ;;  %2336 = vrot.lane.b32.xlu0 %v5940_v33, %s5202_s1  ;;  %v1627_v28 = vadd.f32 %v5869_v3, %v5924_v9 }
 0x1fd   :  { %v1285_v32 = vpop.f32.mrf.mxu0 }
 0x1fe   :  { %v1639_v52 = vadd.f32 %v1638_v6, %v1285_v32 }
 0x1ff   :  { %v1289_v7 = vpop.f32.mrf.mxu0 }
 0x200   :  { %v5945_v60 = vpack.c.bf16 %v1639_v52, %v1635_v23  ;;  %v1633_v23 = vadd.f32 %v5884_v30, %v1279_v27 }
 0x201   :  { %v1291_v21 = vpop.f32.mrf.mxu0 }
 0x202   :  { %7151 = vst [vmem:[#allocation64_spill] sm:$0xff] %v5945_v60  ;;  %v1645_v18 = vadd.f32 %v1644_v40, %v1291_v21  ;;  %v2040_v12 = vpop.permute.xlu1 %2039 }
 0x203   :  { %v1293_v56 = vpop.f32.mrf.mxu0  ;;  %4443 = vmatmul.mubr.msk.bf16.vlgmr.msra.gmra.mxu1 %vm1737_vm0, %v5627_v63  ;;  %4670 = vmatprep.subr.msk.bf16.mxu0 %vm1737_vm0, %v2040_v12  ;;  %v2063_v10 = vsel %vm1737_vm0, %v2040_v12, 0 }
 0x204   :  { %4451 = vmatpush3.bf16.xpose.msra.mxu0 %v2063_v10  ;;  %4446 = vmatprep.mubr.msk.bf16.mxu1 %vm1737_vm0, %v5609_v24  ;;  %v1643_v24 = vadd.f32 %v1642_v4, %v1289_v7  ;;  %v1647_v40 = vadd.f32 %v1646_v42, %v1293_v56  ;;  %v1623_v42 = vadd.f32 %v5840_v5, %v5913_v49 }
 0x205   :  { %v1295_v46 = vpop.f32.mrf.mxu0 }
 0x206   :  { %v1649_v6 = vadd.f32 %v1648_v47, %v1295_v46  ;;  %v2038_v59 = vpop.permute.xlu1 %2037  ;;  %v5966_v8 = vpack.c.bf16 %v1647_v40, %v1643_v24  ;;  %v1689_v30 = vpack.c.bf16 %v1627_v28, %v1623_v42  ;;  %v7154_v46 = vld [vmem:[#allocation13_spill] sm:$0xff] }
 0x207   :  { %v1299_v48 = vpop.f32.mrf.mxu0  ;;  %4671 = vmatprep.subr.msk.bf16.mxu0 %vm1737_vm0, %v2038_v59  ;;  %v2060_v63 = vsel %vm1737_vm0, %v2038_v59, 0 }
 0x208   :  { %v5954_v41 = vpack.c.bf16 %v1649_v6, %v1645_v18  ;;  %v1653_v17 = vadd.f32 %v1652_v37, %v1299_v48  ;;  %v7155_v6 = vld [vmem:[#allocation11_spill] sm:$0xff]  ;;  %v7156_v48 = vld [vmem:[#allocation25_spill] sm:$0xff] }
 0x209   :  { %v1301_v20 = vpop.f32.mrf.mxu0 }
 0x20a   :  { %7152 = vst [vmem:[#allocation65_spill] sm:$0xff] %v5954_v41  ;;  %v5957_v36 = vadd.f32 %v1654_v19, %v1301_v20  ;;  %v2036_v15 = vpop.permute.xlu1 %2035  ;;  %v7157_v20 = vld [vmem:[#allocation14_spill] sm:$0xff] }
 0x20b   :  { %v1303_v34 = vpop.f32.mrf.mxu0  ;;  %4447 = vmatmul.mubr.msk.bf16.gmra.mxu1 %vm1737_vm0, %v5603_v55  ;;  %v1637_v55 = vadd.f32 %v5898_v58, %v1283_v57  ;;  %v2057_v4 = vsel %vm1737_vm0, %v2036_v15, 0 }
 0x20c   :  { %7153 = vst [vmem:[#allocation66_spill] sm:$0xff] %v5957_v36  ;;  %v1657_v61 = vadd.f32 %v1656_v51, %v1303_v34  ;;  %4453 = vmatpush3.bf16.xpose.msra.mxu0 %v2060_v63  ;;  %4474 = vmatprep.mubr.msk.bf16.mxu1 %vm1737_vm0, %v5783_v1  ;;  %v1419_v51 = vadd.f32 %v7157_v20, %v7156_v48  ;;  %v7182_v48 = vld [vmem:[#allocation20_spill] sm:$0xff] }
 0x20d   :  { %4672 = vmatprep.subr.msk.bf16.mxu0 %vm1737_vm0, %v2036_v15  ;;  %v5980_v32 = vpack.c.bf16 %v1637_v55, %v1633_v23  ;;  %v6059_v15 = vpop.f32.mrf.mxu1  ;;  %v7163_v55 = vld [vmem:[#allocation37_spill] sm:$0xff] }
 0x20e   :  { %v5964_v29 = vpack.c.bf16 %v1657_v61, %v1653_v17  ;;  %v2034_v1 = vpop.permute.xlu1 %2033  ;;  %v7159_v17 = vld [vmem:[#allocation24_spill] sm:$0xff]  ;;  %7160 = vst [vmem:[#allocation13_spill] sm:$0xff] %v6059_v15 }
 0x20f   :  { %v2054_v58 = vsel %vm1737_vm0, %v2034_v1, 0  ;;  %v6054_v34 = vpack.c.bf16 %v1419_v51, %v7159_v17  ;;  %v7183_v51 = vld [vmem:[#allocation33_spill] sm:$0xff] }
 0x210   :  { %2443 = vrot.lane.b32.xlu1 %v5964_v29, %s5202_s1 }
 0x214   :  { %4455 = vmatpush3.bf16.xpose.msra.mxu0 %v2057_v4  ;;  %2441 = vrot.lane.b32.xlu1 %v5966_v8, %s5202_s1  ;;  %v7164_v4 = vld [vmem:[#allocation26_spill] sm:$0xff] }
 0x215   :  { %4673 = vmatprep.subr.msk.bf16.mxu0 %vm1737_vm0, %v2034_v1  ;;  %v1459_v1 = vadd.f32 %v7164_v4, %v7163_v55 }
 0x218   :  { %2439 = vrot.lane.b32.xlu1 %v5980_v32, %s5202_s1 }
 0x21c   :  { %4457 = vmatpush3.bf16.xpose.msra.mxu0 %v2054_v58  ;;  %2437 = vrot.lane.b32.xlu1 %v1689_v30, %s5202_s1 }
 0x222   :  { %v2141_v27 = vpop.permute.xlu0 %2140 }
 0x223   :  { %4459 = vmatmul.mubr.msk.bf16.vlgmr.msra.gmra.mxu0 %vm1737_vm0, %v5694_v43  ;;  %4674 = vmatprep.subr.msk.bf16.mxu1 %vm1737_vm0, %v2141_v27  ;;  %v2164_v5 = vsel %vm1737_vm0, %v2141_v27, 0 }
 0x224   :  { %4467 = vmatpush3.bf16.xpose.msra.mxu1 %v2164_v5  ;;  %4462 = vmatprep.mubr.msk.bf16.mxu0 %vm1737_vm0, %v5671_v44 }
 0x226   :  { %v2139_v3 = vpop.permute.xlu0 %2138 }
 0x227   :  { %4675 = vmatprep.subr.msk.bf16.mxu1 %vm1737_vm0, %v2139_v3  ;;  %v2161_v49 = vsel %vm1737_vm0, %v2139_v3, 0 }
 0x22a   :  { %v2137_v9 = vpop.permute.xlu0 %2136 }
 0x22b   :  { %4463 = vmatmul.mubr.msk.bf16.gmra.mxu0 %vm1737_vm0, %v5665_v0  ;;  %v2158_v43 = vsel %vm1737_vm0, %v2137_v9, 0 }
 0x22c   :  { %4469 = vmatpush3.bf16.xpose.msra.mxu1 %v2161_v49  ;;  %4490 = vmatprep.mubr.msk.bf16.mxu0 %vm1737_vm0, %v5871_v14 }
 0x22d   :  { %4676 = vmatprep.subr.msk.bf16.mxu1 %vm1737_vm0, %v2137_v9 }
 0x22e   :  { %v2135_v57 = vpop.permute.xlu0 %2134 }
 0x22f   :  { %v2155_v44 = vsel %vm1737_vm0, %v2135_v57, 0 }
 0x234   :  { %4471 = vmatpush3.bf16.xpose.msra.mxu1 %v2158_v43  ;;  %v7167_v43 = vld [vmem:[#allocation36_spill] sm:$0xff] }
 0x235   :  { %4677 = vmatprep.subr.msk.bf16.mxu1 %vm1737_vm0, %v2135_v57  ;;  %v1704_v57 = vpack.c.bf16 %v1459_v1, %v7167_v43  ;;  %v7186_v1 = vld [vmem:[#allocation28_spill] sm:$0xff] }
 0x23c   :  { %4473 = vmatpush3.bf16.xpose.msra.mxu1 %v2155_v44 }
 0x242   :  { %v2242_v47 = vpop.permute.xlu1 %2241 }
 0x243   :  { %4475 = vmatmul.mubr.msk.bf16.vlgmr.msra.gmra.mxu1 %vm1737_vm0, %v5770_v11  ;;  %4678 = vmatprep.subr.msk.bf16.mxu0 %vm1737_vm0, %v2242_v47  ;;  %v2265_v0 = vsel %vm1737_vm0, %v2242_v47, 0 }
 0x244   :  { %4478 = vmatprep.mubr.msk.bf16.mxu1 %vm1737_vm0, %v5747_v31  ;;  %4483 = vmatpush3.bf16.xpose.msra.mxu0 %v2265_v0 }
 0x246   :  { %v2240_v14 = vpop.permute.xlu1 %2239 }
 0x247   :  { %4679 = vmatprep.subr.msk.bf16.mxu0 %vm1737_vm0, %v2240_v14  ;;  %v2262_v52 = vsel %vm1737_vm0, %v2240_v14, 0 }
 0x24a   :  { %v2238_v7 = vpop.permute.xlu1 %2237 }
 0x24b   :  { %4479 = vmatmul.mubr.msk.bf16.gmra.mxu1 %vm1737_vm0, %v5740_v22  ;;  %v2259_v11 = vsel %vm1737_vm0, %v2238_v7, 0 }
 0x24c   :  { %4485 = vmatpush3.bf16.xpose.msra.mxu0 %v2262_v52  ;;  %4506 = vmatprep.mubr.msk.bf16.mxu1 %vm1737_vm0, %v5940_v33 }
 0x24d   :  { %4680 = vmatprep.subr.msk.bf16.mxu0 %vm1737_vm0, %v2238_v7 }
 0x24e   :  { %v2236_v31 = vpop.permute.xlu1 %2235 }
 0x24f   :  { %v2256_v21 = vsel %vm1737_vm0, %v2236_v31, 0 }
 0x254   :  { %4487 = vmatpush3.bf16.xpose.msra.mxu0 %v2259_v11 }
 0x255   :  { %4681 = vmatprep.subr.msk.bf16.mxu0 %vm1737_vm0, %v2236_v31 }
 0x25c   :  { %4489 = vmatpush3.bf16.xpose.msra.mxu0 %v2256_v21 }
 0x262   :  { %v2343_v37 = vpop.permute.xlu0 %2342 }
 0x263   :  { %4682 = vmatprep.subr.msk.bf16.mxu1 %vm1737_vm0, %v2343_v37  ;;  %v2366_v22 = vsel %vm1737_vm0, %v2343_v37, 0  ;;  %4491 = vmatmul.mubr.msk.bf16.vlgmr.msra.gmra.mxu0 %vm1737_vm0, %v5858_v16 }
 0x264   :  { %4499 = vmatpush3.bf16.xpose.msra.mxu1 %v2366_v22  ;;  %4494 = vmatprep.mubr.msk.bf16.mxu0 %vm1737_vm0, %v5834_v54 }
 0x266   :  { %v2341_v33 = vpop.permute.xlu0 %2340 }
 0x267   :  { %4683 = vmatprep.subr.msk.bf16.mxu1 %vm1737_vm0, %v2341_v33  ;;  %v2363_v18 = vsel %vm1737_vm0, %v2341_v33, 0  ;;  %v7174_v33 = vld [vmem:[#allocation34_spill] sm:$0xff] }
 0x26a   :  { %v2339_v12 = vpop.permute.xlu0 %2338 }
 0x26b   :  { %4495 = vmatmul.mubr.msk.bf16.gmra.mxu0 %vm1737_vm0, %v5828_v45  ;;  %v2360_v16 = vsel %vm1737_vm0, %v2339_v12, 0 }
 0x26c   :  { %4501 = vmatpush3.bf16.xpose.msra.mxu1 %v2363_v18  ;;  %4522 = vmatprep.mubr.msk.bf16.mxu0 %vm1737_vm0, %v1689_v30  ;;  %v7175_v18 = vld [vmem:[#allocation23_spill] sm:$0xff] }
 0x26d   :  { %4684 = vmatprep.subr.msk.bf16.mxu1 %vm1737_vm0, %v2339_v12  ;;  %v1449_v12 = vadd.f32 %v7175_v18, %v7174_v33 }
 0x26e   :  { %v2337_v56 = vpop.permute.xlu0 %2336 }
 0x26f   :  { %v2357_v54 = vsel %vm1737_vm0, %v2337_v56, 0 }
 0x274   :  { %4503 = vmatpush3.bf16.xpose.msra.mxu1 %v2360_v16 }
 0x275   :  { %4685 = vmatprep.subr.msk.bf16.mxu1 %vm1737_vm0, %v2337_v56 }
 0x27c   :  { %4505 = vmatpush3.bf16.xpose.msra.mxu1 %v2357_v54 }
 0x27d   :  { %4530 = vmatprep.subr.bf16.mxu1 %v5485_v13 }
 0x282   :  { %v2444_v10 = vpop.permute.xlu1 %2443 }
 0x283   :  { %4686 = vmatprep.subr.msk.bf16.mxu0 %vm1737_vm0, %v2444_v10  ;;  %4507 = vmatmul.mubr.msk.bf16.vlgmr.msra.gmra.mxu1 %vm1737_vm0, %v5934_v35  ;;  %v2467_v45 = vsel %vm1737_vm0, %v2444_v10, 0  ;;  %v2534_v35 = vlaneseq }
 0x284   :  { %4515 = vmatpush3.bf16.xpose.msra.mxu0 %v2467_v45  ;;  %4531 = vmatpush3.bf16.msra.mxu1 %v5485_v13  ;;  %v6114_v45 = vpop.f32.mrf.mxu0 }
 0x285   :  { %4532 = vmatprep.subr.bf16.mxu1 %v7154_v46  ;;  %4510 = vmatprep.mubr.msk.bf16.mxu1 %vm1737_vm0, %v5915_v2  ;;  %v7158_v2 = vld [vmem:[#allocation9_spill] sm:$0xff]  ;;  %v2535_v63 = vshrl.u32 %v2534_v35, 7  ;;  %v2544_v40 = vand.u32 127, %v2534_v35  ;;  %7176 = vst [vmem:[#allocation11_spill] sm:$0xff] %v6114_v45  ;;  %v7181_v35 = vld [vmem:[#allocation31_spill] sm:$0xff] }
 0x286   :  { %v2442_v19 = vpop.permute.xlu1 %2441  ;;  %v1439_v20 = vadd.f32 %v7182_v48, %v7181_v35 }
 0x287   :  { %4687 = vmatprep.subr.msk.bf16.mxu0 %vm1737_vm0, %v2442_v19  ;;  %v2464_v59 = vsel %vm1737_vm0, %v2442_v19, 0  ;;  %v2537_v24 = vadd.s32 16, %v2535_v63  ;;  %vm6068_vm2 = vcmp.le.s32.totalorder %v2544_v40, %v2535_v63  ;;  %v2538_v30 = vadd.s32 24, %v2535_v63 }
 0x288   :  { %4533 = vmatpush3.bf16.msra.mxu1 %v7154_v46  ;;  %v2536_v58 = vadd.s32 8, %v2535_v63  ;;  %v2541_v49 = vadd.s32 48, %v2535_v63  ;;  %v2539_v31 = vadd.s32 32, %v2535_v63  ;;  %v2542_v21 = vadd.s32 56, %v2535_v63 }
 0x289   :  { %4534 = vmatprep.subr.bf16.mxu1 %v7155_v6  ;;  %vm6061_vm1 = vcmp.le.s32.totalorder %v2544_v40, %v2537_v24  ;;  %vm6083_vm3 = vcmp.le.s32.totalorder %v2544_v40, %v2538_v30  ;;  %v2540_v54 = vadd.s32 40, %v2535_v63 }
 0x28a   :  { %v2440_v13 = vpop.permute.xlu1 %2439  ;;  %vm6088_vm4 = vcmp.le.s32.totalorder %v2544_v40, %v2536_v58  ;;  %vm6094_vm5 = vcmp.le.s32.totalorder %v2544_v40, %v2541_v49  ;;  %vm6116_vm6 = vcmp.le.s32.totalorder %v2544_v40, %v2539_v31  ;;  %vm6122_vm7 = vcmp.le.s32.totalorder %v2544_v40, %v2542_v21  ;;  %v7188_v58 = vld [vmem:[#allocation30_spill] sm:$0xff] }
 0x28b   :  { %4511 = vmatmul.mubr.msk.bf16.gmra.mxu1 %vm1737_vm0, %v5910_v39  ;;  %v2461_v39 = vsel %vm1737_vm0, %v2440_v13, 0  ;;  %vm6133_vm8 = vcmp.le.s32.totalorder %v2544_v40, %v2540_v54  ;;  %v7190_v54 = vld [vmem:[#allocation54_spill] sm:$0xff] }
 0x28c   :  { %4517 = vmatpush3.bf16.xpose.msra.mxu0 %v2464_v59  ;;  %4535 = vmatpush3.bf16.msra.mxu1 %v7155_v6 }
 0x28d   :  { %4536 = vmatprep.subr.bf16.mxu1 %v7158_v2  ;;  %4688 = vmatprep.subr.msk.bf16.mxu0 %vm1737_vm0, %v2440_v13  ;;  %v1703_v13 = vpack.c.bf16 %v1449_v12, %v7183_v51 }
 0x28e   :  { %v2438_v61 = vpop.permute.xlu1 %2437 }
 0x28f   :  { %v2458_v0 = vsel %vm1737_vm0, %v2438_v61, 0 }
 0x290   :  { %4537 = vmatpush3.bf16.msra.mxu1 %v7158_v2 }
 0x291   :  { %4546 = vmatprep.subr.bf16.mxu1 %v6054_v34 }
 0x294   :  { %4519 = vmatpush3.bf16.xpose.msra.mxu0 %v2461_v39 }
 0x295   :  { %4689 = vmatprep.subr.msk.bf16.mxu0 %vm1737_vm0, %v2438_v61 }
 0x297   :  { %v4412_v42 = vpop.f32.mrf.mxu1 }
 0x298   :  { %v6074_v27 = vsel %vm6061_vm1, %v4412_v42, -inf  ;;  %v7187_v42 = vld [vmem:[#allocation17_spill] sm:$0xff] }
 0x299   :  { %v1796_v5 = vpop.f32.mrf.mxu1  ;;  %v2639_v3 = vsel %vm1737_vm0, %v6074_v27, -inf  ;;  %v1429_v30 = vadd.f32 %v7187_v42, %v7186_v1 }
 0x29a   :  { %v6080_v9 = vsel %vm6068_vm2, %v1796_v5, -inf  ;;  %2640 = vmax.xlane.f32.xlu0 %v2639_v3  ;;  %v1702_v5 = vpack.c.bf16 %v1439_v20, %v7188_v58 }
 0x29b   :  { %v4413_v44 = vpop.f32.mrf.mxu1  ;;  %v2633_v7 = vsel %vm1737_vm0, %v6080_v9, -inf }
 0x29c   :  { %4521 = vmatpush3.bf16.xpose.msra.mxu0 %v2458_v0  ;;  %v6100_v37 = vsel %vm6083_vm3, %v4413_v44, -inf  ;;  %v7189_v0 = vld [vmem:[#allocation27_spill] sm:$0xff] }
 0x29d   :  { %v1799_v52 = vpop.f32.mrf.mxu1  ;;  %4562 = vmatprep.subr.bf16.mxu0 %v1704_v57  ;;  %v2642_v6 = vsel %vm1737_vm0, %v6100_v37, -inf }
 0x29e   :  { %v6104_v22 = vsel %vm6088_vm4, %v1799_v52, -inf  ;;  %2634 = vmax.xlane.f32.xlu0 %v2633_v7  ;;  %v1701_v52 = vpack.c.bf16 %v1429_v30, %v7189_v0 }
 0x29f   :  { %v4416_v16 = vpop.f32.mrf.mxu1  ;;  %v2636_v56 = vsel %vm1737_vm0, %v6104_v22, -inf }
 0x2a0   :  { %v6112_v10 = vsel %vm6094_vm5, %v4416_v16, -inf  ;;  %2637 = vmax.xlane.f32.xlu1 %v2636_v56 }
 0x2a1   :  { %v1812_v46 = vpop.f32.mrf.mxu1  ;;  %v2651_v17 = vsel %vm1737_vm0, %v6112_v10, -inf }
 0x2a2   :  { %2643 = vmax.xlane.f32.xlu0 %v2642_v6  ;;  %v6139_v39 = vsel %vm6116_vm6, %v1812_v46, -inf }
 0x2a3   :  { %v4417_v2 = vpop.f32.mrf.mxu1  ;;  %v4428_v63 = vpop.f32.mrf.mxu0  ;;  %4523 = vmatmul.mubr.msk.bf16.vlgmr.msra.gmra.mxu0 %vm1737_vm0, %v5980_v32  ;;  %v2645_v49 = vsel %vm1737_vm0, %v6139_v39, -inf }
 0x2a4   :  { %v6143_v61 = vsel %vm6122_vm7, %v4417_v2, -inf  ;;  %2652 = vmax.xlane.f32.xlu1 %v2651_v17  ;;  %4563 = vmatpush3.bf16.msra.mxu0 %v1704_v57  ;;  %v6160_v43 = vsel %vm6061_vm1, %v4428_v63, -inf }
 0x2a5   :  { %v1815_v55 = vpop.f32.mrf.mxu1  ;;  %v1897_v4 = vpop.f32.mrf.mxu0  ;;  %4564 = vmatprep.subr.bf16.mxu0 %v1703_v13  ;;  %v2654_v32 = vsel %vm1737_vm0, %v6143_v61, -inf  ;;  %4526 = vmatprep.mubr.msk.bf16.mxu0 %vm1737_vm0, %v5966_v8  ;;  %v2663_v31 = vsel %vm1737_vm0, %v6160_v43, -inf }
 0x2a6   :  { %v6151_v40 = vsel %vm6133_vm8, %v1815_v55, -inf  ;;  %2655 = vmax.xlane.f32.xlu0 %v2654_v32  ;;  %v6175_v21 = vsel %vm6068_vm2, %v1897_v4, -inf }
 0x2a7   :  { %v4429_v3 = vpop.f32.mrf.mxu0  ;;  %v2648_v57 = vsel %vm1737_vm0, %v6151_v40, -inf }
 0x2a8   :  { %2646 = vmax.xlane.f32.xlu1 %v2645_v49  ;;  %4565 = vmatpush3.bf16.msra.mxu0 %v1703_v13  ;;  %v6166_v44 = vsel %vm6083_vm3, %v4429_v3, -inf }
 0x2a9   :  { %v1900_v8 = vpop.f32.mrf.mxu0  ;;  %4566 = vmatprep.subr.bf16.mxu0 %v1702_v5  ;;  %v2666_v18 = vsel %vm1737_vm0, %v6166_v44, -inf }
 0x2aa   :  { %2649 = vmax.xlane.f32.xlu0 %v2648_v57  ;;  %v6181_v12 = vsel %vm6088_vm4, %v1900_v8, -inf }
 0x2ab   :  { %v4432_v7 = vpop.f32.mrf.mxu0  ;;  %4527 = vmatmul.mubr.msk.bf16.gmra.mxu0 %vm1737_vm0, %v5964_v29  ;;  %v2657_v29 = vsel %vm1737_vm0, %v6175_v21, -inf  ;;  %v2660_v46 = vsel %vm1737_vm0, %v6181_v12, -inf }
 0x2ac   :  { %4567 = vmatpush3.bf16.msra.mxu0 %v1702_v5  ;;  %2664 = vmax.xlane.f32.xlu1 %v2663_v31  ;;  %v6187_v56 = vsel %vm6094_vm5, %v4432_v7, -inf }
 0x2ad   :  { %v1913_v33 = vpop.f32.mrf.mxu0  ;;  %4568 = vmatprep.subr.bf16.mxu0 %v1701_v52  ;;  %v2675_v48 = vsel %vm1737_vm0, %v6187_v56, -inf }
 0x2ae   :  { %2667 = vmax.xlane.f32.xlu0 %v2666_v18  ;;  %v6200_v20 = vsel %vm6116_vm6, %v1913_v33, -inf }
 0x2af   :  { %v4433_v16 = vpop.f32.mrf.mxu0  ;;  %v2669_v2 = vsel %vm1737_vm0, %v6200_v20, -inf }
 0x2b0   :  { %4569 = vmatpush3.bf16.msra.mxu0 %v1701_v52  ;;  %2658 = vmax.xlane.f32.xlu1 %v2657_v29  ;;  %v6194_v6 = vsel %vm6122_vm7, %v4433_v16, -inf }
 0x2b1   :  { %4594 = vmatprep.subr.bf16.mxu0 %v7190_v54  ;;  %v1916_v35 = vpop.f32.mrf.mxu0  ;;  %v2678_v51 = vsel %vm1737_vm0, %v6194_v6, -inf }
 0x2b2   :  { %2661 = vmax.xlane.f32.xlu0 %v2660_v46  ;;  %v6206_v13 = vsel %vm6133_vm8, %v1916_v35, -inf }
 0x2b3   :  { %v2672_v63 = vsel %vm1737_vm0, %v6206_v13, -inf }
 0x2b4   :  { %2676 = vmax.xlane.f32.xlu1 %v2675_v48 }
 0x2b6   :  { %2679 = vmax.xlane.f32.xlu0 %v2678_v51 }
 0x2b8   :  { %2670 = vmax.xlane.f32.xlu1 %v2669_v2 }
 0x2ba   :  { %2673 = vmax.xlane.f32.xlu0 %v2672_v63 }
 0x2c3   :  { %v4444_v17 = vpop.f32.mrf.mxu1 }
 0x2c4   :  { %v6214_v55 = vsel %vm6061_vm1, %v4444_v17, -inf }
 0x2c5   :  { %v1998_v4 = vpop.f32.mrf.mxu1  ;;  %v2687_v32 = vsel %vm1737_vm0, %v6214_v55, -inf }
 0x2c6   :  { %v6220_v1 = vsel %vm6068_vm2, %v1998_v4, -inf  ;;  %2688 = vmax.xlane.f32.xlu1 %v2687_v32 }
 0x2c7   :  { %v4445_v42 = vpop.f32.mrf.mxu1  ;;  %v2681_v5 = vsel %vm1737_vm0, %v6220_v1, -inf }
 0x2c8   :  { %v6224_v30 = vsel %vm6083_vm3, %v4445_v42, -inf }
 0x2c9   :  { %v2001_v58 = vpop.f32.mrf.mxu1  ;;  %v2690_v3 = vsel %vm1737_vm0, %v6224_v30, -inf }
 0x2ca   :  { %v6232_v49 = vsel %vm6088_vm4, %v2001_v58, -inf  ;;  %2682 = vmax.xlane.f32.xlu1 %v2681_v5  ;;  %2691 = vmax.xlane.f32.xlu0 %v2690_v3 }
 0x2cb   :  { %v4448_v8 = vpop.f32.mrf.mxu1  ;;  %v2684_v7 = vsel %vm1737_vm0, %v6232_v49, -inf }
 0x2cc   :  { %v6236_v57 = vsel %vm6094_vm5, %v4448_v8, -inf }
 0x2cd   :  { %v2014_v0 = vpop.f32.mrf.mxu1  ;;  %v2699_v52 = vsel %vm1737_vm0, %v6236_v57, -inf }
 0x2ce   :  { %v6244_v31 = vsel %vm6116_vm6, %v2014_v0, -inf  ;;  %2700 = vmax.xlane.f32.xlu1 %v2699_v52  ;;  %2685 = vmax.xlane.f32.xlu0 %v2684_v7 }
 0x2cf   :  { %v4449_v33 = vpop.f32.mrf.mxu1  ;;  %v2693_v16 = vsel %vm1737_vm0, %v6244_v31, -inf }
 0x2d0   :  { %v6248_v18 = vsel %vm6122_vm7, %v4449_v33, -inf }
 0x2d1   :  { %v2702_v29 = vsel %vm1737_vm0, %v6248_v18, -inf  ;;  %v2017_v46 = vpop.f32.mrf.mxu1 }
 0x2d2   :  { %2694 = vmax.xlane.f32.xlu1 %v2693_v16  ;;  %2703 = vmax.xlane.f32.xlu0 %v2702_v29  ;;  %v6256_v35 = vsel %vm6133_vm8, %v2017_v46, -inf }
 0x2d3   :  { %v2696_v48 = vsel %vm1737_vm0, %v6256_v35, -inf }
 0x2d6   :  { %2697 = vmax.xlane.f32.xlu0 %v2696_v48 }
 0x2e3   :  { %v4460_v51 = vpop.f32.mrf.mxu0 }
 0x2e4   :  { %v6262_v2 = vsel %vm6061_vm1, %v4460_v51, -inf }
 0x2e5   :  { %v2099_v63 = vpop.f32.mrf.mxu0  ;;  %v2711_v17 = vsel %vm1737_vm0, %v6262_v2, -inf }
 0x2e6   :  { %v6268_v4 = vsel %vm6068_vm2, %v2099_v63, -inf  ;;  %2712 = vmax.xlane.f32.xlu1 %v2711_v17 }
 0x2e7   :  { %v4461_v32 = vpop.f32.mrf.mxu0  ;;  %v2705_v5 = vsel %vm1737_vm0, %v6268_v4, -inf }
 0x2e8   :  { %v6272_v42 = vsel %vm6083_vm3, %v4461_v32, -inf }
 0x2e9   :  { %v2102_v58 = vpop.f32.mrf.mxu0  ;;  %v2714_v3 = vsel %vm1737_vm0, %v6272_v42, -inf }
 0x2ea   :  { %v6280_v8 = vsel %vm6088_vm4, %v2102_v58, -inf  ;;  %2706 = vmax.xlane.f32.xlu1 %v2705_v5  ;;  %2715 = vmax.xlane.f32.xlu0 %v2714_v3 }
 0x2eb   :  { %v4464_v0 = vpop.f32.mrf.mxu0  ;;  %v2708_v33 = vsel %vm1737_vm0, %v6280_v8, -inf }
 0x2ec   :  { %v6284_v52 = vsel %vm6094_vm5, %v4464_v0, -inf }
 0x2ed   :  { %v2115_v7 = vpop.f32.mrf.mxu0  ;;  %v2723_v16 = vsel %vm1737_vm0, %v6284_v52, -inf }
 0x2ee   :  { %v6292_v29 = vsel %vm6116_vm6, %v2115_v7, -inf  ;;  %2709 = vmax.xlane.f32.xlu0 %v2708_v33  ;;  %2724 = vmax.xlane.f32.xlu1 %v2723_v16 }
 0x2ef   :  { %v4465_v46 = vpop.f32.mrf.mxu0  ;;  %v2717_v51 = vsel %vm1737_vm0, %v6292_v29, -inf }
 0x2f0   :  { %v6296_v48 = vsel %vm6122_vm7, %v4465_v46, -inf }
 0x2f1   :  { %v2726_v63 = vsel %vm1737_vm0, %v6296_v48, -inf  ;;  %v2118_v17 = vpop.f32.mrf.mxu0 }
 0x2f2   :  { %2718 = vmax.xlane.f32.xlu1 %v2717_v51  ;;  %2727 = vmax.xlane.f32.xlu0 %v2726_v63  ;;  %v6304_v32 = vsel %vm6133_vm8, %v2118_v17, -inf }
 0x2f3   :  { %v2720_v58 = vsel %vm1737_vm0, %v6304_v32, -inf }
 0x2f6   :  { %2721 = vmax.xlane.f32.xlu0 %v2720_v58 }
 0x303   :  { %v4476_v5 = vpop.f32.mrf.mxu1 }
 0x304   :  { %v6310_v3 = vsel %vm6061_vm1, %v4476_v5, -inf }
 0x305   :  { %v2200_v0 = vpop.f32.mrf.mxu1  ;;  %v2735_v7 = vsel %vm1737_vm0, %v6310_v3, -inf }
 0x306   :  { %v6316_v33 = vsel %vm6068_vm2, %v2200_v0, -inf  ;;  %2736 = vmax.xlane.f32.xlu1 %v2735_v7 }
 0x307   :  { %v4477_v16 = vpop.f32.mrf.mxu1  ;;  %v2729_v63 = vsel %vm1737_vm0, %v6316_v33, -inf }
 0x308   :  { %v6320_v46 = vsel %vm6083_vm3, %v4477_v16, -inf }
 0x309   :  { %v2203_v51 = vpop.f32.mrf.mxu1  ;;  %v2738_v17 = vsel %vm1737_vm0, %v6320_v46, -inf }
 0x30a   :  { %v6328_v58 = vsel %vm6088_vm4, %v2203_v51, -inf  ;;  %2730 = vmax.xlane.f32.xlu1 %v2729_v63  ;;  %2739 = vmax.xlane.f32.xlu0 %v2738_v17 }
 0x30b   :  { %v4480_v5 = vpop.f32.mrf.mxu1  ;;  %v2732_v25 = vsel %vm1737_vm0, %v6328_v58, -inf }
 0x30c   :  { %v6332_v0 = vsel %vm6094_vm5, %v4480_v5, -inf }
 0x30d   :  { %v2216_v7 = vpop.f32.mrf.mxu1  ;;  %v2747_v16 = vsel %vm1737_vm0, %v6332_v0, -inf }
 0x30e   :  { %v6340_v60 = vsel %vm6116_vm6, %v2216_v7, -inf  ;;  %2748 = vmax.xlane.f32.xlu1 %v2747_v16  ;;  %2733 = vmax.xlane.f32.xlu0 %v2732_v25 }
 0x30f   :  { %v4481_v51 = vpop.f32.mrf.mxu1  ;;  %v2741_v17 = vsel %vm1737_vm0, %v6340_v60, -inf }
 0x310   :  { %v6344_v63 = vsel %vm6122_vm7, %v4481_v51, -inf }
 0x311   :  { %v2750_v5 = vsel %vm1737_vm0, %v6344_v63, -inf  ;;  %v2219_v41 = vpop.f32.mrf.mxu1 }
 0x312   :  { %2742 = vmax.xlane.f32.xlu1 %v2741_v17  ;;  %2751 = vmax.xlane.f32.xlu0 %v2750_v5  ;;  %v6352_v7 = vsel %vm6133_vm8, %v2219_v41, -inf }
 0x313   :  { %v2744_v25 = vsel %vm1737_vm0, %v6352_v7, -inf }
 0x316   :  { %2745 = vmax.xlane.f32.xlu0 %v2744_v25 }
 0x323   :  { %v2641_v16 = vpop.xlane.xlu0 %2640 }
 0x324   :  { %v2827_v51 = vsub.f32 %v6074_v27, %v2641_v16 }
 0x326   :  { %v2893_v38 = vmul.f32 1.442695, %v2827_v51 }
 0x327   :  { %v2635_v62 = vpop.xlane.xlu0 %2634 }
 0x328   :  { %4898 = vpow2.f32 %v2893_v38  ;;  %v2825_v26 = vsub.f32 %v6080_v9, %v2635_v62 }
 0x329   :  { %v2638_v36 = vpop.xlane.xlu1 %2637 }
 0x32a   :  { %v2889_v15 = vmul.f32 1.442695, %v2825_v26  ;;  %v2826_v17 = vsub.f32 %v6104_v22, %v2638_v36 }
 0x32b   :  { %v2644_v5 = vpop.xlane.xlu0 %2643 }
 0x32c   :  { %4900 = vpow2.f32 %v2889_v15  ;;  %v2828_v41 = vsub.f32 %v6100_v37, %v2644_v5  ;;  %v2891_v53 = vmul.f32 1.442695, %v2826_v17  ;;  %v4492_v37 = vpop.f32.mrf.mxu0 }
 0x32d   :  { %v2653_v45 = vpop.xlane.xlu1 %2652 }
 0x32e   :  { %v2895_v54 = vmul.f32 1.442695, %v2828_v41  ;;  %v2831_v25 = vsub.f32 %v6112_v10, %v2653_v45  ;;  %v2301_v51 = vpop.f32.mrf.mxu0 }
 0x32f   :  { %v2656_v27 = vpop.xlane.xlu0 %2655  ;;  %v6382_v41 = vsel %vm6068_vm2, %v2301_v51, -inf }
 0x330   :  { %4902 = vpow2.f32 %v2895_v54  ;;  %v2901_v38 = vmul.f32 1.442695, %v2831_v25  ;;  %v2832_v26 = vsub.f32 %v6143_v61, %v2656_v27 }
 0x331   :  { %v2647_v16 = vpop.xlane.xlu1 %2646  ;;  %4904 = vpow2.f32 %v2891_v53  ;;  %v6371_v53 = vsel %vm6061_vm1, %v4492_v37, -inf }
 0x332   :  { %v2829_v62 = vsub.f32 %v6139_v39, %v2647_v16  ;;  %4906 = vpow2.f32 %v2901_v38  ;;  %v2903_v39 = vmul.f32 1.442695, %v2832_v26  ;;  %v2759_v5 = vsel %vm1737_vm0, %v6371_v53, -inf  ;;  %v4493_v16 = vpop.f32.mrf.mxu0 }
 0x333   :  { %v2650_v22 = vpop.xlane.xlu0 %2649 }
 0x334   :  { %v2897_v36 = vmul.f32 1.442695, %v2829_v62  ;;  %v2830_v54 = vsub.f32 %v6151_v40, %v2650_v22 }
 0x335   :  { %v6362_v9 = vpop.eup %4898  ;;  %v2665_v45 = vpop.xlane.xlu1 %2664 }
 0x336   :  { %v3023_v15 = vsel %vm1737_vm0, %v6362_v9, 0.0  ;;  %4908 = vpow2.f32 %v2897_v36  ;;  %v2899_v25 = vmul.f32 1.442695, %v2830_v54  ;;  %v2835_v27 = vsub.f32 %v6160_v43, %v2665_v45  ;;  %v2304_v45 = vpop.f32.mrf.mxu0 }
 0x337   :  { %3024 = vadd.xlane.f32.xlu1 %v3023_v15  ;;  %4910 = vpow2.f32 %v2903_v39  ;;  %v2668_v26 = vpop.xlane.xlu0 %2667  ;;  %v2753_v36 = vsel %vm1737_vm0, %v6382_v41, -inf  ;;  %v6393_v15 = vsel %vm6083_vm3, %v4493_v16, -inf }
 0x338   :  { %4912 = vpow2.f32 %v2899_v25  ;;  %v2909_v37 = vmul.f32 1.442695, %v2835_v27  ;;  %v2762_v54 = vsel %vm1737_vm0, %v6393_v15, -inf  ;;  %v2836_v51 = vsub.f32 %v6166_v44, %v2668_v26  ;;  %v4496_v25 = vpop.f32.mrf.mxu0 }
 0x339   :  { %v6367_v10 = vpop.eup %4900  ;;  %v2659_v62 = vpop.xlane.xlu1 %2658 }
 0x33a   :  { %v3017_v61 = vsel %vm1737_vm0, %v6367_v10, 0.0  ;;  %v2833_v43 = vsub.f32 %v6175_v21, %v2659_v62  ;;  %4914 = vpow2.f32 %v2909_v37  ;;  %v2911_v37 = vmul.f32 1.442695, %v2836_v51 }
 0x33b   :  { %3018 = vadd.xlane.f32.xlu1 %v3017_v61  ;;  %v6404_v61 = vsel %vm6088_vm4, %v2304_v45, -inf }
 0x33c   :  { %v2756_v62 = vsel %vm1737_vm0, %v6404_v61, -inf }
 0x33d   :  { %v6376_v17 = vpop.eup %4902  ;;  %v2677_v16 = vpop.xlane.xlu1 %2676 }
 0x33e   :  { %v3026_v40 = vsel %vm1737_vm0, %v6376_v17, 0.0  ;;  %v6387_v38 = vpop.eup %4904 }
 0x33f   :  { %3027 = vadd.xlane.f32.xlu0 %v3026_v40  ;;  %2760 = vmax.xlane.f32.xlu1 %v2759_v5  ;;  %v3020_v22 = vsel %vm1737_vm0, %v6387_v38, 0.0  ;;  %v6398_v39 = vpop.eup %4906  ;;  %v2905_v5 = vmul.f32 1.442695, %v2833_v43  ;;  %v2662_v40 = vpop.xlane.xlu0 %2661 }
 0x340   :  { %7191 = vst [vmem:[#allocation25_spill] sm:$0xff] %v6398_v39  ;;  %v3035_v21 = vsel %vm1737_vm0, %v6398_v39, 0.0  ;;  %v2834_v44 = vsub.f32 %v6181_v12, %v2662_v40  ;;  %v2317_v43 = vpop.f32.mrf.mxu0 }
 0x341   :  { %4916 = vpow2.f32 %v2905_v5  ;;  %v2839_v5 = vsub.f32 %v6187_v56, %v2677_v16 }
 0x342   :  { %4918 = vpow2.f32 %v2911_v37  ;;  %v2907_v51 = vmul.f32 1.442695, %v2834_v44  ;;  %v4497_v40 = vpop.f32.mrf.mxu0 }
 0x343   :  { %3021 = vadd.xlane.f32.xlu0 %v3020_v22  ;;  %2754 = vmax.xlane.f32.xlu1 %v2753_v36  ;;  %v6409_v27 = vpop.eup %4908  ;;  %v6415_v36 = vsel %vm6094_vm5, %v4496_v25, -inf  ;;  %v2671_v25 = vpop.xlane.xlu1 %2670  ;;  %v6442_v44 = vsel %vm6122_vm7, %v4497_v40, -inf }
 0x344   :  { %v3029_v26 = vsel %vm1737_vm0, %v6409_v27, 0.0  ;;  %v6420_v22 = vpop.eup %4910  ;;  %v2771_v45 = vsel %vm1737_vm0, %v6415_v36, -inf  ;;  %4920 = vpow2.f32 %v2907_v51  ;;  %v2837_v37 = vsub.f32 %v6200_v20, %v2671_v25 }
 0x345   :  { %v3038_v12 = vsel %vm1737_vm0, %v6420_v22, 0.0 }
 0x346   :  { %v2913_v51 = vmul.f32 1.442695, %v2837_v37 }
 0x347   :  { %3036 = vadd.xlane.f32.xlu1 %v3035_v21  ;;  %2763 = vmax.xlane.f32.xlu0 %v2762_v54  ;;  %v6426_v54 = vsel %vm6116_vm6, %v2317_v43, -inf  ;;  %v6431_v21 = vpop.eup %4912  ;;  %v2917_v43 = vmul.f32 1.442695, %v2839_v5  ;;  %v2774_v5 = vsel %vm1737_vm0, %v6442_v44, -inf }
 0x348   :  { %7192 = vst [vmem:[#allocation14_spill] sm:$0xff] %v6431_v21  ;;  %v3032_v56 = vsel %vm1737_vm0, %v6431_v21, 0.0  ;;  %v6438_v16 = vpop.eup %4914 }
 0x349   :  { %7193 = vst [vmem:[#allocation9_spill] sm:$0xff] %v6438_v16  ;;  %4922 = vpow2.f32 %v2917_v43  ;;  %v3047_v20 = vsel %vm1737_vm0, %v6438_v16, 0.0 }
 0x34a   :  { %4924 = vpow2.f32 %v2913_v51 }
 0x34b   :  { %3030 = vadd.xlane.f32.xlu1 %v3029_v26  ;;  %2757 = vmax.xlane.f32.xlu0 %v2756_v62  ;;  %v2680_v62 = vpop.xlane.xlu0 %2679  ;;  %v2765_v26 = vsel %vm1737_vm0, %v6426_v54, -inf }
 0x34e   :  { %v6451_v25 = vpop.eup %4916 }
 0x34f   :  { %3039 = vadd.xlane.f32.xlu0 %v3038_v12  ;;  %2772 = vmax.xlane.f32.xlu1 %v2771_v45  ;;  %v2320_v45 = vpop.f32.mrf.mxu0  ;;  %v2840_v12 = vsub.f32 %v6194_v6, %v2680_v62  ;;  %v6445_v50 = vpop.xlane.xlu1 %2688  ;;  %7194 = vst [vmem:[#allocation24_spill] sm:$0xff] %v6451_v25  ;;  %v3041_v37 = vsel %vm1737_vm0, %v6451_v25, 0.0 }
 0x350   :  { %v6455_v40 = vsel %vm6133_vm8, %v2320_v45, -inf  ;;  %v4508_v6 = vpop.f32.mrf.mxu1  ;;  %v6462_v16 = vpop.eup %4918 }
 0x351   :  { %v2919_v62 = vmul.f32 1.442695, %v2840_v12  ;;  %7195 = vst [vmem:[#allocation37_spill] sm:$0xff] %v6462_v16  ;;  %v6466_v45 = vsel %vm6061_vm1, %v4508_v6, -inf  ;;  %v6475_v25 = vpop.eup %4920 }
 0x352   :  { %7196 = vst [vmem:[#allocation26_spill] sm:$0xff] %v6475_v25 }
 0x353   :  { %3033 = vadd.xlane.f32.xlu0 %v3032_v56  ;;  %2766 = vmax.xlane.f32.xlu1 %v2765_v26  ;;  %v2674_v26 = vpop.xlane.xlu0 %2673  ;;  %v2768_v56 = vsel %vm1737_vm0, %v6455_v40, -inf  ;;  %v2683_v39 = vpop.xlane.xlu1 %2682  ;;  %4926 = vpow2.f32 %v2919_v62 }
 0x354   :  { %v2838_v43 = vsub.f32 %v6206_v13, %v2674_v26  ;;  %v2841_v51 = vsub.f32 %v6220_v1, %v2683_v39  ;;  %v3050_v26 = vsel %vm1737_vm0, %v6462_v16, 0.0  ;;  %v3044_v39 = vsel %vm1737_vm0, %v6475_v25, 0.0 }
 0x356   :  { %v2915_v13 = vmul.f32 1.442695, %v2838_v43  ;;  %v6485_v43 = vpop.eup %4922 }
 0x357   :  { %3048 = vadd.xlane.f32.xlu1 %v3047_v20  ;;  %2775 = vmax.xlane.f32.xlu0 %v2774_v5  ;;  %v2402_v20 = vpop.f32.mrf.mxu1  ;;  %v6468_v12 = vpop.xlane.xlu0 %2691  ;;  %v2783_v5 = vsel %vm1737_vm0, %v6466_v45, -inf  ;;  %7198 = vst [vmem:[#allocation34_spill] sm:$0xff] %v6485_v43 }
 0x358   :  { %v6479_v6 = vsel %vm6068_vm2, %v2402_v20, -inf  ;;  %4928 = vpow2.f32 %v2915_v13  ;;  %v6496_v25 = vpop.eup %4924 }
 0x359   :  { %7197 = vst [vmem:[#allocation36_spill] sm:$0xff] %v6479_v6  ;;  %v4509_v62 = vpop.f32.mrf.mxu1  ;;  %v2777_v1 = vsel %vm1737_vm0, %v6479_v6, -inf  ;;  %7200 = vst [vmem:[#allocation31_spill] sm:$0xff] %v6496_v25 }
 0x35b   :  { %3042 = vadd.xlane.f32.xlu1 %v3041_v37  ;;  %2769 = vmax.xlane.f32.xlu0 %v2768_v56  ;;  %v2921_v37 = vmul.f32 1.442695, %v2841_v51  ;;  %v2686_v56 = vpop.xlane.xlu0 %2685  ;;  %v2405_v20 = vpop.f32.mrf.mxu1  ;;  %v3059_v51 = vsel %vm1737_vm0, %v6485_v43, 0.0 }
 0x35c   :  { %v2842_v13 = vsub.f32 %v6232_v49, %v2686_v56  ;;  %v3053_v49 = vsel %vm1737_vm0, %v6496_v25, 0.0  ;;  %v2701_v43 = vpop.xlane.xlu1 %2700 }
 0x35d   :  { %4930 = vpow2.f32 %v2921_v37 }
 0x35e   :  { %v2923_v37 = vmul.f32 1.442695, %v2842_v13 }
 0x35f   :  { %2784 = vmax.xlane.f32.xlu1 %v2783_v5  ;;  %3051 = vadd.xlane.f32.xlu0 %v3050_v26  ;;  %v6489_v5 = vsel %vm6083_vm3, %v4509_v62, -inf  ;;  %v4512_v62 = vpop.f32.mrf.mxu1 }
 0x360   :  { %7199 = vst [vmem:[#allocation23_spill] sm:$0xff] %v6489_v5  ;;  %v2786_v26 = vsel %vm1737_vm0, %v6489_v5, -inf  ;;  %4932 = vpow2.f32 %v2923_v37  ;;  %v2695_v37 = vpop.xlane.xlu1 %2694  ;;  %v2704_v5 = vpop.xlane.xlu0 %2703 }
 0x363   :  { %2778 = vmax.xlane.f32.xlu1 %v2777_v1  ;;  %3045 = vadd.xlane.f32.xlu0 %v3044_v39  ;;  %v6500_v1 = vsel %vm6088_vm4, %v2405_v20, -inf  ;;  %v6502_v39 = vpop.eup %4926  ;;  %v4524_v20 = vpop.f32.mrf.mxu0 }
 0x364   :  { %7201 = vst [vmem:[#allocation20_spill] sm:$0xff] %v6500_v1  ;;  %7202 = vst [vmem:[#allocation33_spill] sm:$0xff] %v6502_v39  ;;  %v2780_v56 = vsel %vm1737_vm0, %v6500_v1, -inf  ;;  %v3062_v13 = vsel %vm1737_vm0, %v6502_v39, 0.0  ;;  %v2843_v1 = vsub.f32 %v6214_v55, %v6445_v50  ;;  %v2845_v50 = vsub.f32 %v6244_v31, %v2695_v37 }
 0x365   :  { %v6516_v25 = vpop.eup %4928  ;;  %v2844_v31 = vsub.f32 %v6224_v30, %v6468_v12  ;;  %v2847_v37 = vsub.f32 %v6236_v57, %v2701_v43 }
 0x366   :  { %7204 = vst [vmem:[#allocation17_spill] sm:$0xff] %v6516_v25  ;;  %v3056_v39 = vsel %vm1737_vm0, %v6516_v25, 0.0  ;;  %v2925_v21 = vmul.f32 1.442695, %v2843_v1  ;;  %v2698_v1 = vpop.xlane.xlu0 %2697 }
 0x367   :  { %3060 = vadd.xlane.f32.xlu1 %v3059_v51  ;;  %2787 = vmax.xlane.f32.xlu0 %v2786_v26  ;;  %v6510_v51 = vsel %vm6094_vm5, %v4512_v62, -inf  ;;  %v2418_v26 = vpop.f32.mrf.mxu1  ;;  %v2503_v62 = vpop.f32.mrf.mxu0  ;;  %v2927_v30 = vmul.f32 1.442695, %v2844_v31  ;;  %v2933_v57 = vmul.f32 1.442695, %v2847_v37  ;;  %v2846_v43 = vsub.f32 %v6256_v35, %v2698_v1 }
 0x368   :  { %7203 = vst [vmem:[#allocation28_spill] sm:$0xff] %v6510_v51  ;;  %v2795_v16 = vsel %vm1737_vm0, %v6510_v51, -inf  ;;  %4934 = vpow2.f32 %v2925_v21 }
 0x36a   :  { %v6528_v6 = vpop.eup %4930 }
 0x36b   :  { %3054 = vadd.xlane.f32.xlu1 %v3053_v49  ;;  %2781 = vmax.xlane.f32.xlu0 %v2780_v56  ;;  %v6520_v49 = vsel %vm6116_vm6, %v2418_v26, -inf  ;;  %v4513_v56 = vpop.f32.mrf.mxu1  ;;  %7206 = vst [vmem:[#allocation27_spill] sm:$0xff] %v6528_v6  ;;  %v3065_v25 = vsel %vm1737_vm0, %v6528_v6, 0.0 }
 0x36c   :  { %7205 = vst [vmem:[#allocation30_spill] sm:$0xff] %v6520_v49  ;;  %v2789_v51 = vsel %vm1737_vm0, %v6520_v49, -inf }
 0x36d   :  { %v2421_v26 = vpop.f32.mrf.mxu1 }
 0x36f   :  { %2796 = vmax.xlane.f32.xlu1 %v2795_v16  ;;  %3063 = vadd.xlane.f32.xlu0 %v3062_v13  ;;  %v6532_v16 = vsel %vm6122_vm7, %v4513_v56, -inf  ;;  %v4525_v13 = vpop.f32.mrf.mxu0  ;;  %v2713_v55 = vpop.xlane.xlu1 %2712 }
 0x370   :  { %7207 = vst [vmem:[#allocation67_spill] sm:$0xff] %v6532_v16  ;;  %v2798_v49 = vsel %vm1737_vm0, %v6532_v16, -inf  ;;  %v2929_v16 = vmul.f32 1.442695, %v2845_v50  ;;  %v2851_v50 = vsub.f32 %v6262_v2, %v2713_v55  ;;  %v2848_v2 = vsub.f32 %v6248_v18, %v2704_v5 }
 0x371   :  { %v2506_v56 = vpop.f32.mrf.mxu0 }
 0x372   :  { %4936 = vpow2.f32 %v2929_v16  ;;  %v2931_v16 = vmul.f32 1.442695, %v2846_v43  ;;  %v2935_v37 = vmul.f32 1.442695, %v2848_v2 }
 0x373   :  { %2790 = vmax.xlane.f32.xlu1 %v2789_v51  ;;  %3057 = vadd.xlane.f32.xlu0 %v3056_v39  ;;  %v6541_v39 = vsel %vm6133_vm8, %v2421_v26, -inf  ;;  %v6545_v51 = vsel %vm6061_vm1, %v4524_v20, -inf  ;;  %v6554_v26 = vpop.eup %4932  ;;  %v2707_v23 = vpop.xlane.xlu1 %2706  ;;  %v6558_v20 = vsel %vm6068_vm2, %v2503_v62, -inf  ;;  %4938 = vpow2.f32 %v2927_v30 }
 0x374   :  { %7208 = vst [vmem:[#allocation68_spill] sm:$0xff] %v6545_v51  ;;  %v2716_v21 = vpop.xlane.xlu0 %2715  ;;  %v4528_v12 = vpop.f32.mrf.mxu0  ;;  %v2801_v6 = vsel %vm1737_vm0, %v6558_v20, -inf  ;;  %v3068_v28 = vsel %vm1737_vm0, %v6554_v26, 0.0  ;;  %4940 = vpow2.f32 %v2933_v57  ;;  %v2849_v31 = vsub.f32 %v6268_v4, %v2707_v23 }
 0x375   :  { %v6572_v62 = vsel %vm6094_vm5, %v4528_v12, -inf  ;;  %4942 = vpow2.f32 %v2931_v16  ;;  %v6591_v14 = vpop.eup %4934 }
 0x376   :  { %v2519_v35 = vpop.f32.mrf.mxu0  ;;  %v2819_v11 = vsel %vm1737_vm0, %v6572_v62, -inf  ;;  %v3071_v43 = vsel %vm1737_vm0, %v6591_v14, 0.0 }
 0x377   :  { %3066 = vadd.xlane.f32.xlu1 %v3065_v25  ;;  %2799 = vmax.xlane.f32.xlu0 %v2798_v49  ;;  %v2792_v25 = vsel %vm1737_vm0, %v6541_v39, -inf  ;;  %v2807_v49 = vsel %vm1737_vm0, %v6545_v51, -inf  ;;  %v6566_v51 = vsel %vm6083_vm3, %v4525_v13, -inf  ;;  %v2725_v55 = vpop.xlane.xlu1 %2724  ;;  %v2941_v13 = vmul.f32 1.442695, %v2851_v50 }
 0x378   :  { %v2810_v47 = vsel %vm1737_vm0, %v6566_v51, -inf  ;;  %v2710_v1 = vpop.xlane.xlu0 %2709  ;;  %v6586_v18 = vsel %vm6116_vm6, %v2519_v35, -inf  ;;  %v4529_v5 = vpop.f32.mrf.mxu0 }
 0x379   :  { %4944 = vpow2.f32 %v2941_v13  ;;  %v2813_v23 = vsel %vm1737_vm0, %v6586_v18, -inf  ;;  %v6598_v30 = vsel %vm6122_vm7, %v4529_v5, -inf  ;;  %v2850_v57 = vsub.f32 %v6280_v8, %v2710_v1 }
 0x37a   :  { %4946 = vpow2.f32 %v2935_v37  ;;  %v2822_v59 = vsel %vm1737_vm0, %v6598_v30, -inf }
 0x37b   :  { %2793 = vmax.xlane.f32.xlu0 %v2792_v25  ;;  %2808 = vmax.xlane.f32.xlu1 %v2807_v49  ;;  %v2852_v25 = vsub.f32 %v6272_v42, %v2716_v21  ;;  %v2855_v49 = vsub.f32 %v6284_v52, %v2725_v55  ;;  %v2719_v19 = vpop.xlane.xlu1 %2718  ;;  %v2522_v21 = vpop.f32.mrf.mxu0  ;;  %v2939_v8 = vmul.f32 1.442695, %v2850_v57 }
 0x37c   :  { %v2728_v42 = vpop.xlane.xlu0 %2727  ;;  %v6610_v35 = vsel %vm6133_vm8, %v2522_v21, -inf }
 0x37d   :  { %v2943_v12 = vmul.f32 1.442695, %v2852_v25  ;;  %v2949_v50 = vmul.f32 1.442695, %v2855_v49  ;;  %v2856_v16 = vsub.f32 %v6296_v48, %v2728_v42  ;;  %v2816_v13 = vsel %vm1737_vm0, %v6610_v35, -inf }
 0x37f   :  { %3069 = vadd.xlane.f32.xlu0 %v3068_v28  ;;  %2802 = vmax.xlane.f32.xlu1 %v2801_v6  ;;  %v6580_v6 = vsel %vm6088_vm4, %v2506_v56, -inf  ;;  %v2937_v56 = vmul.f32 1.442695, %v2849_v31  ;;  %v6603_v52 = vpop.eup %4936  ;;  %v2853_v28 = vsub.f32 %v6292_v29, %v2719_v19 }
 0x380   :  { %v2804_v4 = vsel %vm1737_vm0, %v6580_v6, -inf  ;;  %v6612_v2 = vpop.eup %4938  ;;  %v2722_v29 = vpop.xlane.xlu0 %2721  ;;  %v3077_v31 = vsel %vm1737_vm0, %v6603_v52, 0.0 }
 0x381   :  { %4948 = vpow2.f32 %v2937_v56  ;;  %v6615_v55 = vpop.eup %4940  ;;  %v2854_v48 = vsub.f32 %v6304_v32, %v2722_v29 }
 0x382   :  { %4950 = vpow2.f32 %v2943_v12  ;;  %v6623_v5 = vpop.eup %4942  ;;  %v3083_v25 = vsel %vm1737_vm0, %v6615_v55, 0.0 }
 0x383   :  { %2811 = vmax.xlane.f32.xlu0 %v2810_v47  ;;  %2820 = vmax.xlane.f32.xlu1 %v2819_v11  ;;  %4952 = vpow2.f32 %v2949_v50  ;;  %v2945_v47 = vmul.f32 1.442695, %v2853_v28  ;;  %v2951_v11 = vmul.f32 1.442695, %v2856_v16  ;;  %v2947_v32 = vmul.f32 1.442695, %v2854_v48 }
 0x384   :  { %4954 = vpow2.f32 %v2939_v8  ;;  %v3080_v57 = vsel %vm1737_vm0, %v6623_v5, 0.0 }
 0x385   :  { %4956 = vpow2.f32 %v2945_v47 }
 0x386   :  { %v6629_v56 = vpop.eup %4944  ;;  %4958 = vpow2.f32 %v2951_v11 }
 0x387   :  { %2805 = vmax.xlane.f32.xlu0 %v2804_v4  ;;  %2814 = vmax.xlane.f32.xlu1 %v2813_v23  ;;  %v3074_v4 = vsel %vm1737_vm0, %v6612_v2, 0.0  ;;  %v6633_v42 = vpop.eup %4946  ;;  %v3095_v12 = vsel %vm1737_vm0, %v6629_v56, 0.0 }
 0x388   :  { %v3086_v29 = vsel %vm1737_vm0, %v6633_v42, 0.0 }
 0x38b   :  { %3072 = vadd.xlane.f32.xlu1 %v3071_v43  ;;  %2823 = vmax.xlane.f32.xlu0 %v2822_v59 }
 0x38e   :  { %v6639_v43 = vpop.eup %4948 }
 0x38f   :  { %v2737_v24 = vpop.xlane.xlu1 %2736  ;;  %3078 = vadd.xlane.f32.xlu1 %v3077_v31  ;;  %2817 = vmax.xlane.f32.xlu0 %v2816_v13  ;;  %v6643_v8 = vpop.eup %4950  ;;  %v3089_v47 = vsel %vm1737_vm0, %v6639_v43, 0.0 }
 0x390   :  { %v2859_v1 = vsub.f32 %v6310_v3, %v2737_v24  ;;  %v6649_v13 = vpop.eup %4952 }
 0x391   :  { %v6654_v11 = vpop.eup %4954 }
 0x392   :  { %v2957_v37 = vmul.f32 1.442695, %v2859_v1  ;;  %v3098_v1 = vsel %vm1737_vm0, %v6643_v8, 0.0 }
 0x393   :  { %v2731_v49 = vpop.xlane.xlu1 %2730  ;;  %v2740_v23 = vpop.xlane.xlu0 %2739  ;;  %3084 = vadd.xlane.f32.xlu1 %v3083_v25  ;;  %3075 = vadd.xlane.f32.xlu0 %v3074_v4  ;;  %v3107_v25 = vsel %vm1737_vm0, %v6649_v13, 0.0 }
 0x394   :  { %v2857_v3 = vsub.f32 %v6316_v33, %v2731_v49  ;;  %v2860_v19 = vsub.f32 %v6320_v46, %v2740_v23  ;;  %4960 = vpow2.f32 %v2957_v37  ;;  %v6659_v4 = vpop.eup %4956 }
 0x395   :  { %4962 = vpow2.f32 %v2947_v32  ;;  %v6663_v23 = vpop.eup %4958 }
 0x396   :  { %v2953_v21 = vmul.f32 1.442695, %v2857_v3  ;;  %v2959_v46 = vmul.f32 1.442695, %v2860_v19 }
 0x397   :  { %v2749_v50 = vpop.xlane.xlu1 %2748  ;;  %v2734_v28 = vpop.xlane.xlu0 %2733  ;;  %3096 = vadd.xlane.f32.xlu1 %v3095_v12  ;;  %3081 = vadd.xlane.f32.xlu0 %v3080_v57 }
 0x398   :  { %v2863_v33 = vsub.f32 %v6332_v0, %v2749_v50  ;;  %v2858_v59 = vsub.f32 %v6328_v58, %v2734_v28  ;;  %4964 = vpow2.f32 %v2953_v21  ;;  %v3110_v50 = vsel %vm1737_vm0, %v6663_v23, 0.0 }
 0x399   :  { %4966 = vpow2.f32 %v2959_v46 }
 0x39a   :  { %v2965_v16 = vmul.f32 1.442695, %v2863_v33  ;;  %v2955_v58 = vmul.f32 1.442695, %v2858_v59 }
 0x39b   :  { %v2743_v31 = vpop.xlane.xlu1 %2742  ;;  %v2752_v24 = vpop.xlane.xlu0 %2751  ;;  %3090 = vadd.xlane.f32.xlu1 %v3089_v47  ;;  %3087 = vadd.xlane.f32.xlu0 %v3086_v29 }
 0x39c   :  { %v2861_v0 = vsub.f32 %v6340_v60, %v2743_v31  ;;  %4968 = vpow2.f32 %v2965_v16  ;;  %v2864_v37 = vsub.f32 %v6344_v63, %v2752_v24  ;;  %v3092_v60 = vsel %vm1737_vm0, %v6654_v11, 0.0 }
 0x39d   :  { %4970 = vpow2.f32 %v2955_v58  ;;  %v3101_v63 = vsel %vm1737_vm0, %v6659_v4, 0.0 }
 0x39e   :  { %v2961_v48 = vmul.f32 1.442695, %v2861_v0  ;;  %v2967_v3 = vmul.f32 1.442695, %v2864_v37 }
 0x39f   :  { %v2746_v49 = vpop.xlane.xlu0 %2745  ;;  %3108 = vadd.xlane.f32.xlu1 %v3107_v25  ;;  %3099 = vadd.xlane.f32.xlu0 %v3098_v1 }
 0x3a0   :  { %4972 = vpow2.f32 %v2961_v48  ;;  %v2862_v32 = vsub.f32 %v6352_v7, %v2746_v49 }
 0x3a1   :  { %v6668_v19 = vpop.eup %4960  ;;  %4974 = vpow2.f32 %v2967_v3 }
 0x3a2   :  { %v6670_v21 = vpop.eup %4962  ;;  %v2963_v12 = vmul.f32 1.442695, %v2862_v32  ;;  %v3119_v57 = vsel %vm1737_vm0, %v6668_v19, 0.0 }
 0x3a3   :  { %3102 = vadd.xlane.f32.xlu1 %v3101_v63  ;;  %3093 = vadd.xlane.f32.xlu0 %v3092_v60  ;;  %v3104_v46 = vsel %vm1737_vm0, %v6670_v21, 0.0 }
 0x3a4   :  { %4976 = vpow2.f32 %v2963_v12 }
 0x3a5   :  { %v6676_v28 = vpop.eup %4964 }
 0x3a6   :  { %v6678_v7 = vpop.eup %4966  ;;  %v3113_v33 = vsel %vm1737_vm0, %v6676_v28, 0.0 }
 0x3a7   :  { %3120 = vadd.xlane.f32.xlu1 %v3119_v57  ;;  %3111 = vadd.xlane.f32.xlu0 %v3110_v50  ;;  %v3122_v29 = vsel %vm1737_vm0, %v6678_v7, 0.0 }
 0x3a9   :  { %v6684_v59 = vpop.eup %4968 }
 0x3aa   :  { %v6686_v16 = vpop.eup %4970  ;;  %v3131_v47 = vsel %vm1737_vm0, %v6684_v59, 0.0 }
 0x3ab   :  { %3114 = vadd.xlane.f32.xlu1 %v3113_v33  ;;  %3105 = vadd.xlane.f32.xlu0 %v3104_v46  ;;  %v3116_v0 = vsel %vm1737_vm0, %v6686_v16, 0.0 }
 0x3ad   :  { %v6692_v31 = vpop.eup %4972 }
 0x3ae   :  { %v3125_v24 = vsel %vm1737_vm0, %v6692_v31, 0.0  ;;  %v6698_v58 = vpop.eup %4974 }
 0x3af   :  { %3132 = vadd.xlane.f32.xlu1 %v3131_v47  ;;  %3123 = vadd.xlane.f32.xlu0 %v3122_v29  ;;  %v3134_v1 = vsel %vm1737_vm0, %v6698_v58, 0.0 }
 0x3b1   :  { %v6702_v48 = vpop.eup %4976 }
 0x3b2   :  { %v3128_v37 = vsel %vm1737_vm0, %v6702_v48, 0.0 }
 0x3b3   :  { %3126 = vadd.xlane.f32.xlu1 %v3125_v24  ;;  %3117 = vadd.xlane.f32.xlu0 %v3116_v0 }
 0x3b7   :  { %3135 = vadd.xlane.f32.xlu0 %v3134_v1 }
 0x3bb   :  { %3129 = vadd.xlane.f32.xlu0 %v3128_v37 }
 0x3c0   :  { %v3025_v25 = vpop.xlane.xlu1 %3024 }
 0x3c1   :  { %4978 = vrcp.f32 %v3025_v25 }
 0x3c4   :  { %v3019_v49 = vpop.xlane.xlu1 %3018 }
 0x3c8   :  { %v3028_v60 = vpop.xlane.xlu0 %3027  ;;  %v2761_v3 = vpop.xlane.xlu1 %2760 }
 0x3c9   :  { %v2867_v32 = vsub.f32 %v6371_v53, %v2761_v3  ;;  %4980 = vrcp.f32 %v3028_v60 }
 0x3ca   :  { %4982 = vrcp.f32 %v3019_v49 }
 0x3cb   :  { %v2973_v63 = vmul.f32 1.442695, %v2867_v32 }
 0x3cc   :  { %v3022_v12 = vpop.xlane.xlu0 %3021  ;;  %v2755_v57 = vpop.xlane.xlu1 %2754 }
 0x3cd   :  { %4984 = vpow2.f32 %v2973_v63  ;;  %v2865_v50 = vsub.f32 %v6382_v41, %v2755_v57 }
 0x3ce   :  { %4986 = vrcp.f32 %v3022_v12  ;;  %v4979_v37 = vpop.eup %4978 }
 0x3cf   :  { %v2969_v33 = vmul.f32 1.442695, %v2865_v50 }
 0x3d0   :  { %v3037_v46 = vpop.xlane.xlu1 %3036  ;;  %v2764_v47 = vpop.xlane.xlu0 %2763 }
 0x3d1   :  { %4988 = vpow2.f32 %v2969_v33  ;;  %v2868_v29 = vsub.f32 %v6393_v15, %v2764_v47 }
 0x3d3   :  { %v2975_v24 = vmul.f32 1.442695, %v2868_v29 }
 0x3d4   :  { %v3031_v0 = vpop.xlane.xlu1 %3030  ;;  %v2758_v1 = vpop.xlane.xlu0 %2757 }
 0x3d5   :  { %4990 = vpow2.f32 %v2975_v24  ;;  %v2866_v53 = vsub.f32 %v6404_v61, %v2758_v1  ;;  %v7210_v24 = vld [vmem:[#allocation12_spill] sm:$0xff] }
 0x3d6   :  { %v4981_v49 = vpop.eup %4980 }
 0x3d7   :  { %v2971_v25 = vmul.f32 1.442695, %v2866_v53  ;;  %v4983_v32 = vpop.eup %4982  ;;  %v3276_v15 = vmul.f32 %v4981_v49, %v6376_v17 }
 0x3d8   :  { %v3040_v60 = vpop.xlane.xlu0 %3039  ;;  %v2773_v3 = vpop.xlane.xlu1 %2772  ;;  %v3273_v47 = vmul.f32 %v4983_v32, %v6367_v10  ;;  %v7212_v32 = vld [vmem:[#allocation10_spill] sm:$0xff] }
 0x3d9   :  { %4992 = vpow2.f32 %v2971_v25  ;;  %v2871_v41 = vsub.f32 %v6415_v36, %v2773_v3  ;;  %v7209_v36 = vld [vmem:[#allocation22_spill] sm:$0xff]  ;;  %v7211_v3 = vld [vmem:[#allocation19_spill] sm:$0xff] }
 0x3da   :  { %v6711_v63 = vpop.eup %4984  ;;  %4994 = vrcp.f32 %v3037_v46  ;;  %v1409_v1 = vadd.f32 %v7210_v24, %v7209_v36  ;;  %v3275_v46 = vmul.f32 %v4979_v37, %v6362_v9  ;;  %v1399_v9 = vadd.f32 %v7212_v32, %v7211_v3  ;;  %v7213_v37 = vld [vmem:[#allocation21_spill] sm:$0xff]  ;;  %v7216_v36 = vld [vmem:[#allocation18_spill] sm:$0xff]  ;;  %v7218_v32 = vld [vmem:[#allocation48_spill] sm:$0xff] }
 0x3db   :  { %v4987_v12 = vpop.eup %4986  ;;  %4996 = vrcp.f32 %v3040_v60  ;;  %v2981_v57 = vmul.f32 1.442695, %v2871_v41  ;;  %v3143_v61 = vsel %vm1737_vm0, %v6711_v63, 0.0 }
 0x3dc   :  { %4998 = vrcp.f32 %v3031_v0  ;;  %v3034_v50 = vpop.xlane.xlu0 %3033  ;;  %v2767_v33 = vpop.xlane.xlu1 %2766  ;;  %3144 = vadd.xlane.f32.xlu1 %v3143_v61  ;;  %v3274_v29 = vmul.f32 %v4987_v12, %v6387_v38  ;;  %v3338_v0 = vpack.c.bf16 %v3276_v15, %v3275_v46  ;;  %v1699_v41 = vpack.c.bf16 %v1409_v1, %v7213_v37 }
 0x3dd   :  { %5000 = vpow2.f32 %v2981_v57  ;;  %v2869_v17 = vsub.f32 %v6426_v54, %v2767_v33  ;;  %v7214_v33 = vld [vmem:[#allocation16_spill] sm:$0xff]  ;;  %v1698_v24 = vpack.c.bf16 %v1399_v9, %v7216_v36  ;;  %v7219_v9 = vld [vmem:[#allocation38_spill] sm:$0xff] }
 0x3de   :  { %v6722_v53 = vpop.eup %4988  ;;  %5002 = vrcp.f32 %v3034_v50  ;;  %v3337_v25 = vpack.c.bf16 %v3274_v29, %v3273_v47  ;;  %v7215_v47 = vld [vmem:[#allocation8_spill] sm:$0xff]  ;;  %v1499_v37 = vadd.f32 %v7219_v9, %v7218_v32 }
 0x3df   :  { %v2977_v49 = vmul.f32 1.442695, %v2869_v17  ;;  %v3137_v60 = vsel %vm1737_vm0, %v6722_v53, 0.0  ;;  %v1389_v29 = vadd.f32 %v7215_v47, %v7214_v33 }
 0x3e0   :  { %4538 = vmatprep.mubr.msk.bf16.mxu1 %vm1737_vm0, %v3337_v25  ;;  %v3049_v10 = vpop.xlane.xlu1 %3048  ;;  %v2776_v38 = vpop.xlane.xlu0 %2775  ;;  %3138 = vadd.xlane.f32.xlu1 %v3137_v60 }
 0x3e1   :  { %5004 = vpow2.f32 %v2977_v49  ;;  %4539 = vmatmul.mubr.msk.bf16.vlgmr.msra.gmra.mxu1 %vm1737_vm0, %v3338_v0  ;;  %v2872_v54 = vsub.f32 %v6442_v44, %v2776_v38  ;;  %v7217_v38 = vld [vmem:[#allocation15_spill] sm:$0xff] }
 0x3e2   :  { %v6732_v12 = vpop.eup %4990  ;;  %4547 = vmatpush3.bf16.msra.mxu1 %v6054_v34  ;;  %v1697_v3 = vpack.c.bf16 %v1389_v29, %v7217_v38 }
 0x3e3   :  { %v2983_v15 = vmul.f32 1.442695, %v2872_v54  ;;  %4548 = vmatprep.subr.bf16.mxu1 %v1699_v41  ;;  %v3146_v57 = vsel %vm1737_vm0, %v6732_v12, 0.0 }
 0x3e4   :  { %v3043_v61 = vpop.xlane.xlu1 %3042  ;;  %v2770_v50 = vpop.xlane.xlu0 %2769  ;;  %3147 = vadd.xlane.f32.xlu0 %v3146_v57 }
 0x3e5   :  { %5006 = vpow2.f32 %v2983_v15  ;;  %v2870_v44 = vsub.f32 %v6455_v40, %v2770_v50 }
 0x3e6   :  { %v6741_v1 = vpop.eup %4992  ;;  %4549 = vmatpush3.bf16.msra.mxu1 %v1699_v41 }
 0x3e7   :  { %v4995_v34 = vpop.eup %4994  ;;  %v2979_v46 = vmul.f32 1.442695, %v2870_v44  ;;  %4550 = vmatprep.subr.bf16.mxu1 %v1698_v24  ;;  %v3140_v17 = vsel %vm1737_vm0, %v6741_v1, 0.0  ;;  %v7221_v44 = vld [vmem:[#allocation47_spill] sm:$0xff] }
 0x3e8   :  { %v4997_v25 = vpop.eup %4996  ;;  %v2785_v0 = vpop.xlane.xlu1 %2784  ;;  %3141 = vadd.xlane.f32.xlu0 %v3140_v17  ;;  %v7223_v17 = vld [vmem:[#allocation25_spill] sm:$0xff] }
 0x3e9   :  { %v3052_v49 = vpop.xlane.xlu0 %3051  ;;  %v4999_v60 = vpop.eup %4998  ;;  %5008 = vpow2.f32 %v2979_v46  ;;  %v2875_v40 = vsub.f32 %v6466_v45, %v2785_v0  ;;  %v3280_v50 = vmul.f32 %v4997_v25, %v6420_v22  ;;  %v7220_v45 = vld [vmem:[#allocation14_spill] sm:$0xff]  ;;  %v3279_v0 = vmul.f32 %v4995_v34, %v7223_v17  ;;  %v7224_v34 = vld [vmem:[#allocation23_spill] sm:$0xff] }
 0x3ea   :  { %v6749_v41 = vpop.eup %5000  ;;  %5010 = vrcp.f32 %v3049_v10  ;;  %4551 = vmatpush3.bf16.msra.mxu1 %v1698_v24  ;;  %v3277_v29 = vmul.f32 %v4999_v60, %v6409_v27  ;;  %v6757_v10 = vpack.c.bf16 %v1499_v37, %v7221_v44  ;;  %v7222_v24 = vld [vmem:[#allocation36_spill] sm:$0xff] }
 0x3eb   :  { %v5003_v54 = vpop.eup %5002  ;;  %v2989_v15 = vmul.f32 1.442695, %v2875_v40  ;;  %5012 = vrcp.f32 %v3052_v49  ;;  %4552 = vmatprep.subr.bf16.mxu1 %v1697_v3  ;;  %v3155_v57 = vsel %vm1737_vm0, %v6749_v41, 0.0  ;;  %v3340_v25 = vpack.c.bf16 %v3280_v50, %v3279_v0  ;;  %v7227_v0 = vld [vmem:[#allocation37_spill] sm:$0xff] }
 0x3ec   :  { %5014 = vrcp.f32 %v3043_v61  ;;  %v2779_v33 = vpop.xlane.xlu1 %2778  ;;  %3156 = vadd.xlane.f32.xlu1 %v3155_v57  ;;  %v3278_v36 = vmul.f32 %v5003_v54, %v7220_v45 }
 0x3ed   :  { %v3046_v47 = vpop.xlane.xlu0 %3045  ;;  %5016 = vpow2.f32 %v2989_v15  ;;  %v2873_v46 = vsub.f32 %v7222_v24, %v2779_v33  ;;  %v7225_v15 = vld [vmem:[#allocation20_spill] sm:$0xff] }
 0x3ee   :  { %v6761_v49 = vpop.eup %5004  ;;  %4553 = vmatpush3.bf16.msra.mxu1 %v1697_v3  ;;  %5018 = vrcp.f32 %v3046_v47  ;;  %v3339_v22 = vpack.c.bf16 %v3278_v36, %v3277_v29 }
 0x3ef   :  { %v2985_v61 = vmul.f32 1.442695, %v2873_v46  ;;  %4578 = vmatprep.subr.bf16.mxu1 %v6757_v10  ;;  %v3149_v27 = vsel %vm1737_vm0, %v6761_v49, 0.0 }
 0x3f0   :  { %4542 = vmatprep.mubr.msk.bf16.mxu1 %vm1737_vm0, %v3339_v22  ;;  %v3061_v60 = vpop.xlane.xlu1 %3060  ;;  %3150 = vadd.xlane.f32.xlu1 %v3149_v27 }
 0x3f1   :  { %v2788_v38 = vpop.xlane.xlu0 %2787  ;;  %5020 = vpow2.f32 %v2985_v61  ;;  %4543 = vmatmul.mubr.msk.bf16.gmra.mxu1 %vm1737_vm0, %v3340_v25 }
 0x3f2   :  { %v2876_v32 = vsub.f32 %v7224_v34, %v2788_v38  ;;  %v6769_v3 = vpop.eup %5006  ;;  %v7228_v38 = vld [vmem:[#allocation24_spill] sm:$0xff] }
 0x3f3   :  { %v3158_v37 = vsel %vm1737_vm0, %v6769_v3, 0.0 }
 0x3f4   :  { %v2991_v9 = vmul.f32 1.442695, %v2876_v32  ;;  %v3055_v40 = vpop.xlane.xlu1 %3054  ;;  %3159 = vadd.xlane.f32.xlu0 %v3158_v37  ;;  %v7229_v32 = vld [vmem:[#allocation26_spill] sm:$0xff] }
 0x3f5   :  { %v2782_v54 = vpop.xlane.xlu0 %2781  ;;  %v7230_v37 = vld [vmem:[#allocation46_spill] sm:$0xff] }
 0x3f6   :  { %5022 = vpow2.f32 %v2991_v9  ;;  %v2874_v57 = vsub.f32 %v7225_v15, %v2782_v54  ;;  %v6774_v50 = vpop.eup %5008  ;;  %v7231_v54 = vld [vmem:[#allocation35_spill] sm:$0xff] }
 0x3f7   :  { %v5011_v33 = vpop.eup %5010  ;;  %v3152_v29 = vsel %vm1737_vm0, %v6774_v50, 0.0  ;;  %v1489_v15 = vadd.f32 %v7231_v54, %v7230_v37  ;;  %v7238_v37 = vld [vmem:[#allocation40_spill] sm:$0xff]  ;;  %v7239_v54 = vld [vmem:[#allocation29_spill] sm:$0xff] }
 0x3f8   :  { %v2987_v47 = vmul.f32 1.442695, %v2874_v57  ;;  %v5013_v45 = vpop.eup %5012  ;;  %v6778_v36 = vpop.xlane.xlu1 %2796  ;;  %3153 = vadd.xlane.f32.xlu0 %v3152_v29  ;;  %v7232_v57 = vld [vmem:[#allocation9_spill] sm:$0xff]  ;;  %v7233_v29 = vld [vmem:[#allocation30_spill] sm:$0xff] }
 0x3f9   :  { %v3064_v44 = vpop.xlane.xlu0 %3063  ;;  %v5015_v24 = vpop.eup %5014  ;;  %v3284_v22 = vmul.f32 %v5013_v45, %v7227_v0 }
 0x3fa   :  { %5024 = vpow2.f32 %v2987_v47  ;;  %v6780_v46 = vpop.eup %5016  ;;  %v3281_v34 = vmul.f32 %v5015_v24, %v7228_v38  ;;  %v3283_v47 = vmul.f32 %v5011_v33, %v7232_v57  ;;  %v7235_v38 = vld [vmem:[#allocation43_spill] sm:$0xff]  ;;  %v7236_v33 = vld [vmem:[#allocation32_spill] sm:$0xff]  ;;  %v1469_v57 = vadd.f32 %v7239_v54, %v7238_v37 }
 0x3fb   :  { %7226 = vst [vmem:[#allocation22_spill] sm:$0xff] %v6780_v46  ;;  %v5019_v17 = vpop.eup %5018  ;;  %5026 = vrcp.f32 %v3064_v44  ;;  %v3167_v61 = vsel %vm1737_vm0, %v6780_v46, 0.0 }
 0x3fc   :  { %5028 = vrcp.f32 %v3055_v40  ;;  %v2791_v25 = vpop.xlane.xlu1 %2790  ;;  %3168 = vadd.xlane.f32.xlu1 %v3167_v61  ;;  %v3282_v9 = vmul.f32 %v5019_v17, %v7229_v32  ;;  %v3342_v40 = vpack.c.bf16 %v3284_v22, %v3283_v47  ;;  %v7237_v32 = vld [vmem:[#allocation45_spill] sm:$0xff]  ;;  %v7240_v47 = vld [vmem:[#allocation42_spill] sm:$0xff] }
 0x3fd   :  { %v3058_v27 = vpop.xlane.xlu0 %3057  ;;  %5030 = vrcp.f32 %v3061_v60  ;;  %v2877_v45 = vsub.f32 %v7233_v29, %v2791_v25  ;;  %v1479_v60 = vadd.f32 %v7236_v33, %v7235_v38  ;;  %v1707_v25 = vpack.c.bf16 %v1489_v15, %v7237_v32  ;;  %v7241_v15 = vld [vmem:[#allocation68_spill] sm:$0xff] }
 0x3fe   :  { %v6791_v44 = vpop.eup %5020  ;;  %5032 = vrcp.f32 %v3058_v27  ;;  %v3341_v0 = vpack.c.bf16 %v3282_v9, %v3281_v34  ;;  %v7243_v33 = vld [vmem:[#allocation28_spill] sm:$0xff] }
 0x3ff   :  { %7234 = vst [vmem:[#allocation12_spill] sm:$0xff] %v6791_v44  ;;  %v2993_v46 = vmul.f32 1.442695, %v2877_v45  ;;  %v3161_v61 = vsel %vm1737_vm0, %v6791_v44, 0.0  ;;  %v1706_v29 = vpack.c.bf16 %v1479_v60, %v7240_v47  ;;  %v2879_v32 = vsub.f32 %v7243_v33, %v6778_v36  ;;  %v7246_v33 = vld [vmem:[#allocation31_spill] sm:$0xff] }
 0x400   :  { %4554 = vmatprep.mubr.msk.bf16.mxu1 %vm1737_vm0, %v3341_v0  ;;  %v3067_v24 = vpop.xlane.xlu1 %3066  ;;  %3162 = vadd.xlane.f32.xlu1 %v3161_v61 }
 0x401   :  { %v6796_v17 = vpop.xlane.xlu0 %2799  ;;  %5034 = vpow2.f32 %v2993_v46  ;;  %4555 = vmatmul.mubr.msk.bf16.vlgmr.msra.gmra.mxu1 %vm1737_vm0, %v3342_v40  ;;  %v2997_v36 = vmul.f32 1.442695, %v2879_v32  ;;  %v7250_v32 = vld [vmem:[#allocation58_spill] sm:$0xff] }
 0x402   :  { %4579 = vmatpush3.bf16.msra.mxu1 %v6757_v10  ;;  %5036 = vrcp.f32 %v3067_v24 }
 0x403   :  { %v6802_v27 = vpop.eup %5022  ;;  %4580 = vmatprep.subr.bf16.mxu1 %v1707_v25 }
 0x404   :  { %v3170_v22 = vsel %vm1737_vm0, %v6802_v27, 0.0  ;;  %v2809_v9 = vpop.xlane.xlu1 %2808 }
 0x405   :  { %v2794_v34 = vpop.xlane.xlu0 %2793  ;;  %3171 = vadd.xlane.f32.xlu0 %v3170_v22  ;;  %v2883_v45 = vsub.f32 %v7241_v15, %v2809_v9 }
 0x406   :  { %v2878_v46 = vsub.f32 %v6541_v39, %v2794_v34  ;;  %4581 = vmatpush3.bf16.msra.mxu1 %v1707_v25  ;;  %v7244_v34 = vld [vmem:[#allocation39_spill] sm:$0xff] }
 0x407   :  { %v6812_v0 = vpop.eup %5024  ;;  %v3005_v40 = vmul.f32 1.442695, %v2883_v45  ;;  %4582 = vmatprep.subr.bf16.mxu1 %v1706_v29  ;;  %v1705_v9 = vpack.c.bf16 %v1469_v57, %v7244_v34 }
 0x408   :  { %7242 = vst [vmem:[#allocation19_spill] sm:$0xff] %v6812_v0  ;;  %v2995_v10 = vmul.f32 1.442695, %v2878_v46  ;;  %v3164_v61 = vsel %vm1737_vm0, %v6812_v0, 0.0  ;;  %v5027_v38 = vpop.eup %5026  ;;  %v2803_v60 = vpop.xlane.xlu1 %2802  ;;  %v7245_v46 = vld [vmem:[#allocation33_spill] sm:$0xff] }
 0x409   :  { %v3070_v22 = vpop.xlane.xlu0 %3069  ;;  %3165 = vadd.xlane.f32.xlu0 %v3164_v61  ;;  %v5029_v39 = vpop.eup %5028  ;;  %v2881_v25 = vsub.f32 %v6558_v20, %v2803_v60  ;;  %v3288_v15 = vmul.f32 %v5027_v38, %v7245_v46  ;;  %v7247_v0 = vld [vmem:[#allocation17_spill] sm:$0xff]  ;;  %v7248_v20 = vld [vmem:[#allocation34_spill] sm:$0xff] }
 0x40a   :  { %5038 = vpow2.f32 %v2995_v10  ;;  %v5031_v37 = vpop.eup %5030  ;;  %4583 = vmatpush3.bf16.msra.mxu1 %v1706_v29  ;;  %v3285_v61 = vmul.f32 %v5029_v39, %v7246_v33 }
 0x40b   :  { %5040 = vpow2.f32 %v3005_v40  ;;  %v5033_v54 = vpop.eup %5032  ;;  %v3001_v47 = vmul.f32 1.442695, %v2881_v25  ;;  %4584 = vmatprep.subr.bf16.mxu1 %v1705_v9  ;;  %v3287_v10 = vmul.f32 %v5031_v37, %v7248_v20 }
 0x40c   :  { %5042 = vrcp.f32 %v3070_v22  ;;  %v2821_v45 = vpop.xlane.xlu1 %2820  ;;  %v3286_v44 = vmul.f32 %v5033_v54, %v7247_v0  ;;  %v7249_v22 = vld [vmem:[#allocation67_spill] sm:$0xff] }
 0x40d   :  { %v2812_v24 = vpop.xlane.xlu0 %2811  ;;  %5044 = vpow2.f32 %v3001_v47  ;;  %v2880_v60 = vsub.f32 %v7249_v22, %v6796_v17  ;;  %v3344_v34 = vpack.c.bf16 %v3288_v15, %v3287_v10  ;;  %v2887_v0 = vsub.f32 %v6572_v62, %v2821_v45  ;;  %v7251_v10 = vld [vmem:[#allocation27_spill] sm:$0xff] }
 0x40e   :  { %v2884_v57 = vsub.f32 %v6566_v51, %v2812_v24  ;;  %v6825_v40 = vpop.eup %5034  ;;  %4585 = vmatpush3.bf16.msra.mxu1 %v1705_v9  ;;  %v3343_v29 = vpack.c.bf16 %v3286_v44, %v3285_v61  ;;  %5046 = vpow2.f32 %v2997_v36 }
 0x40f   :  { %4610 = vmatprep.subr.bf16.mxu1 %v7250_v32  ;;  %v3173_v39 = vsel %vm1737_vm0, %v6825_v40, 0.0  ;;  %v2999_v9 = vmul.f32 1.442695, %v2880_v60  ;;  %v3013_v47 = vmul.f32 1.442695, %v2887_v0  ;;  %v5037_v36 = vpop.eup %5036 }
 0x410   :  { %v3007_v38 = vmul.f32 1.442695, %v2884_v57  ;;  %4558 = vmatprep.mubr.msk.bf16.mxu1 %vm1737_vm0, %v3343_v29  ;;  %3174 = vadd.xlane.f32.xlu1 %v3173_v39  ;;  %v2815_v25 = vpop.xlane.xlu1 %2814  ;;  %v3289_v29 = vmul.f32 %v5037_v36, %v7251_v10 }
 0x411   :  { %v2806_v51 = vpop.xlane.xlu0 %2805  ;;  %4559 = vmatmul.mubr.msk.bf16.gmra.mxu1 %vm1737_vm0, %v3344_v34  ;;  %v2885_v17 = vsub.f32 %v6586_v18, %v2815_v25 }
 0x412   :  { %5048 = vpow2.f32 %v3007_v38  ;;  %v2882_v44 = vsub.f32 %v6580_v6, %v2806_v51 }
 0x413   :  { %v3009_v54 = vmul.f32 1.442695, %v2885_v17 }
 0x414   :  { %v3003_v37 = vmul.f32 1.442695, %v2882_v44  ;;  %v3073_v46 = vpop.xlane.xlu1 %3072 }
 0x415   :  { %v2824_v15 = vpop.xlane.xlu0 %2823 }
 0x416   :  { %5050 = vpow2.f32 %v3003_v37  ;;  %v2888_v24 = vsub.f32 %v6598_v30, %v2824_v15 }
 0x417   :  { %v6837_v62 = vpop.eup %5038  ;;  %5052 = vpow2.f32 %v3009_v54 }
 0x418   :  { %v6840_v45 = vpop.eup %5040  ;;  %5054 = vpow2.f32 %v2999_v9  ;;  %v3176_v6 = vsel %vm1737_vm0, %v6837_v62, 0.0  ;;  %v3079_v61 = vpop.xlane.xlu1 %3078  ;;  %v3015_v60 = vmul.f32 1.442695, %v2888_v24 }
 0x419   :  { %v5043_v18 = vpop.eup %5042  ;;  %5056 = vpow2.f32 %v3013_v47  ;;  %v3191_v33 = vsel %vm1737_vm0, %v6840_v45, 0.0  ;;  %3177 = vadd.xlane.f32.xlu0 %v3176_v6  ;;  %v2818_v57 = vpop.xlane.xlu0 %2817 }
 0x41a   :  { %3192 = vadd.xlane.f32.xlu1 %v3191_v33  ;;  %v2886_v20 = vsub.f32 %v6610_v35, %v2818_v57  ;;  %v3290_v30 = vmul.f32 %v5043_v18, %v6554_v26  ;;  %v6849_v22 = vpop.eup %5044  ;;  %5058 = vrcp.f32 %v3073_v46 }
 0x41b   :  { %v3185_v39 = vsel %vm1737_vm0, %v6849_v22, 0.0  ;;  %v6853_v25 = vpop.eup %5046 }
 0x41c   :  { %v3011_v38 = vmul.f32 1.442695, %v2886_v20  ;;  %v3345_v34 = vpack.c.bf16 %v3290_v30, %v3289_v29  ;;  %v3085_v0 = vpop.xlane.xlu1 %3084  ;;  %v3179_v44 = vsel %vm1737_vm0, %v6853_v25, 0.0 }
 0x41d   :  { %v3076_v51 = vpop.xlane.xlu0 %3075 }
 0x41e   :  { %5060 = vpow2.f32 %v3011_v38  ;;  %4570 = vmatprep.mubr.msk.bf16.mxu0 %vm1737_vm0, %v3345_v34  ;;  %3186 = vadd.xlane.f32.xlu1 %v3185_v39 }
 0x41f   :  { %v6856_v35 = vpop.eup %5048  ;;  %5062 = vpow2.f32 %v3015_v60 }
 0x420   :  { %5064 = vrcp.f32 %v3076_v51  ;;  %v3194_v26 = vsel %vm1737_vm0, %v6856_v35, 0.0  ;;  %v3097_v17 = vpop.xlane.xlu1 %3096 }
 0x421   :  { %5066 = vrcp.f32 %v3079_v61  ;;  %3195 = vadd.xlane.f32.xlu0 %v3194_v26  ;;  %v3082_v9 = vpop.xlane.xlu0 %3081 }
 0x422   :  { %3180 = vadd.xlane.f32.xlu1 %v3179_v44  ;;  %5068 = vrcp.f32 %v3082_v9 }
 0x423   :  { %v6862_v37 = vpop.eup %5050  ;;  %5070 = vrcp.f32 %v3085_v0 }
 0x424   :  { %v6864_v54 = vpop.eup %5052  ;;  %v3188_v47 = vsel %vm1737_vm0, %v6862_v37, 0.0  ;;  %v3091_v36 = vpop.xlane.xlu1 %3090 }
 0x425   :  { %v6868_v46 = vpop.eup %5054  ;;  %v3197_v15 = vsel %vm1737_vm0, %v6864_v54, 0.0  ;;  %3189 = vadd.xlane.f32.xlu0 %v3188_v47  ;;  %v3088_v24 = vpop.xlane.xlu0 %3087 }
 0x426   :  { %v6872_v6 = vpop.eup %5056  ;;  %3198 = vadd.xlane.f32.xlu1 %v3197_v15  ;;  %5072 = vrcp.f32 %v3088_v24  ;;  %v3182_v18 = vsel %vm1737_vm0, %v6868_v46, 0.0 }
 0x427   :  { %v3203_v33 = vsel %vm1737_vm0, %v6872_v6, 0.0  ;;  %v5059_v20 = vpop.eup %5058 }
 0x428   :  { %v3109_v61 = vpop.xlane.xlu1 %3108  ;;  %v3291_v0 = vmul.f32 %v5059_v20, %v6591_v14 }
 0x429   :  { %3183 = vadd.xlane.f32.xlu0 %v3182_v18  ;;  %v3100_v57 = vpop.xlane.xlu0 %3099 }
 0x42a   :  { %3204 = vadd.xlane.f32.xlu1 %v3203_v33  ;;  %5074 = vrcp.f32 %v3100_v57  ;;  %v7252_v33 = vld [vmem:[#allocation52_spill] sm:$0xff] }
 0x42b   :  { %v6878_v10 = vpop.eup %5060  ;;  %5076 = vrcp.f32 %v3091_v36  ;;  %v7253_v57 = vld [vmem:[#allocation44_spill] sm:$0xff] }
 0x42c   :  { %v6880_v29 = vpop.eup %5062  ;;  %v3200_v30 = vsel %vm1737_vm0, %v6878_v10, 0.0  ;;  %v3103_v38 = vpop.xlane.xlu1 %3102  ;;  %5078 = vrcp.f32 %v3097_v17  ;;  %v1519_v14 = vadd.f32 %v7253_v57, %v7252_v33 }
 0x42d   :  { %v5065_v60 = vpop.eup %5064  ;;  %3201 = vadd.xlane.f32.xlu0 %v3200_v30  ;;  %v3094_v34 = vpop.xlane.xlu0 %3093  ;;  %v3206_v9 = vsel %vm1737_vm0, %v6880_v29, 0.0  ;;  %v7255_v30 = vld [vmem:[#allocation53_spill] sm:$0xff] }
 0x42e   :  { %v5067_v39 = vpop.eup %5066  ;;  %v3292_v51 = vmul.f32 %v5065_v60, %v6612_v2  ;;  %5080 = vrcp.f32 %v3094_v34  ;;  %v7254_v2 = vld [vmem:[#allocation54_spill] sm:$0xff] }
 0x42f   :  { %v5069_v26 = vpop.eup %5068  ;;  %v3293_v36 = vmul.f32 %v5067_v39, %v6603_v52  ;;  %v7256_v39 = vld [vmem:[#allocation50_spill] sm:$0xff] }
 0x430   :  { %v3346_v44 = vpack.c.bf16 %v3292_v51, %v3291_v0  ;;  %v3121_v47 = vpop.xlane.xlu1 %3120  ;;  %v3294_v24 = vmul.f32 %v5069_v26, %v6623_v5  ;;  %v5071_v18 = vpop.eup %5070  ;;  %v7257_v0 = vld [vmem:[#allocation41_spill] sm:$0xff]  ;;  %v7258_v26 = vld [vmem:[#allocation51_spill] sm:$0xff] }
 0x431   :  { %3207 = vadd.xlane.f32.xlu0 %v3206_v9  ;;  %v3112_v15 = vpop.xlane.xlu0 %3111  ;;  %v3295_v5 = vmul.f32 %v5071_v18, %v6615_v55  ;;  %v1509_v51 = vadd.f32 %v7257_v0, %v7256_v39 }
 0x432   :  { %4571 = vmatmul.mubr.msk.bf16.vlgmr.msra.gmra.mxu0 %vm1737_vm0, %v3346_v44  ;;  %v3347_v17 = vpack.c.bf16 %v3294_v24, %v3293_v36  ;;  %5082 = vrcp.f32 %v3112_v15  ;;  %v1710_v44 = vpack.c.bf16 %v1519_v14, %v7258_v26  ;;  %v7259_v24 = vld [vmem:[#allocation49_spill] sm:$0xff] }
 0x433   :  { %4595 = vmatpush3.bf16.msra.mxu0 %v7254_v2  ;;  %v5073_v20 = vpop.eup %5072  ;;  %5084 = vrcp.f32 %v3103_v38  ;;  %v1709_v33 = vpack.c.bf16 %v1509_v51, %v7259_v24 }
 0x434   :  { %4596 = vmatprep.subr.bf16.mxu0 %v7255_v30  ;;  %4574 = vmatprep.mubr.msk.bf16.mxu0 %vm1737_vm0, %v3347_v17  ;;  %v3115_v60 = vpop.xlane.xlu1 %3114  ;;  %v3296_v34 = vmul.f32 %v5073_v20, %v6633_v42  ;;  %5086 = vrcp.f32 %v3109_v61 }
 0x435   :  { %v3106_v52 = vpop.xlane.xlu0 %3105 }
 0x436   :  { %5088 = vrcp.f32 %v3106_v52  ;;  %v3348_v9 = vpack.c.bf16 %v3296_v34, %v3295_v5  ;;  %v7260_v5 = vld [vmem:[#allocation62_spill] sm:$0xff] }
 0x437   :  { %4597 = vmatpush3.bf16.msra.mxu0 %v7255_v30  ;;  %v5075_v38 = vpop.eup %5074 }
 0x438   :  { %4598 = vmatprep.subr.bf16.mxu0 %v1710_v44  ;;  %v5077_v36 = vpop.eup %5076  ;;  %v3133_v55 = vpop.xlane.xlu1 %3132  ;;  %v3300_v57 = vmul.f32 %v5075_v38, %v6643_v8 }
 0x439   :  { %v3124_v15 = vpop.xlane.xlu0 %3123  ;;  %v5079_v42 = vpop.eup %5078  ;;  %v3297_v14 = vmul.f32 %v5077_v36, %v6639_v43  ;;  %v7264_v36 = vld [vmem:[#allocation13_spill] sm:$0xff] }
 0x43a   :  { %4575 = vmatmul.mubr.msk.bf16.gmra.mxu0 %vm1737_vm0, %v3348_v9  ;;  %5090 = vrcp.f32 %v3124_v15  ;;  %v3299_v17 = vmul.f32 %v5079_v42, %v6629_v56  ;;  %v7262_v9 = vld [vmem:[#allocation56_spill] sm:$0xff] }
 0x43b   :  { %4599 = vmatpush3.bf16.msra.mxu0 %v1710_v44  ;;  %v5081_v18 = vpop.eup %5080  ;;  %5092 = vrcp.f32 %v3115_v60 }
 0x43c   :  { %4600 = vmatprep.subr.bf16.mxu0 %v1709_v33  ;;  %v3298_v2 = vmul.f32 %v5081_v18, %v6654_v11  ;;  %5094 = vrcp.f32 %v3121_v47  ;;  %v3350_v30 = vpack.c.bf16 %v3300_v57, %v3299_v17  ;;  %v3127_v52 = vpop.xlane.xlu1 %3126  ;;  %v7261_v11 = vld [vmem:[#allocation57_spill] sm:$0xff]  ;;  %v7266_v18 = vld [vmem:[#allocation66_spill] sm:$0xff] }
 0x43d   :  { %v3118_v61 = vpop.xlane.xlu0 %3117 }
 0x43e   :  { %5096 = vrcp.f32 %v3118_v61  ;;  %v3349_v20 = vpack.c.bf16 %v3298_v2, %v3297_v14 }
 0x43f   :  { %4601 = vmatpush3.bf16.msra.mxu0 %v1709_v33  ;;  %v5083_v34 = vpop.eup %5082  ;;  %5098 = vrcp.f32 %v3127_v52  ;;  %v7265_v33 = vld [vmem:[#allocation55_spill] sm:$0xff] }
 0x440   :  { %4626 = vmatprep.subr.bf16.mxu0 %v7260_v5  ;;  %4586 = vmatprep.mubr.msk.bf16.mxu1 %vm1737_vm0, %v3349_v20  ;;  %v5085_v60 = vpop.eup %5084  ;;  %v3304_v47 = vmul.f32 %v5083_v34, %v6663_v23  ;;  %v7263_v23 = vld [vmem:[#allocation11_spill] sm:$0xff] }
 0x441   :  { %v3136_v8 = vpop.xlane.xlu0 %3135  ;;  %4587 = vmatmul.mubr.msk.bf16.vlgmr.msra.gmra.mxu1 %vm1737_vm0, %v3350_v30  ;;  %v5087_v43 = vpop.eup %5086  ;;  %v3301_v0 = vmul.f32 %v5085_v60, %v6659_v4  ;;  %v1659_v24 = vadd.f32 %v7264_v36, %v7263_v23  ;;  %v7268_v60 = vld [vmem:[#allocation60_spill] sm:$0xff] }
 0x442   :  { %4611 = vmatpush3.bf16.msra.mxu1 %v7250_v32  ;;  %5100 = vrcp.f32 %v3136_v8  ;;  %v3303_v26 = vmul.f32 %v5087_v43, %v6649_v13 }
 0x443   :  { %v5089_v56 = vpop.eup %5088  ;;  %4612 = vmatprep.subr.bf16.mxu1 %v7261_v11  ;;  %5102 = vrcp.f32 %v3133_v55  ;;  %v1724_v57 = vpack.c.bf16 %v1659_v24, %v7266_v18 }
 0x444   :  { %v3302_v51 = vmul.f32 %v5089_v56, %v6670_v21  ;;  %v3352_v32 = vpack.c.bf16 %v3304_v47, %v3303_v26 }
 0x445   :  { %v3130_v39 = vpop.xlane.xlu0 %3129 }
 0x446   :  { %5104 = vrcp.f32 %v3130_v39  ;;  %4613 = vmatpush3.bf16.msra.mxu1 %v7261_v11  ;;  %v3351_v44 = vpack.c.bf16 %v3302_v51, %v3301_v0 }
 0x447   :  { %4614 = vmatprep.subr.bf16.mxu1 %v7262_v9  ;;  %v5091_v38 = vpop.eup %5090 }
 0x448   :  { %4590 = vmatprep.mubr.msk.bf16.mxu1 %vm1737_vm0, %v3351_v44  ;;  %v5093_v15 = vpop.eup %5092  ;;  %v3308_v13 = vmul.f32 %v5091_v38, %v6678_v7 }
 0x449   :  { %4591 = vmatmul.mubr.msk.bf16.gmra.mxu1 %vm1737_vm0, %v3352_v32  ;;  %v5095_v4 = vpop.eup %5094  ;;  %v3305_v55 = vmul.f32 %v5093_v15, %v6676_v28  ;;  %v7267_v28 = vld [vmem:[#allocation61_spill] sm:$0xff] }
 0x44a   :  { %4615 = vmatpush3.bf16.msra.mxu1 %v7262_v9  ;;  %v3307_v61 = vmul.f32 %v5095_v4, %v6668_v19 }
 0x44b   :  { %v5097_v21 = vpop.eup %5096  ;;  %4616 = vmatprep.subr.bf16.mxu1 %v7265_v33 }
 0x44c   :  { %v3306_v42 = vmul.f32 %v5097_v21, %v6686_v16  ;;  %v5099_v2 = vpop.eup %5098  ;;  %v3354_v17 = vpack.c.bf16 %v3308_v13, %v3307_v61 }
 0x44d   :  { %v3309_v16 = vmul.f32 %v5099_v2, %v6692_v31 }
 0x44e   :  { %4617 = vmatpush3.bf16.msra.mxu1 %v7265_v33  ;;  %v3353_v14 = vpack.c.bf16 %v3306_v42, %v3305_v55  ;;  %v7272_v55 = vld [vmem:[#allocation63_spill] sm:$0xff] }
 0x44f   :  { %4642 = vmatprep.subr.bf16.mxu1 %v1724_v57  ;;  %v5101_v20 = vpop.eup %5100 }
 0x450   :  { %4602 = vmatprep.mubr.msk.bf16.mxu0 %vm1737_vm0, %v3353_v14  ;;  %v5103_v7 = vpop.eup %5102  ;;  %v3312_v52 = vmul.f32 %v5101_v20, %v6698_v58 }
 0x451   :  { %4603 = vmatmul.mubr.msk.bf16.vlgmr.msra.gmra.mxu0 %vm1737_vm0, %v3354_v17  ;;  %v3311_v8 = vmul.f32 %v5103_v7, %v6684_v59 }
 0x452   :  { %4627 = vmatpush3.bf16.msra.mxu0 %v7260_v5  ;;  %v7269_v5 = vld [vmem:[#allocation59_spill] sm:$0xff] }
 0x453   :  { %v5105_v30 = vpop.eup %5104  ;;  %4628 = vmatprep.subr.bf16.mxu0 %v7267_v28  ;;  %v3356_v43 = vpack.c.bf16 %v3312_v52, %v3311_v8  ;;  %v7275_v52 = vld [vmem:[#allocation22_spill] sm:$0xff] }
 0x454   :  { %v3310_v19 = vmul.f32 %v5105_v30, %v6702_v48 }
 0x456   :  { %v3355_v34 = vpack.c.bf16 %v3310_v19, %v3309_v16  ;;  %4629 = vmatpush3.bf16.msra.mxu0 %v7267_v28  ;;  %v7273_v28 = vld [vmem:[#allocation12_spill] sm:$0xff] }
 0x457   :  { %4630 = vmatprep.subr.bf16.mxu0 %v7268_v60 }
 0x458   :  { %4606 = vmatprep.mubr.msk.bf16.mxu0 %vm1737_vm0, %v3355_v34 }
 0x459   :  { %4607 = vmatmul.mubr.msk.bf16.gmra.mxu0 %vm1737_vm0, %v3356_v43 }
 0x45a   :  { %4631 = vmatpush3.bf16.msra.mxu0 %v7268_v60 }
 0x45b   :  { %4632 = vmatprep.subr.bf16.mxu0 %v7269_v5 }
 0x45e   :  { %4633 = vmatpush3.bf16.msra.mxu0 %v7269_v5 }
 0x465   :  { %v3145_v31 = vpop.xlane.xlu1 %3144 }
 0x469   :  { %v3139_v58 = vpop.xlane.xlu1 %3138 }
 0x46d   :  { %v3148_v48 = vpop.xlane.xlu0 %3147 }
 0x46e   :  { %5106 = vrcp.f32 %v3148_v48 }
 0x46f   :  { %5108 = vrcp.f32 %v3139_v58 }
 0x470   :  { %5110 = vrcp.f32 %v3145_v31 }
 0x471   :  { %v3142_v59 = vpop.xlane.xlu0 %3141 }
 0x472   :  { %5112 = vrcp.f32 %v3142_v59 }
 0x475   :  { %v3157_v56 = vpop.xlane.xlu1 %3156 }
 0x479   :  { %v3151_v39 = vpop.xlane.xlu1 %3150 }
 0x47b   :  { %v5107_v11 = vpop.eup %5106 }
 0x47c   :  { %v5109_v47 = vpop.eup %5108  ;;  %v3316_v44 = vmul.f32 %v5107_v11, %v6732_v12  ;;  %v7270_v12 = vld [vmem:[#allocation65_spill] sm:$0xff] }
 0x47d   :  { %v3160_v0 = vpop.xlane.xlu0 %3159  ;;  %v5111_v51 = vpop.eup %5110  ;;  %v3313_v9 = vmul.f32 %v5109_v47, %v6722_v53  ;;  %v7271_v53 = vld [vmem:[#allocation64_spill] sm:$0xff] }
 0x47e   :  { %5114 = vrcp.f32 %v3160_v0  ;;  %v3315_v38 = vmul.f32 %v5111_v51, %v6711_v63 }
 0x47f   :  { %v5113_v26 = vpop.eup %5112  ;;  %5116 = vrcp.f32 %v3151_v39 }
 0x480   :  { %v3314_v32 = vmul.f32 %v5113_v26, %v6741_v1  ;;  %5118 = vrcp.f32 %v3157_v56  ;;  %v3358_v36 = vpack.c.bf16 %v3316_v44, %v3315_v38 }
 0x481   :  { %v3154_v15 = vpop.xlane.xlu0 %3153 }
 0x482   :  { %5120 = vrcp.f32 %v3154_v15  ;;  %v3357_v23 = vpack.c.bf16 %v3314_v32, %v3313_v9 }
 0x484   :  { %4618 = vmatprep.mubr.msk.bf16.mxu1 %vm1737_vm0, %v3357_v23 }
 0x485   :  { %4619 = vmatmul.mubr.msk.bf16.vlgmr.msra.gmra.mxu1 %vm1737_vm0, %v3358_v36  ;;  %v3169_v24 = vpop.xlane.xlu1 %3168 }
 0x486   :  { %4643 = vmatpush3.bf16.msra.mxu1 %v1724_v57 }
 0x487   :  { %4644 = vmatprep.subr.bf16.mxu1 %v7270_v12 }
 0x489   :  { %v3163_v63 = vpop.xlane.xlu1 %3162 }
 0x48a   :  { %4645 = vmatpush3.bf16.msra.mxu1 %v7270_v12 }
 0x48b   :  { %4646 = vmatprep.subr.bf16.mxu1 %v7271_v53  ;;  %v5115_v1 = vpop.eup %5114 }
 0x48c   :  { %v5117_v4 = vpop.eup %5116  ;;  %v3320_v42 = vmul.f32 %v5115_v1, %v6769_v3 }
 0x48d   :  { %v5119_v13 = vpop.eup %5118  ;;  %v3317_v18 = vmul.f32 %v5117_v4, %v6761_v49 }
 0x48e   :  { %v3172_v21 = vpop.xlane.xlu0 %3171  ;;  %4647 = vmatpush3.bf16.msra.mxu1 %v7271_v53  ;;  %v3319_v14 = vmul.f32 %v5119_v13, %v6749_v41  ;;  %v7274_v41 = vld [vmem:[#allocation19_spill] sm:$0xff] }
 0x48f   :  { %v5121_v33 = vpop.eup %5120  ;;  %5122 = vrcp.f32 %v3172_v21  ;;  %4648 = vmatprep.subr.bf16.mxu1 %v7272_v55 }
 0x490   :  { %5124 = vrcp.f32 %v3163_v63  ;;  %v3318_v57 = vmul.f32 %v5121_v33, %v6774_v50  ;;  %v3360_v17 = vpack.c.bf16 %v3320_v42, %v3319_v14 }
 0x491   :  { %5126 = vrcp.f32 %v3169_v24 }
 0x492   :  { %v3166_v61 = vpop.xlane.xlu0 %3165  ;;  %4649 = vmatpush3.bf16.msra.mxu1 %v7272_v55  ;;  %v3359_v2 = vpack.c.bf16 %v3318_v57, %v3317_v18 }
 0x493   :  { %5128 = vrcp.f32 %v3166_v61 }
 0x494   :  { %4622 = vmatprep.mubr.msk.bf16.mxu1 %vm1737_vm0, %v3359_v2 }
 0x495   :  { %4623 = vmatmul.mubr.msk.bf16.gmra.mxu1 %vm1737_vm0, %v3360_v17 }
 0x499   :  { %v3175_v7 = vpop.xlane.xlu1 %3174 }
 0x49a   :  { %5130 = vrcp.f32 %v3175_v7 }
 0x49c   :  { %v5123_v20 = vpop.eup %5122 }
 0x49d   :  { %v5125_v3 = vpop.eup %5124  ;;  %v3324_v50 = vmul.f32 %v5123_v20, %v6802_v27 }
 0x49e   :  { %v5127_v30 = vpop.eup %5126  ;;  %v3321_v16 = vmul.f32 %v5125_v3, %v7273_v28 }
 0x49f   :  { %v3323_v34 = vmul.f32 %v5127_v30, %v7275_v52 }
 0x4a0   :  { %v5129_v49 = vpop.eup %5128 }
 0x4a1   :  { %v3322_v19 = vmul.f32 %v5129_v49, %v7274_v41  ;;  %v4540_v8 = vpop.f32.mrf.mxu1  ;;  %v3362_v31 = vpack.c.bf16 %v3324_v50, %v3323_v34 }
 0x4a2   :  { %v3178_v60 = vpop.xlane.xlu0 %3177  ;;  %3987 = vst.msk [vmem:[#allocation5 + $0x10] sm:$0xff] %vm1737_vm0, %v4540_v8 }
 0x4a3   :  { %v3193_v43 = vpop.xlane.xlu1 %3192  ;;  %5132 = vrcp.f32 %v3178_v60  ;;  %v3361_v5 = vpack.c.bf16 %v3322_v19, %v3321_v16  ;;  %v3415_v58 = vpop.f32.mrf.mxu1 }
 0x4a4   :  { %3985 = vst.msk [vmem:[#allocation5] sm:$0xff] %vm1737_vm0, %v3415_v58 }
 0x4a5   :  { %4634 = vmatprep.mubr.msk.bf16.mxu0 %vm1737_vm0, %v3361_v5  ;;  %v4541_v27 = vpop.f32.mrf.mxu1 }
 0x4a6   :  { %4635 = vmatmul.mubr.msk.bf16.vlgmr.msra.gmra.mxu0 %vm1737_vm0, %v3362_v31  ;;  %3988 = vst.msk [vmem:[#allocation5 + $0x18] sm:$0xff] %vm1737_vm0, %v4541_v27 }
 0x4a7   :  { %v3187_v48 = vpop.xlane.xlu1 %3186  ;;  %v3418_v59 = vpop.f32.mrf.mxu1 }
 0x4a8   :  { %3986 = vst.msk [vmem:[#allocation5 + $0x8] sm:$0xff] %vm1737_vm0, %v3418_v59  ;;  %v5131_v47 = vpop.eup %5130 }
 0x4a9   :  { %v3325_v26 = vmul.f32 %v5131_v47, %v6825_v40 }
 0x4aa   :  { %v3196_v56 = vpop.xlane.xlu0 %3195 }
 0x4ab   :  { %v3181_v11 = vpop.xlane.xlu1 %3180  ;;  %5134 = vrcp.f32 %v3196_v56 }
 0x4ac   :  { %5136 = vrcp.f32 %v3187_v48 }
 0x4ad   :  { %5138 = vrcp.f32 %v3193_v43 }
 0x4ae   :  { %v3190_v39 = vpop.xlane.xlu0 %3189 }
 0x4af   :  { %v3199_v0 = vpop.xlane.xlu1 %3198  ;;  %5140 = vrcp.f32 %v3190_v39 }
 0x4b0   :  { %v5133_v51 = vpop.eup %5132  ;;  %5142 = vrcp.f32 %v3181_v11 }
 0x4b1   :  { %v3326_v44 = vmul.f32 %v5133_v51, %v6837_v62  ;;  %v4544_v9 = vpop.f32.mrf.mxu1 }
 0x4b2   :  { %v3184_v32 = vpop.xlane.xlu0 %3183  ;;  %3991 = vst.msk [vmem:[#allocation5 + $0x30] sm:$0xff] %vm1737_vm0, %v4544_v9 }
 0x4b3   :  { %5144 = vrcp.f32 %v3184_v32  ;;  %v3363_v38 = vpack.c.bf16 %v3326_v44, %v3325_v26  ;;  %v3431_v15 = vpop.f32.mrf.mxu1  ;;  %v3205_v23 = vpop.xlane.xlu1 %3204 }
 0x4b4   :  { %5146 = vrcp.f32 %v3199_v0  ;;  %3989 = vst.msk [vmem:[#allocation5 + $0x20] sm:$0xff] %vm1737_vm0, %v3431_v15 }
 0x4b5   :  { %4638 = vmatprep.mubr.msk.bf16.mxu0 %vm1737_vm0, %v3363_v38  ;;  %v4545_v36 = vpop.f32.mrf.mxu1 }
 0x4b6   :  { %v3202_v24 = vpop.xlane.xlu0 %3201  ;;  %3992 = vst.msk [vmem:[#allocation5 + $0x38] sm:$0xff] %vm1737_vm0, %v4545_v36 }
 0x4b7   :  { %5148 = vrcp.f32 %v3202_v24  ;;  %v3434_v40 = vpop.f32.mrf.mxu1 }
 0x4b8   :  { %v5135_v62 = vpop.eup %5134  ;;  %5150 = vrcp.f32 %v3205_v23  ;;  %3990 = vst.msk [vmem:[#allocation5 + $0x28] sm:$0xff] %vm1737_vm0, %v3434_v40 }
 0x4b9   :  { %v5137_v12 = vpop.eup %5136  ;;  %v3332_v63 = vmul.f32 %v5135_v62, %v6856_v35 }
 0x4ba   :  { %v3208_v53 = vpop.xlane.xlu0 %3207  ;;  %v5139_v1 = vpop.eup %5138  ;;  %v3329_v21 = vmul.f32 %v5137_v12, %v6849_v22 }
 0x4bb   :  { %5152 = vrcp.f32 %v3208_v53  ;;  %v3331_v55 = vmul.f32 %v5139_v1, %v6840_v45 }
 0x4bc   :  { %v5141_v4 = vpop.eup %5140 }
 0x4bd   :  { %v3330_v13 = vmul.f32 %v5141_v4, %v6862_v37  ;;  %v5143_v33 = vpop.eup %5142  ;;  %v3366_v57 = vpack.c.bf16 %v3332_v63, %v3331_v55 }
 0x4be   :  { %v3327_v61 = vmul.f32 %v5143_v33, %v6853_v25 }
 0x4bf   :  { %v3365_v42 = vpack.c.bf16 %v3330_v13, %v3329_v21 }
 0x4c0   :  { %v5145_v18 = vpop.eup %5144 }
 0x4c1   :  { %4650 = vmatprep.mubr.msk.bf16.mxu1 %vm1737_vm0, %v3365_v42  ;;  %v3328_v14 = vmul.f32 %v5145_v18, %v6868_v46  ;;  %v5147_v2 = vpop.eup %5146  ;;  %v4556_v17 = vpop.f32.mrf.mxu1 }
 0x4c2   :  { %4651 = vmatmul.mubr.msk.bf16.vlgmr.msra.gmra.mxu1 %vm1737_vm0, %v3366_v57  ;;  %3995 = vst.msk [vmem:[#allocation5 + $0x50] sm:$0xff] %vm1737_vm0, %v4556_v17  ;;  %v3333_v45 = vmul.f32 %v5147_v2, %v6864_v54 }
 0x4c3   :  { %v3364_v22 = vpack.c.bf16 %v3328_v14, %v3327_v61  ;;  %v3492_v37 = vpop.f32.mrf.mxu1 }
 0x4c4   :  { %v5149_v35 = vpop.eup %5148  ;;  %3993 = vst.msk [vmem:[#allocation5 + $0x40] sm:$0xff] %vm1737_vm0, %v3492_v37 }
 0x4c5   :  { %4639 = vmatmul.mubr.msk.bf16.gmra.mxu0 %vm1737_vm0, %v3364_v22  ;;  %v3334_v20 = vmul.f32 %v5149_v35, %v6878_v10  ;;  %v5151_v25 = vpop.eup %5150  ;;  %v4557_v3 = vpop.f32.mrf.mxu1 }
 0x4c6   :  { %3996 = vst.msk [vmem:[#allocation5 + $0x58] sm:$0xff] %vm1737_vm0, %v4557_v3  ;;  %v3335_v49 = vmul.f32 %v5151_v25, %v6872_v6 }
 0x4c7   :  { %v3367_v46 = vpack.c.bf16 %v3334_v20, %v3333_v45  ;;  %v3495_v30 = vpop.f32.mrf.mxu1 }
 0x4c8   :  { %v5153_v7 = vpop.eup %5152  ;;  %3994 = vst.msk [vmem:[#allocation5 + $0x48] sm:$0xff] %vm1737_vm0, %v3495_v30 }
 0x4c9   :  { %v3336_v50 = vmul.f32 %v5153_v7, %v6880_v29  ;;  %4654 = vmatprep.mubr.msk.bf16.mxu1 %vm1737_vm0, %v3367_v46 }
 0x4cb   :  { %v3368_v28 = vpack.c.bf16 %v3336_v50, %v3335_v49 }
 0x4cd   :  { %4655 = vmatmul.mubr.msk.bf16.gmra.mxu1 %vm1737_vm0, %v3368_v28 }
 0x4d1   :  { %v4560_v54 = vpop.f32.mrf.mxu1 }
 0x4d2   :  { %3999 = vst.msk [vmem:[#allocation5 + $0x70] sm:$0xff] %vm1737_vm0, %v4560_v54 }
 0x4d3   :  { %v3508_v10 = vpop.f32.mrf.mxu1 }
 0x4d4   :  { %3997 = vst.msk [vmem:[#allocation5 + $0x60] sm:$0xff] %vm1737_vm0, %v3508_v10 }
 0x4d5   :  { %v4561_v16 = vpop.f32.mrf.mxu1 }
 0x4d6   :  { %4000 = vst.msk [vmem:[#allocation5 + $0x78] sm:$0xff] %vm1737_vm0, %v4561_v16 }
 0x4d7   :  { %v3511_v41 = vpop.f32.mrf.mxu1 }
 0x4d8   :  { %3998 = vst.msk [vmem:[#allocation5 + $0x68] sm:$0xff] %vm1737_vm0, %v3511_v41 }
 0x4f2   :  { %v4572_v6 = vpop.f32.mrf.mxu0 }
 0x4f3   :  { %4003 = vst.msk [vmem:[#allocation5 + $0x90] sm:$0xff] %vm1737_vm0, %v4572_v6 }
 0x4f4   :  { %v3569_v29 = vpop.f32.mrf.mxu0 }
 0x4f5   :  { %4001 = vst.msk [vmem:[#allocation5 + $0x80] sm:$0xff] %vm1737_vm0, %v3569_v29 }
 0x4f6   :  { %v4573_v19 = vpop.f32.mrf.mxu0 }
 0x4f7   :  { %4004 = vst.msk [vmem:[#allocation5 + $0x98] sm:$0xff] %vm1737_vm0, %v4573_v19 }
 0x4f8   :  { %v3572_v52 = vpop.f32.mrf.mxu0 }
 0x4f9   :  { %4002 = vst.msk [vmem:[#allocation5 + $0x88] sm:$0xff] %vm1737_vm0, %v3572_v52 }
 0x4fa   :  { %v4576_v34 = vpop.f32.mrf.mxu0 }
 0x4fb   :  { %4007 = vst.msk [vmem:[#allocation5 + $0xb0] sm:$0xff] %vm1737_vm0, %v4576_v34 }
 0x4fc   :  { %v3585_v8 = vpop.f32.mrf.mxu0 }
 0x4fd   :  { %4005 = vst.msk [vmem:[#allocation5 + $0xa0] sm:$0xff] %vm1737_vm0, %v3585_v8 }
 0x4fe   :  { %v4577_v60 = vpop.f32.mrf.mxu0 }
 0x4ff   :  { %4008 = vst.msk [vmem:[#allocation5 + $0xb8] sm:$0xff] %vm1737_vm0, %v4577_v60 }
 0x500   :  { %v3588_v43 = vpop.f32.mrf.mxu0 }
 0x501   :  { %4006 = vst.msk [vmem:[#allocation5 + $0xa8] sm:$0xff] %vm1737_vm0, %v3588_v43  ;;  %v4588_v5 = vpop.f32.mrf.mxu1 }
 0x502   :  { %4011 = vst.msk [vmem:[#allocation5 + $0xd0] sm:$0xff] %vm1737_vm0, %v4588_v5 }
 0x503   :  { %v3646_v31 = vpop.f32.mrf.mxu1 }
 0x504   :  { %4009 = vst.msk [vmem:[#allocation5 + $0xc0] sm:$0xff] %vm1737_vm0, %v3646_v31 }
 0x505   :  { %v4589_v58 = vpop.f32.mrf.mxu1 }
 0x506   :  { %4012 = vst.msk [vmem:[#allocation5 + $0xd8] sm:$0xff] %vm1737_vm0, %v4589_v58 }
 0x507   :  { %v3649_v27 = vpop.f32.mrf.mxu1 }
 0x508   :  { %4010 = vst.msk [vmem:[#allocation5 + $0xc8] sm:$0xff] %vm1737_vm0, %v3649_v27 }
 0x509   :  { %v4592_v48 = vpop.f32.mrf.mxu1 }
 0x50a   :  { %4015 = vst.msk [vmem:[#allocation5 + $0xf0] sm:$0xff] %vm1737_vm0, %v4592_v48 }
 0x50b   :  { %v3662_v59 = vpop.f32.mrf.mxu1 }
 0x50c   :  { %4013 = vst.msk [vmem:[#allocation5 + $0xe0] sm:$0xff] %vm1737_vm0, %v3662_v59 }
 0x50d   :  { %v4593_v56 = vpop.f32.mrf.mxu1 }
 0x50e   :  { %4016 = vst.msk [vmem:[#allocation5 + $0xf8] sm:$0xff] %vm1737_vm0, %v4593_v56 }
 0x50f   :  { %v3665_v11 = vpop.f32.mrf.mxu1 }
 0x510   :  { %4014 = vst.msk [vmem:[#allocation5 + $0xe8] sm:$0xff] %vm1737_vm0, %v3665_v11 }
 0x511   :  { %v4604_v47 = vpop.f32.mrf.mxu0 }
 0x512   :  { %4019 = vst.msk [vmem:[#allocation5 + $0x110] sm:$0xff] %vm1737_vm0, %v4604_v47 }
 0x513   :  { %v3723_v39 = vpop.f32.mrf.mxu0 }
 0x514   :  { %4017 = vst.msk [vmem:[#allocation5 + $0x100] sm:$0xff] %vm1737_vm0, %v3723_v39 }
 0x515   :  { %v4605_v0 = vpop.f32.mrf.mxu0 }
 0x516   :  { %4020 = vst.msk [vmem:[#allocation5 + $0x118] sm:$0xff] %vm1737_vm0, %v4605_v0 }
 0x517   :  { %v3726_v51 = vpop.f32.mrf.mxu0 }
 0x518   :  { %4018 = vst.msk [vmem:[#allocation5 + $0x108] sm:$0xff] %vm1737_vm0, %v3726_v51 }
 0x519   :  { %v4608_v26 = vpop.f32.mrf.mxu0 }
 0x51a   :  { %4023 = vst.msk [vmem:[#allocation5 + $0x130] sm:$0xff] %vm1737_vm0, %v4608_v26 }
 0x51b   :  { %v3739_v44 = vpop.f32.mrf.mxu0 }
 0x51c   :  { %4021 = vst.msk [vmem:[#allocation5 + $0x120] sm:$0xff] %vm1737_vm0, %v3739_v44 }
 0x51d   :  { %v4609_v9 = vpop.f32.mrf.mxu0 }
 0x51e   :  { %4024 = vst.msk [vmem:[#allocation5 + $0x138] sm:$0xff] %vm1737_vm0, %v4609_v9 }
 0x51f   :  { %v3742_v32 = vpop.f32.mrf.mxu0 }
 0x520   :  { %4022 = vst.msk [vmem:[#allocation5 + $0x128] sm:$0xff] %vm1737_vm0, %v3742_v32 }
 0x545   :  { %v4620_v38 = vpop.f32.mrf.mxu1 }
 0x546   :  { %4027 = vst.msk [vmem:[#allocation5 + $0x150] sm:$0xff] %vm1737_vm0, %v4620_v38 }
 0x547   :  { %v3800_v15 = vpop.f32.mrf.mxu1 }
 0x548   :  { %4025 = vst.msk [vmem:[#allocation5 + $0x140] sm:$0xff] %vm1737_vm0, %v3800_v15 }
 0x549   :  { %v4621_v23 = vpop.f32.mrf.mxu1 }
 0x54a   :  { %4028 = vst.msk [vmem:[#allocation5 + $0x158] sm:$0xff] %vm1737_vm0, %v4621_v23 }
 0x54b   :  { %v3803_v36 = vpop.f32.mrf.mxu1 }
 0x54c   :  { %4026 = vst.msk [vmem:[#allocation5 + $0x148] sm:$0xff] %vm1737_vm0, %v3803_v36 }
 0x555   :  { %v4624_v24 = vpop.f32.mrf.mxu1 }
 0x556   :  { %4031 = vst.msk [vmem:[#allocation5 + $0x170] sm:$0xff] %vm1737_vm0, %v4624_v24 }
 0x557   :  { %v3816_v40 = vpop.f32.mrf.mxu1 }
 0x558   :  { %4029 = vst.msk [vmem:[#allocation5 + $0x160] sm:$0xff] %vm1737_vm0, %v3816_v40 }
 0x559   :  { %v4625_v62 = vpop.f32.mrf.mxu1 }
 0x55a   :  { %4032 = vst.msk [vmem:[#allocation5 + $0x178] sm:$0xff] %vm1737_vm0, %v4625_v62 }
 0x55b   :  { %v3819_v12 = vpop.f32.mrf.mxu1 }
 0x55c   :  { %4030 = vst.msk [vmem:[#allocation5 + $0x168] sm:$0xff] %vm1737_vm0, %v3819_v12 }
 0x566   :  { %v4636_v53 = vpop.f32.mrf.mxu0 }
 0x567   :  { %4035 = vst.msk [vmem:[#allocation5 + $0x190] sm:$0xff] %vm1737_vm0, %v4636_v53 }
 0x568   :  { %v3877_v1 = vpop.f32.mrf.mxu0 }
 0x569   :  { %4033 = vst.msk [vmem:[#allocation5 + $0x180] sm:$0xff] %vm1737_vm0, %v3877_v1 }
 0x56a   :  { %v4637_v4 = vpop.f32.mrf.mxu0 }
 0x56b   :  { %4036 = vst.msk [vmem:[#allocation5 + $0x198] sm:$0xff] %vm1737_vm0, %v4637_v4 }
 0x56c   :  { %v3880_v63 = vpop.f32.mrf.mxu0 }
 0x56d   :  { %4034 = vst.msk [vmem:[#allocation5 + $0x188] sm:$0xff] %vm1737_vm0, %v3880_v63 }
 0x582   :  { %v4652_v21 = vpop.f32.mrf.mxu1 }
 0x583   :  { %4043 = vst.msk [vmem:[#allocation5 + $0x1d0] sm:$0xff] %vm1737_vm0, %v4652_v21 }
 0x584   :  { %v3954_v13 = vpop.f32.mrf.mxu1 }
 0x585   :  { %4041 = vst.msk [vmem:[#allocation5 + $0x1c0] sm:$0xff] %vm1737_vm0, %v3954_v13  ;;  %v4640_v33 = vpop.f32.mrf.mxu0 }
 0x586   :  { %4039 = vst.msk [vmem:[#allocation5 + $0x1b0] sm:$0xff] %vm1737_vm0, %v4640_v33  ;;  %v4653_v55 = vpop.f32.mrf.mxu1 }
 0x587   :  { %4044 = vst.msk [vmem:[#allocation5 + $0x1d8] sm:$0xff] %vm1737_vm0, %v4653_v55  ;;  %v3893_v42 = vpop.f32.mrf.mxu0 }
 0x588   :  { %4037 = vst.msk [vmem:[#allocation5 + $0x1a0] sm:$0xff] %vm1737_vm0, %v3893_v42  ;;  %v3957_v18 = vpop.f32.mrf.mxu1 }
 0x589   :  { %4042 = vst.msk [vmem:[#allocation5 + $0x1c8] sm:$0xff] %vm1737_vm0, %v3957_v18  ;;  %v4641_v57 = vpop.f32.mrf.mxu0 }
 0x58a   :  { %4040 = vst.msk [vmem:[#allocation5 + $0x1b8] sm:$0xff] %vm1737_vm0, %v4641_v57 }
 0x58b   :  { %v3896_v61 = vpop.f32.mrf.mxu0 }
 0x58c   :  { %4038 = vst.msk [vmem:[#allocation5 + $0x1a8] sm:$0xff] %vm1737_vm0, %v3896_v61 }
 0x58d   :  { %v4656_v14 = vpop.f32.mrf.mxu1 }
 0x58e   :  { %4047 = vst.msk [vmem:[#allocation5 + $0x1f0] sm:$0xff] %vm1737_vm0, %v4656_v14 }
 0x58f   :  { %v3970_v2 = vpop.f32.mrf.mxu1 }
 0x590   :  { %4045 = vst.msk [vmem:[#allocation5 + $0x1e0] sm:$0xff] %vm1737_vm0, %v3970_v2 }
 0x591   :  { %v4657_v17 = vpop.f32.mrf.mxu1 }
 0x592   :  { %4048 = vst.msk [vmem:[#allocation5 + $0x1f8] sm:$0xff] %vm1737_vm0, %v4657_v17 }
 0x593   :  { %v3973_v22 = vpop.f32.mrf.mxu1 }
 0x594   :  { %4046 = vst.msk [vmem:[#allocation5 + $0x1e8] sm:$0xff] %vm1737_vm0, %v3973_v22 }
 0x595   :  { %5185 = shalt.err (!%p5182_p9)
}
 0x596   :  { %s5204_s27 = smov 128   ;;  %s5205_s28 = smov 8  }
 0x597   :  { %4060 = dma.vmem_to_hbm [thread:$0]  %s4055_s25, 8192, %s7057_s2, [#allocation4], %s5204_s27, %s5204_s27, %s5205_s28  }
 0x598   :  { %5196 = dma.done.wait [#allocation4], 8192  }
 0x599   :  { %5197 = vsyncadd [#allocation4], 4294959104 }
 0x59a   :  { %4064 = vsyncpa [#allocation3], 1 }
 0x59b   :  { %4065 = vsyncpa [#allocation4], 1 }

</bundles_post_ra>
